<compile_context>
chip_gen: v6e
topology: v6e:2x2x1
jax: 0.10.0
libtpu: 0.0.40
codegen_flags: <defaults>
</compile_context>

<pallas_src>
import numpy as np
import jax
import jax.numpy as jnp
from jax import lax
from jax.experimental import pallas as pl
from jax.experimental.pallas import tpu as pltpu

# ---- small synthetic BERT config ----
VOCAB = 50
TYPE_VOCAB = 2
MAX_POS = 16
HIDDEN = 32
NUM_HEADS = 4
HEAD_DIM = HIDDEN // NUM_HEADS
INTERMEDIATE = 64
NUM_LAYERS = 2
NUM_TAGS = 5
LN_EPS = 1e-12


# ---------------- in-kernel helpers ----------------
def _layernorm(x, gamma, beta):
    mu = jnp.mean(x, axis=-1, keepdims=True)
    var = jnp.mean((x - mu) ** 2, axis=-1, keepdims=True)
    return (x - mu) * lax.rsqrt(var + jnp.float32(LN_EPS)) * gamma + beta


def _gelu(x):
    c = jnp.float32(0.7978845608028654)  # sqrt(2/pi)
    return 0.5 * x * (1.0 + jnp.tanh(c * (x + 0.044715 * x * x * x)))


# ---------------- fused whole-model kernel (single invocation, no grid) ----------------
def bert_kernel(tok_ref, seg_ref, mask_ref,
                wemb_ref, pemb_ref, temb_ref, eg_ref, eb_ref,
                cw_ref, cb_ref,
                qw_ref, qb_ref, kw_ref, kb_ref, vw_ref, vb_ref,
                owh_ref, ob_ref, l1g_ref, l1b_ref,
                w1_ref, b1_ref, w2_ref, b2_ref, l2g_ref, l2b_ref,
                pred_ref):
    B, _, S = mask_ref.shape
    BS = tok_ref.shape[0]
    H = wemb_ref.shape[1]
    NH, HD = NUM_HEADS, HEAD_DIM
    f32, bf16 = jnp.float32, jnp.bfloat16
    scale = f32(1.0 / (HD ** 0.5))

    # ---- embeddings (+LayerNorm): one-hot matmuls against the small tables ----
    oh_tok = (lax.broadcasted_iota(jnp.int32, (BS, wemb_ref.shape[0]), 1)
              == tok_ref[...]).astype(f32)
    oh_seg = (lax.broadcasted_iota(jnp.int32, (BS, temb_ref.shape[0]), 1)
              == seg_ref[...]).astype(f32)
    we = jnp.dot(oh_tok, wemb_ref[...], preferred_element_type=f32)        # (BS, H)
    te = jnp.dot(oh_seg, temb_ref[...], preferred_element_type=f32)        # (BS, H)
    pe = pemb_ref[0:S, :]                                                  # (S, H)
    x3 = _layernorm((we + te).reshape(B, S, H) + pe, eg_ref[...], eb_ref[...])

    # additive attention-mask bias, computed once (loop invariant), (B, 1, S)
    bias = (1.0 - mask_ref[...].astype(f32)) * f32(-1e9)

    def softmax_lastdim(s):
        s = s - jnp.max(s, axis=-1, keepdims=True)
        p = jnp.exp(s)
        return p * pl.reciprocal(jnp.sum(p, axis=-1, keepdims=True), approx=True)

    def attend(q3, k3, v3, l):
        # q3: (B, Q, H) bf16; k3/v3: (B, S, H) bf16  ->  (B*Q, H) f32 attention output
        Q = q3.shape[1]
        s_all = jnp.stack(
            [jnp.einsum('bqd,bkd->bqk',
                        q3[:, :, h * HD:(h + 1) * HD],
                        k3[:, :, h * HD:(h + 1) * HD],
                        preferred_element_type=f32)
             for h in range(NH)], axis=0) * scale + bias                   # (NH, B, Q, S)
        p_all = softmax_lastdim(s_all).astype(bf16)
        ctx = jnp.stack(
            [jnp.einsum('bqk,bkd->bqd', p_all[h],
                        v3[:, :, h * HD:(h + 1) * HD],
                        preferred_element_type=f32)
             for h in range(NH)], axis=0)                                  # (NH, B, Q, HD)
        ctx = ctx.reshape(NH, B * Q, HD).astype(bf16)
        # one head-batched projection against W_o pre-split (wrapper) to (NH, HD, H)
        proj = jnp.einsum('hmd,hdo->hmo', ctx, owh_ref[l],
                          preferred_element_type=f32)                      # (NH, B*Q, H)
        attn = proj[0]
        for h in range(1, NH):
            attn = attn + proj[h]
        return attn + ob_ref[l]                                            # (B*Q, H)

    # ---- full encoder layers 0 .. L-2 (all S positions feed the next layer) ----
    for l in range(NUM_LAYERS - 1):
        x2 = x3.reshape(BS, H)
        xb = x2.astype(bf16)                                               # cast once, reused
        q = (jnp.dot(xb, qw_ref[l], preferred_element_type=f32)
             + qb_ref[l]).astype(bf16).reshape(B, S, H)
        k = (jnp.dot(xb, kw_ref[l], preferred_element_type=f32)
             + kb_ref[l]).astype(bf16).reshape(B, S, H)
        v = (jnp.dot(xb, vw_ref[l], preferred_element_type=f32)
             + vb_ref[l]).astype(bf16).reshape(B, S, H)
        attn = attend(q, k, v, l).reshape(B, S, H)
        h1 = _layernorm(x3 + attn, l1g_ref[l], l1b_ref[l])                 # (B, S, H)
        h1b = h1.reshape(BS, H).astype(bf16)
        f = _gelu(jnp.dot(h1b, w1_ref[l], preferred_element_type=f32) + b1_ref[l])
        f2 = jnp.dot(f.astype(bf16), w2_ref[l], preferred_element_type=f32) + b2_ref[l]
        x3 = _layernorm(h1 + f2.reshape(B, S, H), l2g_ref[l], l2b_ref[l])

    # ---- last encoder layer: only the [CLS] query row is needed by the classifier ----
    l = NUM_LAYERS - 1
    x2 = x3.reshape(BS, H)
    xb = x2.astype(bf16)
    k = (jnp.dot(xb, kw_ref[l], preferred_element_type=f32)
         + kb_ref[l]).astype(bf16).reshape(B, S, H)
    v = (jnp.dot(xb, vw_ref[l], preferred_element_type=f32)
         + vb_ref[l]).astype(bf16).reshape(B, S, H)
    x_cls = x3[:, 0:1, :].reshape(B, H)                                    # (B, H) f32
    qc = (jnp.dot(x_cls.astype(bf16), qw_ref[l], preferred_element_type=f32)
          + qb_ref[l]).astype(bf16).reshape(B, 1, H)
    attn_cls = attend(qc, k, v, l)                                         # (B, H)
    h1 = _layernorm(x_cls + attn_cls, l1g_ref[l], l1b_ref[l])              # (B, H)
    f = _gelu(jnp.dot(h1.astype(bf16), w1_ref[l], preferred_element_type=f32) + b1_ref[l])
    f2 = jnp.dot(f.astype(bf16), w2_ref[l], preferred_element_type=f32) + b2_ref[l]
    out_cls = _layernorm(h1 + f2, l2g_ref[l], l2b_ref[l])                  # (B, H)

    # ---- classifier: 2-D (B,H)@(H,T); softmax dropped (monotonic under argmax) ----
    logits = jnp.dot(out_cls, cw_ref[...], preferred_element_type=f32) + cb_ref[...]  # (B, T)
    mx = jnp.max(logits, axis=-1, keepdims=True)
    idx = lax.broadcasted_iota(jnp.int32, logits.shape, 1)
    pred_ref[...] = jnp.min(
        jnp.where(logits >= mx, idx, jnp.int32(logits.shape[-1])),
        axis=-1, keepdims=True)                                            # (B, 1) int32


# ---------------- parameters ----------------
def init_params(key):
    std = 0.02
    keys = iter(jax.random.split(key, 16))

    def nrm(shape, dtype=jnp.float32):
        return (std * jax.random.normal(next(keys), shape)).astype(dtype)

    L, H, I, T = NUM_LAYERS, HIDDEN, INTERMEDIATE, NUM_TAGS
    return {
        # embedding tables + classifier (kept f32)
        'word_emb': nrm((VOCAB, H)),
        'pos_emb': nrm((MAX_POS, H)),
        'type_emb': nrm((TYPE_VOCAB, H)),
        'emb_ln_g': jnp.ones((1, H), jnp.float32),
        'emb_ln_b': jnp.zeros((1, H), jnp.float32),
        'cls_w': nrm((H, T)),
        'cls_b': jnp.zeros((1, T), jnp.float32),
        # per-layer weights stacked on a leading layer axis; matmul weights in bf16
        'q_w': nrm((L, H, H), jnp.bfloat16),
        'q_b': jnp.zeros((L, 1, H), jnp.float32),
        'k_w': nrm((L, H, H), jnp.bfloat16),
        'k_b': jnp.zeros((L, 1, H), jnp.float32),
        'v_w': nrm((L, H, H), jnp.bfloat16),
        'v_b': jnp.zeros((L, 1, H), jnp.float32),
        'out_w': nrm((L, H, H), jnp.bfloat16),
        'out_b': jnp.zeros((L, 1, H), jnp.float32),
        'ln1_g': jnp.ones((L, 1, H), jnp.float32),
        'ln1_b': jnp.zeros((L, 1, H), jnp.float32),
        'ffn1_w': nrm((L, H, I), jnp.bfloat16),
        'ffn1_b': jnp.zeros((L, 1, I), jnp.float32),
        'ffn2_w': nrm((L, I, H), jnp.bfloat16),
        'ffn2_b': jnp.zeros((L, 1, H), jnp.float32),
        'ln2_g': jnp.ones((L, 1, H), jnp.float32),
        'ln2_b': jnp.zeros((L, 1, H), jnp.float32),
    }


# ---------------- forward (decode=True path) ----------------
@jax.jit
def bert_forward(params, tokens, segments, masks):
    B, S = tokens.shape

    # layout-only reshapes / casts outside the kernel (free XLA metadata ops)
    tok_col = tokens.reshape(B * S, 1).astype(jnp.int32)
    seg_col = segments.reshape(B * S, 1).astype(jnp.int32)
    mask3 = masks.reshape(B, 1, S).astype(jnp.int32)
    # W_o pre-split per head in the wrapper: row h*HD+d of (H,H)  ->  (NH, HD, H)
    ow_heads = params['out_w'].reshape(NUM_LAYERS, NUM_HEADS, HEAD_DIM, HIDDEN)

    n_inputs = 26
    vmem_spec = pl.BlockSpec(memory_space=pltpu.MemorySpace.VMEM)  # whole array, VMEM-resident

    pred = pl.pallas_call(
        bert_kernel,
        out_shape=jax.ShapeDtypeStruct((B, 1), jnp.int32),
        in_specs=[vmem_spec] * n_inputs,
        out_specs=pl.BlockSpec(memory_space=pltpu.MemorySpace.VMEM),
    )(tok_col, seg_col, mask3,
      params['word_emb'], params['pos_emb'], params['type_emb'],
      params['emb_ln_g'], params['emb_ln_b'],
      params['cls_w'], params['cls_b'],
      params['q_w'], params['q_b'], params['k_w'], params['k_b'],
      params['v_w'], params['v_b'],
      ow_heads, params['out_b'], params['ln1_g'], params['ln1_b'],
      params['ffn1_w'], params['ffn1_b'], params['ffn2_w'], params['ffn2_b'],
      params['ln2_g'], params['ln2_b'])
    return pred[:, 0]                                              # (B,) int32 tag ids


if __name__ == "__main__":
    root = jax.random.PRNGKey(0)
    pkey, tkey = jax.random.split(root)
    params = init_params(pkey)

    B, S = 2, 8
    tokens = jax.random.randint(tkey, (B, S), 0, VOCAB, dtype=jnp.int32)
    segments = jnp.zeros((B, S), jnp.int32)
    masks = jnp.ones((B, S), jnp.int32)

    pred = bert_forward(params, tokens, segments, masks)
    pred = jax.block_until_ready(pred)
    _ = np.asarray(pred)   # mirrors out.cpu().numpy()
    print("KERNEL_OK")
</pallas_src>

<mosaic_0001>
module attributes {stable_mosaic.version = 11 : i64} {
  func.func @bert_kernel(%arg0: memref<16x1xi32, #tpu.memory_space<vmem>>, %arg1: memref<16x1xi32, #tpu.memory_space<vmem>>, %arg2: memref<2x1x8xi32, #tpu.memory_space<vmem>>, %arg3: memref<50x32xf32, #tpu.memory_space<vmem>>, %arg4: memref<16x32xf32, #tpu.memory_space<vmem>>, %arg5: memref<2x32xf32, #tpu.memory_space<vmem>>, %arg6: memref<1x32xf32, #tpu.memory_space<vmem>>, %arg7: memref<1x32xf32, #tpu.memory_space<vmem>>, %arg8: memref<32x5xf32, #tpu.memory_space<vmem>>, %arg9: memref<1x5xf32, #tpu.memory_space<vmem>>, %arg10: memref<2x32x32xbf16, #tpu.memory_space<vmem>>, %arg11: memref<2x1x32xf32, #tpu.memory_space<vmem>>, %arg12: memref<2x32x32xbf16, #tpu.memory_space<vmem>>, %arg13: memref<2x1x32xf32, #tpu.memory_space<vmem>>, %arg14: memref<2x32x32xbf16, #tpu.memory_space<vmem>>, %arg15: memref<2x1x32xf32, #tpu.memory_space<vmem>>, %arg16: memref<2x4x8x32xbf16, #tpu.memory_space<vmem>>, %arg17: memref<2x1x32xf32, #tpu.memory_space<vmem>>, %arg18: memref<2x1x32xf32, #tpu.memory_space<vmem>>, %arg19: memref<2x1x32xf32, #tpu.memory_space<vmem>>, %arg20: memref<2x32x64xbf16, #tpu.memory_space<vmem>>, %arg21: memref<2x1x64xf32, #tpu.memory_space<vmem>>, %arg22: memref<2x64x32xbf16, #tpu.memory_space<vmem>>, %arg23: memref<2x1x32xf32, #tpu.memory_space<vmem>>, %arg24: memref<2x1x32xf32, #tpu.memory_space<vmem>>, %arg25: memref<2x1x32xf32, #tpu.memory_space<vmem>>, %arg26: memref<2x1xi32, #tpu.memory_space<vmem>>) attributes {dimension_semantics = [], scalar_prefetch = 0 : i64, scratch_operands = 0 : i64, tpu.core_type = #tpu.core_type<tc>} {
    %0 = tpu.iota {dimensions = array<i32: 1>} : vector<16x50xi32>
    %c0 = arith.constant 0 : index
    %c0_0 = arith.constant 0 : index
    %1 = vector.load %arg0[%c0, %c0_0] : memref<16x1xi32, #tpu.memory_space<vmem>>, vector<16x1xi32>
    %2 = vector.broadcast %1 : vector<16x1xi32> to vector<16x50xi32>
    %3 = arith.cmpi eq, %0, %2 : vector<16x50xi32>
    %4 = arith.extui %3 : vector<16x50xi1> to vector<16x50xi32>
    %5 = arith.sitofp %4 : vector<16x50xi32> to vector<16x50xf32>
    %6 = tpu.iota {dimensions = array<i32: 1>} : vector<16x2xi32>
    %c0_1 = arith.constant 0 : index
    %c0_2 = arith.constant 0 : index
    %7 = vector.load %arg1[%c0_1, %c0_2] : memref<16x1xi32, #tpu.memory_space<vmem>>, vector<16x1xi32>
    %8 = vector.broadcast %7 : vector<16x1xi32> to vector<16x2xi32>
    %9 = arith.cmpi eq, %6, %8 : vector<16x2xi32>
    %10 = arith.extui %9 : vector<16x2xi1> to vector<16x2xi32>
    %11 = arith.sitofp %10 : vector<16x2xi32> to vector<16x2xf32>
    %c0_3 = arith.constant 0 : index
    %c0_4 = arith.constant 0 : index
    %12 = vector.load %arg3[%c0_3, %c0_4] : memref<50x32xf32, #tpu.memory_space<vmem>>, vector<50x32xf32>
    %cst = arith.constant dense<0.000000e+00> : vector<16x32xf32>
    %13 = tpu.matmul %5, %12, %cst {dimension_numbers = #tpu.dot_dimension_numbers<[1], [0], [0], [1], [0, 0, 1, 1], [], []>} : vector<16x50xf32>, vector<50x32xf32>, vector<16x32xf32> -> vector<16x32xf32>
    %c0_5 = arith.constant 0 : index
    %c0_6 = arith.constant 0 : index
    %14 = vector.load %arg5[%c0_5, %c0_6] : memref<2x32xf32, #tpu.memory_space<vmem>>, vector<2x32xf32>
    %cst_7 = arith.constant dense<0.000000e+00> : vector<16x32xf32>
    %15 = tpu.matmul %11, %14, %cst_7 {dimension_numbers = #tpu.dot_dimension_numbers<[1], [0], [0], [1], [0, 0, 1, 1], [], []>} : vector<16x2xf32>, vector<2x32xf32>, vector<16x32xf32> -> vector<16x32xf32>
    %c0_8 = arith.constant 0 : index
    %c0_9 = arith.constant 0 : index
    %16 = vector.load %arg4[%c0_8, %c0_9] : memref<16x32xf32, #tpu.memory_space<vmem>>, vector<8x32xf32>
    %17 = arith.addf %13, %15 : vector<16x32xf32>
    %18 = vector.shape_cast %17 : vector<16x32xf32> to vector<2x8x32xf32>
    %19 = vector.shape_cast %16 : vector<8x32xf32> to vector<1x8x32xf32>
    %20 = vector.broadcast %19 : vector<1x8x32xf32> to vector<2x8x32xf32>
    %21 = arith.addf %18, %20 : vector<2x8x32xf32>
    %c0_10 = arith.constant 0 : index
    %c0_11 = arith.constant 0 : index
    %22 = vector.load %arg6[%c0_10, %c0_11] : memref<1x32xf32, #tpu.memory_space<vmem>>, vector<1x32xf32>
    %c0_12 = arith.constant 0 : index
    %c0_13 = arith.constant 0 : index
    %23 = vector.load %arg7[%c0_12, %c0_13] : memref<1x32xf32, #tpu.memory_space<vmem>>, vector<1x32xf32>
    %cst_14 = arith.constant dense<0.000000e+00> : vector<2x8xf32>
    %24 = vector.multi_reduction <add>, %21, %cst_14 [2] : vector<2x8x32xf32> to vector<2x8xf32>
    %25 = vector.shape_cast %24 : vector<2x8xf32> to vector<2x8x1xf32>
    %cst_15 = arith.constant 3.200000e+01 : f32
    %26 = vector.broadcast %cst_15 : f32 to vector<2x8x1xf32>
    %27 = arith.divf %25, %26 : vector<2x8x1xf32>
    %28 = vector.broadcast %27 : vector<2x8x1xf32> to vector<2x8x32xf32>
    %29 = arith.subf %21, %28 : vector<2x8x32xf32>
    %30 = arith.mulf %29, %29 : vector<2x8x32xf32>
    %cst_16 = arith.constant dense<0.000000e+00> : vector<2x8xf32>
    %31 = vector.multi_reduction <add>, %30, %cst_16 [2] : vector<2x8x32xf32> to vector<2x8xf32>
    %32 = vector.shape_cast %31 : vector<2x8xf32> to vector<2x8x1xf32>
    %cst_17 = arith.constant 3.200000e+01 : f32
    %33 = vector.broadcast %cst_17 : f32 to vector<2x8x1xf32>
    %34 = arith.divf %32, %33 : vector<2x8x1xf32>
    %35 = vector.broadcast %27 : vector<2x8x1xf32> to vector<2x8x32xf32>
    %36 = arith.subf %21, %35 : vector<2x8x32xf32>
    %cst_18 = arith.constant 9.99999996E-13 : f32
    %37 = vector.broadcast %cst_18 : f32 to vector<2x8x1xf32>
    %38 = arith.addf %34, %37 : vector<2x8x1xf32>
    %39 = math.rsqrt %38 : vector<2x8x1xf32>
    %40 = vector.broadcast %39 : vector<2x8x1xf32> to vector<2x8x32xf32>
    %41 = arith.mulf %36, %40 : vector<2x8x32xf32>
    %42 = vector.shape_cast %22 : vector<1x32xf32> to vector<1x1x32xf32>
    %43 = vector.broadcast %42 : vector<1x1x32xf32> to vector<2x8x32xf32>
    %44 = arith.mulf %41, %43 : vector<2x8x32xf32>
    %45 = vector.shape_cast %23 : vector<1x32xf32> to vector<1x1x32xf32>
    %46 = vector.broadcast %45 : vector<1x1x32xf32> to vector<2x8x32xf32>
    %47 = arith.addf %44, %46 : vector<2x8x32xf32>
    %c0_19 = arith.constant 0 : index
    %c0_20 = arith.constant 0 : index
    %c0_21 = arith.constant 0 : index
    %48 = vector.load %arg2[%c0_19, %c0_20, %c0_21] : memref<2x1x8xi32, #tpu.memory_space<vmem>>, vector<2x1x8xi32>
    %49 = arith.sitofp %48 : vector<2x1x8xi32> to vector<2x1x8xf32>
    %cst_22 = arith.constant 1.000000e+00 : f32
    %50 = vector.broadcast %cst_22 : f32 to vector<2x1x8xf32>
    %51 = arith.subf %50, %49 : vector<2x1x8xf32>
    %cst_23 = arith.constant -1.000000e+09 : f32
    %52 = vector.broadcast %cst_23 : f32 to vector<2x1x8xf32>
    %53 = arith.mulf %51, %52 : vector<2x1x8xf32>
    %54 = vector.shape_cast %47 : vector<2x8x32xf32> to vector<16x32xf32>
    %55 = arith.truncf %54 : vector<16x32xf32> to vector<16x32xbf16>
    %c0_24 = arith.constant 0 : index
    %c0_25 = arith.constant 0 : index
    %c0_26 = arith.constant 0 : index
    %56 = vector.load %arg10[%c0_24, %c0_25, %c0_26] : memref<2x32x32xbf16, #tpu.memory_space<vmem>>, vector<1x32x32xbf16>
    %57 = vector.shape_cast %56 : vector<1x32x32xbf16> to vector<32x32xbf16>
    %cst_27 = arith.constant dense<0.000000e+00> : vector<16x32xf32>
    %58 = tpu.matmul %55, %57, %cst_27 {dimension_numbers = #tpu.dot_dimension_numbers<[1], [0], [0], [1], [0, 0, 1, 1], [], []>} : vector<16x32xbf16>, vector<32x32xbf16>, vector<16x32xf32> -> vector<16x32xf32>
    %c0_28 = arith.constant 0 : index
    %c0_29 = arith.constant 0 : index
    %c0_30 = arith.constant 0 : index
    %59 = vector.load %arg11[%c0_28, %c0_29, %c0_30] : memref<2x1x32xf32, #tpu.memory_space<vmem>>, vector<1x1x32xf32>
    %60 = vector.shape_cast %59 : vector<1x1x32xf32> to vector<1x32xf32>
    %61 = vector.broadcast %60 : vector<1x32xf32> to vector<16x32xf32>
    %62 = arith.addf %58, %61 : vector<16x32xf32>
    %63 = arith.truncf %62 : vector<16x32xf32> to vector<16x32xbf16>
    %64 = vector.shape_cast %63 : vector<16x32xbf16> to vector<2x8x32xbf16>
    %c0_31 = arith.constant 0 : index
    %c0_32 = arith.constant 0 : index
    %c0_33 = arith.constant 0 : index
    %65 = vector.load %arg12[%c0_31, %c0_32, %c0_33] : memref<2x32x32xbf16, #tpu.memory_space<vmem>>, vector<1x32x32xbf16>
    %66 = vector.shape_cast %65 : vector<1x32x32xbf16> to vector<32x32xbf16>
    %cst_34 = arith.constant dense<0.000000e+00> : vector<16x32xf32>
    %67 = tpu.matmul %55, %66, %cst_34 {dimension_numbers = #tpu.dot_dimension_numbers<[1], [0], [0], [1], [0, 0, 1, 1], [], []>} : vector<16x32xbf16>, vector<32x32xbf16>, vector<16x32xf32> -> vector<16x32xf32>
    %c0_35 = arith.constant 0 : index
    %c0_36 = arith.constant 0 : index
    %c0_37 = arith.constant 0 : index
    %68 = vector.load %arg13[%c0_35, %c0_36, %c0_37] : memref<2x1x32xf32, #tpu.memory_space<vmem>>, vector<1x1x32xf32>
    %69 = vector.shape_cast %68 : vector<1x1x32xf32> to vector<1x32xf32>
    %70 = vector.broadcast %69 : vector<1x32xf32> to vector<16x32xf32>
    %71 = arith.addf %67, %70 : vector<16x32xf32>
    %72 = arith.truncf %71 : vector<16x32xf32> to vector<16x32xbf16>
    %73 = vector.shape_cast %72 : vector<16x32xbf16> to vector<2x8x32xbf16>
    %c0_38 = arith.constant 0 : index
    %c0_39 = arith.constant 0 : index
    %c0_40 = arith.constant 0 : index
    %74 = vector.load %arg14[%c0_38, %c0_39, %c0_40] : memref<2x32x32xbf16, #tpu.memory_space<vmem>>, vector<1x32x32xbf16>
    %75 = vector.shape_cast %74 : vector<1x32x32xbf16> to vector<32x32xbf16>
    %cst_41 = arith.constant dense<0.000000e+00> : vector<16x32xf32>
    %76 = tpu.matmul %55, %75, %cst_41 {dimension_numbers = #tpu.dot_dimension_numbers<[1], [0], [0], [1], [0, 0, 1, 1], [], []>} : vector<16x32xbf16>, vector<32x32xbf16>, vector<16x32xf32> -> vector<16x32xf32>
    %c0_42 = arith.constant 0 : index
    %c0_43 = arith.constant 0 : index
    %c0_44 = arith.constant 0 : index
    %77 = vector.load %arg15[%c0_42, %c0_43, %c0_44] : memref<2x1x32xf32, #tpu.memory_space<vmem>>, vector<1x1x32xf32>
    %78 = vector.shape_cast %77 : vector<1x1x32xf32> to vector<1x32xf32>
    %79 = vector.broadcast %78 : vector<1x32xf32> to vector<16x32xf32>
    %80 = arith.addf %76, %79 : vector<16x32xf32>
    %81 = arith.truncf %80 : vector<16x32xf32> to vector<16x32xbf16>
    %82 = vector.shape_cast %81 : vector<16x32xbf16> to vector<2x8x32xbf16>
    %83 = vector.extract_strided_slice %64 {offsets = [0, 0, 0], sizes = [2, 8, 8], strides = [1, 1, 1]} : vector<2x8x32xbf16> to vector<2x8x8xbf16>
    %84 = vector.extract_strided_slice %73 {offsets = [0, 0, 0], sizes = [2, 8, 8], strides = [1, 1, 1]} : vector<2x8x32xbf16> to vector<2x8x8xbf16>
    "tpu.trace_start"() <{level = 10 : i32, message = "bqd,bkd->bqk"}> : () -> ()
    %cst_45 = arith.constant dense<0.000000e+00> : vector<2x8x8xf32>
    %85 = tpu.matmul %83, %84, %cst_45 {dimension_numbers = #tpu.dot_dimension_numbers<[2], [2], [1], [1], [0, 0, 0, 1, 1, 1], [0], [0]>} : vector<2x8x8xbf16>, vector<2x8x8xbf16>, vector<2x8x8xf32> -> vector<2x8x8xf32>
    "tpu.trace_stop"() : () -> ()
    %86 = vector.extract_strided_slice %64 {offsets = [0, 0, 8], sizes = [2, 8, 8], strides = [1, 1, 1]} : vector<2x8x32xbf16> to vector<2x8x8xbf16>
    %87 = vector.extract_strided_slice %73 {offsets = [0, 0, 8], sizes = [2, 8, 8], strides = [1, 1, 1]} : vector<2x8x32xbf16> to vector<2x8x8xbf16>
    "tpu.trace_start"() <{level = 10 : i32, message = "bqd,bkd->bqk"}> : () -> ()
    %cst_46 = arith.constant dense<0.000000e+00> : vector<2x8x8xf32>
    %88 = tpu.matmul %86, %87, %cst_46 {dimension_numbers = #tpu.dot_dimension_numbers<[2], [2], [1], [1], [0, 0, 0, 1, 1, 1], [0], [0]>} : vector<2x8x8xbf16>, vector<2x8x8xbf16>, vector<2x8x8xf32> -> vector<2x8x8xf32>
    "tpu.trace_stop"() : () -> ()
    %89 = vector.extract_strided_slice %64 {offsets = [0, 0, 16], sizes = [2, 8, 8], strides = [1, 1, 1]} : vector<2x8x32xbf16> to vector<2x8x8xbf16>
    %90 = vector.extract_strided_slice %73 {offsets = [0, 0, 16], sizes = [2, 8, 8], strides = [1, 1, 1]} : vector<2x8x32xbf16> to vector<2x8x8xbf16>
    "tpu.trace_start"() <{level = 10 : i32, message = "bqd,bkd->bqk"}> : () -> ()
    %cst_47 = arith.constant dense<0.000000e+00> : vector<2x8x8xf32>
    %91 = tpu.matmul %89, %90, %cst_47 {dimension_numbers = #tpu.dot_dimension_numbers<[2], [2], [1], [1], [0, 0, 0, 1, 1, 1], [0], [0]>} : vector<2x8x8xbf16>, vector<2x8x8xbf16>, vector<2x8x8xf32> -> vector<2x8x8xf32>
    "tpu.trace_stop"() : () -> ()
    %92 = vector.extract_strided_slice %64 {offsets = [0, 0, 24], sizes = [2, 8, 8], strides = [1, 1, 1]} : vector<2x8x32xbf16> to vector<2x8x8xbf16>
    %93 = vector.extract_strided_slice %73 {offsets = [0, 0, 24], sizes = [2, 8, 8], strides = [1, 1, 1]} : vector<2x8x32xbf16> to vector<2x8x8xbf16>
    "tpu.trace_start"() <{level = 10 : i32, message = "bqd,bkd->bqk"}> : () -> ()
    %cst_48 = arith.constant dense<0.000000e+00> : vector<2x8x8xf32>
    %94 = tpu.matmul %92, %93, %cst_48 {dimension_numbers = #tpu.dot_dimension_numbers<[2], [2], [1], [1], [0, 0, 0, 1, 1, 1], [0], [0]>} : vector<2x8x8xbf16>, vector<2x8x8xbf16>, vector<2x8x8xf32> -> vector<2x8x8xf32>
    "tpu.trace_stop"() : () -> ()
    %95 = vector.shape_cast %85 : vector<2x8x8xf32> to vector<1x2x8x8xf32>
    %96 = vector.shape_cast %88 : vector<2x8x8xf32> to vector<1x2x8x8xf32>
    %97 = vector.shape_cast %91 : vector<2x8x8xf32> to vector<1x2x8x8xf32>
    %98 = vector.shape_cast %94 : vector<2x8x8xf32> to vector<1x2x8x8xf32>
    %99 = tpu.concatenate %95, %96, %97, %98 in 0 : vector<1x2x8x8xf32>, vector<1x2x8x8xf32>, vector<1x2x8x8xf32>, vector<1x2x8x8xf32> -> vector<4x2x8x8xf32>
    %cst_49 = arith.constant 0.353553385 : f32
    %100 = vector.broadcast %cst_49 : f32 to vector<4x2x8x8xf32>
    %101 = arith.mulf %99, %100 : vector<4x2x8x8xf32>
    %102 = vector.shape_cast %53 : vector<2x1x8xf32> to vector<1x2x1x8xf32>
    %103 = vector.broadcast %102 : vector<1x2x1x8xf32> to vector<4x2x8x8xf32>
    %104 = arith.addf %101, %103 : vector<4x2x8x8xf32>
    %cst_50 = arith.constant dense<0xFF800000> : vector<4x2x8xf32>
    %105 = vector.multi_reduction <maximumf>, %104, %cst_50 [3] : vector<4x2x8x8xf32> to vector<4x2x8xf32>
    %106 = vector.shape_cast %105 : vector<4x2x8xf32> to vector<4x2x8x1xf32>
    %107 = vector.broadcast %106 : vector<4x2x8x1xf32> to vector<4x2x8x8xf32>
    %108 = arith.subf %104, %107 : vector<4x2x8x8xf32>
    %109 = math.exp %108 : vector<4x2x8x8xf32>
    %cst_51 = arith.constant dense<0.000000e+00> : vector<4x2x8xf32>
    %110 = vector.multi_reduction <add>, %109, %cst_51 [3] : vector<4x2x8x8xf32> to vector<4x2x8xf32>
    %111 = vector.shape_cast %110 : vector<4x2x8xf32> to vector<4x2x8x1xf32>
    %112 = tpu.reciprocal %111 {approx = true} : vector<4x2x8x1xf32> -> vector<4x2x8x1xf32>
    %113 = vector.broadcast %112 : vector<4x2x8x1xf32> to vector<4x2x8x8xf32>
    %114 = arith.mulf %109, %113 : vector<4x2x8x8xf32>
    %115 = arith.truncf %114 : vector<4x2x8x8xf32> to vector<4x2x8x8xbf16>
    %116 = vector.extract_strided_slice %115 {offsets = [0, 0, 0, 0], sizes = [1, 2, 8, 8], strides = [1, 1, 1, 1]} : vector<4x2x8x8xbf16> to vector<1x2x8x8xbf16>
    %117 = vector.shape_cast %116 : vector<1x2x8x8xbf16> to vector<2x8x8xbf16>
    %118 = vector.extract_strided_slice %82 {offsets = [0, 0, 0], sizes = [2, 8, 8], strides = [1, 1, 1]} : vector<2x8x32xbf16> to vector<2x8x8xbf16>
    "tpu.trace_start"() <{level = 10 : i32, message = "bqk,bkd->bqd"}> : () -> ()
    %cst_52 = arith.constant dense<0.000000e+00> : vector<2x8x8xf32>
    %119 = tpu.matmul %117, %118, %cst_52 {dimension_numbers = #tpu.dot_dimension_numbers<[2], [1], [1], [2], [0, 0, 0, 1, 1, 2], [0], [0]>} : vector<2x8x8xbf16>, vector<2x8x8xbf16>, vector<2x8x8xf32> -> vector<2x8x8xf32>
    "tpu.trace_stop"() : () -> ()
    %120 = vector.extract_strided_slice %115 {offsets = [1, 0, 0, 0], sizes = [1, 2, 8, 8], strides = [1, 1, 1, 1]} : vector<4x2x8x8xbf16> to vector<1x2x8x8xbf16>
    %121 = vector.shape_cast %120 : vector<1x2x8x8xbf16> to vector<2x8x8xbf16>
    %122 = vector.extract_strided_slice %82 {offsets = [0, 0, 8], sizes = [2, 8, 8], strides = [1, 1, 1]} : vector<2x8x32xbf16> to vector<2x8x8xbf16>
    "tpu.trace_start"() <{level = 10 : i32, message = "bqk,bkd->bqd"}> : () -> ()
    %cst_53 = arith.constant dense<0.000000e+00> : vector<2x8x8xf32>
    %123 = tpu.matmul %121, %122, %cst_53 {dimension_numbers = #tpu.dot_dimension_numbers<[2], [1], [1], [2], [0, 0, 0, 1, 1, 2], [0], [0]>} : vector<2x8x8xbf16>, vector<2x8x8xbf16>, vector<2x8x8xf32> -> vector<2x8x8xf32>
    "tpu.trace_stop"() : () -> ()
    %124 = vector.extract_strided_slice %115 {offsets = [2, 0, 0, 0], sizes = [1, 2, 8, 8], strides = [1, 1, 1, 1]} : vector<4x2x8x8xbf16> to vector<1x2x8x8xbf16>
    %125 = vector.shape_cast %124 : vector<1x2x8x8xbf16> to vector<2x8x8xbf16>
    %126 = vector.extract_strided_slice %82 {offsets = [0, 0, 16], sizes = [2, 8, 8], strides = [1, 1, 1]} : vector<2x8x32xbf16> to vector<2x8x8xbf16>
    "tpu.trace_start"() <{level = 10 : i32, message = "bqk,bkd->bqd"}> : () -> ()
    %cst_54 = arith.constant dense<0.000000e+00> : vector<2x8x8xf32>
    %127 = tpu.matmul %125, %126, %cst_54 {dimension_numbers = #tpu.dot_dimension_numbers<[2], [1], [1], [2], [0, 0, 0, 1, 1, 2], [0], [0]>} : vector<2x8x8xbf16>, vector<2x8x8xbf16>, vector<2x8x8xf32> -> vector<2x8x8xf32>
    "tpu.trace_stop"() : () -> ()
    %128 = vector.extract_strided_slice %115 {offsets = [3, 0, 0, 0], sizes = [1, 2, 8, 8], strides = [1, 1, 1, 1]} : vector<4x2x8x8xbf16> to vector<1x2x8x8xbf16>
    %129 = vector.shape_cast %128 : vector<1x2x8x8xbf16> to vector<2x8x8xbf16>
    %130 = vector.extract_strided_slice %82 {offsets = [0, 0, 24], sizes = [2, 8, 8], strides = [1, 1, 1]} : vector<2x8x32xbf16> to vector<2x8x8xbf16>
    "tpu.trace_start"() <{level = 10 : i32, message = "bqk,bkd->bqd"}> : () -> ()
    %cst_55 = arith.constant dense<0.000000e+00> : vector<2x8x8xf32>
    %131 = tpu.matmul %129, %130, %cst_55 {dimension_numbers = #tpu.dot_dimension_numbers<[2], [1], [1], [2], [0, 0, 0, 1, 1, 2], [0], [0]>} : vector<2x8x8xbf16>, vector<2x8x8xbf16>, vector<2x8x8xf32> -> vector<2x8x8xf32>
    "tpu.trace_stop"() : () -> ()
    %132 = vector.shape_cast %119 : vector<2x8x8xf32> to vector<1x2x8x8xf32>
    %133 = vector.shape_cast %123 : vector<2x8x8xf32> to vector<1x2x8x8xf32>
    %134 = vector.shape_cast %127 : vector<2x8x8xf32> to vector<1x2x8x8xf32>
    %135 = vector.shape_cast %131 : vector<2x8x8xf32> to vector<1x2x8x8xf32>
    %136 = tpu.concatenate %132, %133, %134, %135 in 0 : vector<1x2x8x8xf32>, vector<1x2x8x8xf32>, vector<1x2x8x8xf32>, vector<1x2x8x8xf32> -> vector<4x2x8x8xf32>
    %137 = vector.shape_cast %136 : vector<4x2x8x8xf32> to vector<4x16x8xf32>
    %138 = arith.truncf %137 : vector<4x16x8xf32> to vector<4x16x8xbf16>
    %c0_56 = arith.constant 0 : index
    %c0_57 = arith.constant 0 : index
    %c0_58 = arith.constant 0 : index
    %c0_59 = arith.constant 0 : index
    %139 = vector.load %arg16[%c0_56, %c0_57, %c0_58, %c0_59] : memref<2x4x8x32xbf16, #tpu.memory_space<vmem>>, vector<1x4x8x32xbf16>
    %140 = vector.shape_cast %139 : vector<1x4x8x32xbf16> to vector<4x8x32xbf16>
    "tpu.trace_start"() <{level = 10 : i32, message = "hmd,hdo->hmo"}> : () -> ()
    %cst_60 = arith.constant dense<0.000000e+00> : vector<4x16x32xf32>
    %141 = tpu.matmul %138, %140, %cst_60 {dimension_numbers = #tpu.dot_dimension_numbers<[2], [1], [1], [2], [0, 0, 0, 1, 1, 2], [0], [0]>} : vector<4x16x8xbf16>, vector<4x8x32xbf16>, vector<4x16x32xf32> -> vector<4x16x32xf32>
    "tpu.trace_stop"() : () -> ()
    %142 = vector.extract_strided_slice %141 {offsets = [0, 0, 0], sizes = [1, 16, 32], strides = [1, 1, 1]} : vector<4x16x32xf32> to vector<1x16x32xf32>
    %143 = vector.shape_cast %142 : vector<1x16x32xf32> to vector<16x32xf32>
    %144 = vector.extract_strided_slice %141 {offsets = [1, 0, 0], sizes = [1, 16, 32], strides = [1, 1, 1]} : vector<4x16x32xf32> to vector<1x16x32xf32>
    %145 = vector.shape_cast %144 : vector<1x16x32xf32> to vector<16x32xf32>
    %146 = arith.addf %143, %145 : vector<16x32xf32>
    %147 = vector.extract_strided_slice %141 {offsets = [2, 0, 0], sizes = [1, 16, 32], strides = [1, 1, 1]} : vector<4x16x32xf32> to vector<1x16x32xf32>
    %148 = vector.shape_cast %147 : vector<1x16x32xf32> to vector<16x32xf32>
    %149 = arith.addf %146, %148 : vector<16x32xf32>
    %150 = vector.extract_strided_slice %141 {offsets = [3, 0, 0], sizes = [1, 16, 32], strides = [1, 1, 1]} : vector<4x16x32xf32> to vector<1x16x32xf32>
    %151 = vector.shape_cast %150 : vector<1x16x32xf32> to vector<16x32xf32>
    %152 = arith.addf %149, %151 : vector<16x32xf32>
    %c0_61 = arith.constant 0 : index
    %c0_62 = arith.constant 0 : index
    %c0_63 = arith.constant 0 : index
    %153 = vector.load %arg17[%c0_61, %c0_62, %c0_63] : memref<2x1x32xf32, #tpu.memory_space<vmem>>, vector<1x1x32xf32>
    %154 = vector.shape_cast %153 : vector<1x1x32xf32> to vector<1x32xf32>
    %155 = vector.broadcast %154 : vector<1x32xf32> to vector<16x32xf32>
    %156 = arith.addf %152, %155 : vector<16x32xf32>
    %157 = vector.shape_cast %156 : vector<16x32xf32> to vector<2x8x32xf32>
    %158 = arith.addf %47, %157 : vector<2x8x32xf32>
    %c0_64 = arith.constant 0 : index
    %c0_65 = arith.constant 0 : index
    %c0_66 = arith.constant 0 : index
    %159 = vector.load %arg18[%c0_64, %c0_65, %c0_66] : memref<2x1x32xf32, #tpu.memory_space<vmem>>, vector<1x1x32xf32>
    %160 = vector.shape_cast %159 : vector<1x1x32xf32> to vector<1x32xf32>
    %c0_67 = arith.constant 0 : index
    %c0_68 = arith.constant 0 : index
    %c0_69 = arith.constant 0 : index
    %161 = vector.load %arg19[%c0_67, %c0_68, %c0_69] : memref<2x1x32xf32, #tpu.memory_space<vmem>>, vector<1x1x32xf32>
    %162 = vector.shape_cast %161 : vector<1x1x32xf32> to vector<1x32xf32>
    %cst_70 = arith.constant dense<0.000000e+00> : vector<2x8xf32>
    %163 = vector.multi_reduction <add>, %158, %cst_70 [2] : vector<2x8x32xf32> to vector<2x8xf32>
    %164 = vector.shape_cast %163 : vector<2x8xf32> to vector<2x8x1xf32>
    %cst_71 = arith.constant 3.200000e+01 : f32
    %165 = vector.broadcast %cst_71 : f32 to vector<2x8x1xf32>
    %166 = arith.divf %164, %165 : vector<2x8x1xf32>
    %167 = vector.broadcast %166 : vector<2x8x1xf32> to vector<2x8x32xf32>
    %168 = arith.subf %158, %167 : vector<2x8x32xf32>
    %169 = arith.mulf %168, %168 : vector<2x8x32xf32>
    %cst_72 = arith.constant dense<0.000000e+00> : vector<2x8xf32>
    %170 = vector.multi_reduction <add>, %169, %cst_72 [2] : vector<2x8x32xf32> to vector<2x8xf32>
    %171 = vector.shape_cast %170 : vector<2x8xf32> to vector<2x8x1xf32>
    %cst_73 = arith.constant 3.200000e+01 : f32
    %172 = vector.broadcast %cst_73 : f32 to vector<2x8x1xf32>
    %173 = arith.divf %171, %172 : vector<2x8x1xf32>
    %174 = vector.broadcast %166 : vector<2x8x1xf32> to vector<2x8x32xf32>
    %175 = arith.subf %158, %174 : vector<2x8x32xf32>
    %cst_74 = arith.constant 9.99999996E-13 : f32
    %176 = vector.broadcast %cst_74 : f32 to vector<2x8x1xf32>
    %177 = arith.addf %173, %176 : vector<2x8x1xf32>
    %178 = math.rsqrt %177 : vector<2x8x1xf32>
    %179 = vector.broadcast %178 : vector<2x8x1xf32> to vector<2x8x32xf32>
    %180 = arith.mulf %175, %179 : vector<2x8x32xf32>
    %181 = vector.shape_cast %160 : vector<1x32xf32> to vector<1x1x32xf32>
    %182 = vector.broadcast %181 : vector<1x1x32xf32> to vector<2x8x32xf32>
    %183 = arith.mulf %180, %182 : vector<2x8x32xf32>
    %184 = vector.shape_cast %162 : vector<1x32xf32> to vector<1x1x32xf32>
    %185 = vector.broadcast %184 : vector<1x1x32xf32> to vector<2x8x32xf32>
    %186 = arith.addf %183, %185 : vector<2x8x32xf32>
    %187 = vector.shape_cast %186 : vector<2x8x32xf32> to vector<16x32xf32>
    %188 = arith.truncf %187 : vector<16x32xf32> to vector<16x32xbf16>
    %c0_75 = arith.constant 0 : index
    %c0_76 = arith.constant 0 : index
    %c0_77 = arith.constant 0 : index
    %189 = vector.load %arg20[%c0_75, %c0_76, %c0_77] : memref<2x32x64xbf16, #tpu.memory_space<vmem>>, vector<1x32x64xbf16>
    %190 = vector.shape_cast %189 : vector<1x32x64xbf16> to vector<32x64xbf16>
    %cst_78 = arith.constant dense<0.000000e+00> : vector<16x64xf32>
    %191 = tpu.matmul %188, %190, %cst_78 {dimension_numbers = #tpu.dot_dimension_numbers<[1], [0], [0], [1], [0, 0, 1, 1], [], []>} : vector<16x32xbf16>, vector<32x64xbf16>, vector<16x64xf32> -> vector<16x64xf32>
    %c0_79 = arith.constant 0 : index
    %c0_80 = arith.constant 0 : index
    %c0_81 = arith.constant 0 : index
    %192 = vector.load %arg21[%c0_79, %c0_80, %c0_81] : memref<2x1x64xf32, #tpu.memory_space<vmem>>, vector<1x1x64xf32>
    %193 = vector.shape_cast %192 : vector<1x1x64xf32> to vector<1x64xf32>
    %194 = vector.broadcast %193 : vector<1x64xf32> to vector<16x64xf32>
    %195 = arith.addf %191, %194 : vector<16x64xf32>
    %cst_82 = arith.constant 5.000000e-01 : f32
    %196 = vector.broadcast %cst_82 : f32 to vector<16x64xf32>
    %197 = arith.mulf %196, %195 : vector<16x64xf32>
    %cst_83 = arith.constant 4.471500e-02 : f32
    %198 = vector.broadcast %cst_83 : f32 to vector<16x64xf32>
    %199 = arith.mulf %198, %195 : vector<16x64xf32>
    %200 = arith.mulf %199, %195 : vector<16x64xf32>
    %201 = arith.mulf %200, %195 : vector<16x64xf32>
    %202 = arith.addf %195, %201 : vector<16x64xf32>
    %cst_84 = arith.constant 0.797884583 : f32
    %203 = vector.broadcast %cst_84 : f32 to vector<16x64xf32>
    %204 = arith.mulf %203, %202 : vector<16x64xf32>
    %205 = math.tanh %204 : vector<16x64xf32>
    %cst_85 = arith.constant 1.000000e+00 : f32
    %206 = vector.broadcast %cst_85 : f32 to vector<16x64xf32>
    %207 = arith.addf %206, %205 : vector<16x64xf32>
    %208 = arith.mulf %197, %207 : vector<16x64xf32>
    %209 = arith.truncf %208 : vector<16x64xf32> to vector<16x64xbf16>
    %c0_86 = arith.constant 0 : index
    %c0_87 = arith.constant 0 : index
    %c0_88 = arith.constant 0 : index
    %210 = vector.load %arg22[%c0_86, %c0_87, %c0_88] : memref<2x64x32xbf16, #tpu.memory_space<vmem>>, vector<1x64x32xbf16>
    %211 = vector.shape_cast %210 : vector<1x64x32xbf16> to vector<64x32xbf16>
    %cst_89 = arith.constant dense<0.000000e+00> : vector<16x32xf32>
    %212 = tpu.matmul %209, %211, %cst_89 {dimension_numbers = #tpu.dot_dimension_numbers<[1], [0], [0], [1], [0, 0, 1, 1], [], []>} : vector<16x64xbf16>, vector<64x32xbf16>, vector<16x32xf32> -> vector<16x32xf32>
    %c0_90 = arith.constant 0 : index
    %c0_91 = arith.constant 0 : index
    %c0_92 = arith.constant 0 : index
    %213 = vector.load %arg23[%c0_90, %c0_91, %c0_92] : memref<2x1x32xf32, #tpu.memory_space<vmem>>, vector<1x1x32xf32>
    %214 = vector.shape_cast %213 : vector<1x1x32xf32> to vector<1x32xf32>
    %215 = vector.broadcast %214 : vector<1x32xf32> to vector<16x32xf32>
    %216 = arith.addf %212, %215 : vector<16x32xf32>
    %217 = vector.shape_cast %216 : vector<16x32xf32> to vector<2x8x32xf32>
    %218 = arith.addf %186, %217 : vector<2x8x32xf32>
    %c0_93 = arith.constant 0 : index
    %c0_94 = arith.constant 0 : index
    %c0_95 = arith.constant 0 : index
    %219 = vector.load %arg24[%c0_93, %c0_94, %c0_95] : memref<2x1x32xf32, #tpu.memory_space<vmem>>, vector<1x1x32xf32>
    %220 = vector.shape_cast %219 : vector<1x1x32xf32> to vector<1x32xf32>
    %c0_96 = arith.constant 0 : index
    %c0_97 = arith.constant 0 : index
    %c0_98 = arith.constant 0 : index
    %221 = vector.load %arg25[%c0_96, %c0_97, %c0_98] : memref<2x1x32xf32, #tpu.memory_space<vmem>>, vector<1x1x32xf32>
    %222 = vector.shape_cast %221 : vector<1x1x32xf32> to vector<1x32xf32>
    %cst_99 = arith.constant dense<0.000000e+00> : vector<2x8xf32>
    %223 = vector.multi_reduction <add>, %218, %cst_99 [2] : vector<2x8x32xf32> to vector<2x8xf32>
    %224 = vector.shape_cast %223 : vector<2x8xf32> to vector<2x8x1xf32>
    %cst_100 = arith.constant 3.200000e+01 : f32
    %225 = vector.broadcast %cst_100 : f32 to vector<2x8x1xf32>
    %226 = arith.divf %224, %225 : vector<2x8x1xf32>
    %227 = vector.broadcast %226 : vector<2x8x1xf32> to vector<2x8x32xf32>
    %228 = arith.subf %218, %227 : vector<2x8x32xf32>
    %229 = arith.mulf %228, %228 : vector<2x8x32xf32>
    %cst_101 = arith.constant dense<0.000000e+00> : vector<2x8xf32>
    %230 = vector.multi_reduction <add>, %229, %cst_101 [2] : vector<2x8x32xf32> to vector<2x8xf32>
    %231 = vector.shape_cast %230 : vector<2x8xf32> to vector<2x8x1xf32>
    %cst_102 = arith.constant 3.200000e+01 : f32
    %232 = vector.broadcast %cst_102 : f32 to vector<2x8x1xf32>
    %233 = arith.divf %231, %232 : vector<2x8x1xf32>
    %234 = vector.broadcast %226 : vector<2x8x1xf32> to vector<2x8x32xf32>
    %235 = arith.subf %218, %234 : vector<2x8x32xf32>
    %cst_103 = arith.constant 9.99999996E-13 : f32
    %236 = vector.broadcast %cst_103 : f32 to vector<2x8x1xf32>
    %237 = arith.addf %233, %236 : vector<2x8x1xf32>
    %238 = math.rsqrt %237 : vector<2x8x1xf32>
    %239 = vector.broadcast %238 : vector<2x8x1xf32> to vector<2x8x32xf32>
    %240 = arith.mulf %235, %239 : vector<2x8x32xf32>
    %241 = vector.shape_cast %220 : vector<1x32xf32> to vector<1x1x32xf32>
    %242 = vector.broadcast %241 : vector<1x1x32xf32> to vector<2x8x32xf32>
    %243 = arith.mulf %240, %242 : vector<2x8x32xf32>
    %244 = vector.shape_cast %222 : vector<1x32xf32> to vector<1x1x32xf32>
    %245 = vector.broadcast %244 : vector<1x1x32xf32> to vector<2x8x32xf32>
    %246 = arith.addf %243, %245 : vector<2x8x32xf32>
    %247 = vector.shape_cast %246 : vector<2x8x32xf32> to vector<16x32xf32>
    %248 = arith.truncf %247 : vector<16x32xf32> to vector<16x32xbf16>
    %c1 = arith.constant 1 : index
    %c0_104 = arith.constant 0 : index
    %c0_105 = arith.constant 0 : index
    %249 = vector.load %arg12[%c1, %c0_104, %c0_105] : memref<2x32x32xbf16, #tpu.memory_space<vmem>>, vector<1x32x32xbf16>
    %250 = vector.shape_cast %249 : vector<1x32x32xbf16> to vector<32x32xbf16>
    %cst_106 = arith.constant dense<0.000000e+00> : vector<16x32xf32>
    %251 = tpu.matmul %248, %250, %cst_106 {dimension_numbers = #tpu.dot_dimension_numbers<[1], [0], [0], [1], [0, 0, 1, 1], [], []>} : vector<16x32xbf16>, vector<32x32xbf16>, vector<16x32xf32> -> vector<16x32xf32>
    %c1_107 = arith.constant 1 : index
    %c0_108 = arith.constant 0 : index
    %c0_109 = arith.constant 0 : index
    %252 = vector.load %arg13[%c1_107, %c0_108, %c0_109] : memref<2x1x32xf32, #tpu.memory_space<vmem>>, vector<1x1x32xf32>
    %253 = vector.shape_cast %252 : vector<1x1x32xf32> to vector<1x32xf32>
    %254 = vector.broadcast %253 : vector<1x32xf32> to vector<16x32xf32>
    %255 = arith.addf %251, %254 : vector<16x32xf32>
    %256 = arith.truncf %255 : vector<16x32xf32> to vector<16x32xbf16>
    %257 = vector.shape_cast %256 : vector<16x32xbf16> to vector<2x8x32xbf16>
    %c1_110 = arith.constant 1 : index
    %c0_111 = arith.constant 0 : index
    %c0_112 = arith.constant 0 : index
    %258 = vector.load %arg14[%c1_110, %c0_111, %c0_112] : memref<2x32x32xbf16, #tpu.memory_space<vmem>>, vector<1x32x32xbf16>
    %259 = vector.shape_cast %258 : vector<1x32x32xbf16> to vector<32x32xbf16>
    %cst_113 = arith.constant dense<0.000000e+00> : vector<16x32xf32>
    %260 = tpu.matmul %248, %259, %cst_113 {dimension_numbers = #tpu.dot_dimension_numbers<[1], [0], [0], [1], [0, 0, 1, 1], [], []>} : vector<16x32xbf16>, vector<32x32xbf16>, vector<16x32xf32> -> vector<16x32xf32>
    %c1_114 = arith.constant 1 : index
    %c0_115 = arith.constant 0 : index
    %c0_116 = arith.constant 0 : index
    %261 = vector.load %arg15[%c1_114, %c0_115, %c0_116] : memref<2x1x32xf32, #tpu.memory_space<vmem>>, vector<1x1x32xf32>
    %262 = vector.shape_cast %261 : vector<1x1x32xf32> to vector<1x32xf32>
    %263 = vector.broadcast %262 : vector<1x32xf32> to vector<16x32xf32>
    %264 = arith.addf %260, %263 : vector<16x32xf32>
    %265 = arith.truncf %264 : vector<16x32xf32> to vector<16x32xbf16>
    %266 = vector.shape_cast %265 : vector<16x32xbf16> to vector<2x8x32xbf16>
    %267 = vector.extract_strided_slice %246 {offsets = [0, 0, 0], sizes = [2, 1, 32], strides = [1, 1, 1]} : vector<2x8x32xf32> to vector<2x1x32xf32>
    %268 = vector.shape_cast %267 : vector<2x1x32xf32> to vector<2x32xf32>
    %269 = arith.truncf %268 : vector<2x32xf32> to vector<2x32xbf16>
    %c1_117 = arith.constant 1 : index
    %c0_118 = arith.constant 0 : index
    %c0_119 = arith.constant 0 : index
    %270 = vector.load %arg10[%c1_117, %c0_118, %c0_119] : memref<2x32x32xbf16, #tpu.memory_space<vmem>>, vector<1x32x32xbf16>
    %271 = vector.shape_cast %270 : vector<1x32x32xbf16> to vector<32x32xbf16>
    %cst_120 = arith.constant dense<0.000000e+00> : vector<2x32xf32>
    %272 = tpu.matmul %269, %271, %cst_120 {dimension_numbers = #tpu.dot_dimension_numbers<[1], [0], [0], [1], [0, 0, 1, 1], [], []>} : vector<2x32xbf16>, vector<32x32xbf16>, vector<2x32xf32> -> vector<2x32xf32>
    %c1_121 = arith.constant 1 : index
    %c0_122 = arith.constant 0 : index
    %c0_123 = arith.constant 0 : index
    %273 = vector.load %arg11[%c1_121, %c0_122, %c0_123] : memref<2x1x32xf32, #tpu.memory_space<vmem>>, vector<1x1x32xf32>
    %274 = vector.shape_cast %273 : vector<1x1x32xf32> to vector<1x32xf32>
    %275 = vector.broadcast %274 : vector<1x32xf32> to vector<2x32xf32>
    %276 = arith.addf %272, %275 : vector<2x32xf32>
    %277 = arith.truncf %276 : vector<2x32xf32> to vector<2x32xbf16>
    %278 = vector.shape_cast %277 : vector<2x32xbf16> to vector<2x1x32xbf16>
    %279 = vector.extract_strided_slice %278 {offsets = [0, 0, 0], sizes = [2, 1, 8], strides = [1, 1, 1]} : vector<2x1x32xbf16> to vector<2x1x8xbf16>
    %280 = vector.extract_strided_slice %257 {offsets = [0, 0, 0], sizes = [2, 8, 8], strides = [1, 1, 1]} : vector<2x8x32xbf16> to vector<2x8x8xbf16>
    "tpu.trace_start"() <{level = 10 : i32, message = "bqd,bkd->bqk"}> : () -> ()
    %cst_124 = arith.constant dense<0.000000e+00> : vector<2x1x8xf32>
    %281 = tpu.matmul %279, %280, %cst_124 {dimension_numbers = #tpu.dot_dimension_numbers<[2], [2], [1], [1], [0, 0, 0, 1, 1, 1], [0], [0]>} : vector<2x1x8xbf16>, vector<2x8x8xbf16>, vector<2x1x8xf32> -> vector<2x1x8xf32>
    "tpu.trace_stop"() : () -> ()
    %282 = vector.extract_strided_slice %278 {offsets = [0, 0, 8], sizes = [2, 1, 8], strides = [1, 1, 1]} : vector<2x1x32xbf16> to vector<2x1x8xbf16>
    %283 = vector.extract_strided_slice %257 {offsets = [0, 0, 8], sizes = [2, 8, 8], strides = [1, 1, 1]} : vector<2x8x32xbf16> to vector<2x8x8xbf16>
    "tpu.trace_start"() <{level = 10 : i32, message = "bqd,bkd->bqk"}> : () -> ()
    %cst_125 = arith.constant dense<0.000000e+00> : vector<2x1x8xf32>
    %284 = tpu.matmul %282, %283, %cst_125 {dimension_numbers = #tpu.dot_dimension_numbers<[2], [2], [1], [1], [0, 0, 0, 1, 1, 1], [0], [0]>} : vector<2x1x8xbf16>, vector<2x8x8xbf16>, vector<2x1x8xf32> -> vector<2x1x8xf32>
    "tpu.trace_stop"() : () -> ()
    %285 = vector.extract_strided_slice %278 {offsets = [0, 0, 16], sizes = [2, 1, 8], strides = [1, 1, 1]} : vector<2x1x32xbf16> to vector<2x1x8xbf16>
    %286 = vector.extract_strided_slice %257 {offsets = [0, 0, 16], sizes = [2, 8, 8], strides = [1, 1, 1]} : vector<2x8x32xbf16> to vector<2x8x8xbf16>
    "tpu.trace_start"() <{level = 10 : i32, message = "bqd,bkd->bqk"}> : () -> ()
    %cst_126 = arith.constant dense<0.000000e+00> : vector<2x1x8xf32>
    %287 = tpu.matmul %285, %286, %cst_126 {dimension_numbers = #tpu.dot_dimension_numbers<[2], [2], [1], [1], [0, 0, 0, 1, 1, 1], [0], [0]>} : vector<2x1x8xbf16>, vector<2x8x8xbf16>, vector<2x1x8xf32> -> vector<2x1x8xf32>
    "tpu.trace_stop"() : () -> ()
    %288 = vector.extract_strided_slice %278 {offsets = [0, 0, 24], sizes = [2, 1, 8], strides = [1, 1, 1]} : vector<2x1x32xbf16> to vector<2x1x8xbf16>
    %289 = vector.extract_strided_slice %257 {offsets = [0, 0, 24], sizes = [2, 8, 8], strides = [1, 1, 1]} : vector<2x8x32xbf16> to vector<2x8x8xbf16>
    "tpu.trace_start"() <{level = 10 : i32, message = "bqd,bkd->bqk"}> : () -> ()
    %cst_127 = arith.constant dense<0.000000e+00> : vector<2x1x8xf32>
    %290 = tpu.matmul %288, %289, %cst_127 {dimension_numbers = #tpu.dot_dimension_numbers<[2], [2], [1], [1], [0, 0, 0, 1, 1, 1], [0], [0]>} : vector<2x1x8xbf16>, vector<2x8x8xbf16>, vector<2x1x8xf32> -> vector<2x1x8xf32>
    "tpu.trace_stop"() : () -> ()
    %291 = vector.shape_cast %281 : vector<2x1x8xf32> to vector<1x2x1x8xf32>
    %292 = vector.shape_cast %284 : vector<2x1x8xf32> to vector<1x2x1x8xf32>
    %293 = vector.shape_cast %287 : vector<2x1x8xf32> to vector<1x2x1x8xf32>
    %294 = vector.shape_cast %290 : vector<2x1x8xf32> to vector<1x2x1x8xf32>
    %295 = tpu.concatenate %291, %292, %293, %294 in 0 : vector<1x2x1x8xf32>, vector<1x2x1x8xf32>, vector<1x2x1x8xf32>, vector<1x2x1x8xf32> -> vector<4x2x1x8xf32>
    %cst_128 = arith.constant 0.353553385 : f32
    %296 = vector.broadcast %cst_128 : f32 to vector<4x2x1x8xf32>
    %297 = arith.mulf %295, %296 : vector<4x2x1x8xf32>
    %298 = vector.shape_cast %53 : vector<2x1x8xf32> to vector<1x2x1x8xf32>
    %299 = vector.broadcast %298 : vector<1x2x1x8xf32> to vector<4x2x1x8xf32>
    %300 = arith.addf %297, %299 : vector<4x2x1x8xf32>
    %cst_129 = arith.constant dense<0xFF800000> : vector<4x2x1xf32>
    %301 = vector.multi_reduction <maximumf>, %300, %cst_129 [3] : vector<4x2x1x8xf32> to vector<4x2x1xf32>
    %302 = vector.shape_cast %301 : vector<4x2x1xf32> to vector<4x2x1x1xf32>
    %303 = vector.broadcast %302 : vector<4x2x1x1xf32> to vector<4x2x1x8xf32>
    %304 = arith.subf %300, %303 : vector<4x2x1x8xf32>
    %305 = math.exp %304 : vector<4x2x1x8xf32>
    %cst_130 = arith.constant dense<0.000000e+00> : vector<4x2x1xf32>
    %306 = vector.multi_reduction <add>, %305, %cst_130 [3] : vector<4x2x1x8xf32> to vector<4x2x1xf32>
    %307 = vector.shape_cast %306 : vector<4x2x1xf32> to vector<4x2x1x1xf32>
    %308 = tpu.reciprocal %307 {approx = true} : vector<4x2x1x1xf32> -> vector<4x2x1x1xf32>
    %309 = vector.broadcast %308 : vector<4x2x1x1xf32> to vector<4x2x1x8xf32>
    %310 = arith.mulf %305, %309 : vector<4x2x1x8xf32>
    %311 = arith.truncf %310 : vector<4x2x1x8xf32> to vector<4x2x1x8xbf16>
    %312 = vector.extract_strided_slice %311 {offsets = [0, 0, 0, 0], sizes = [1, 2, 1, 8], strides = [1, 1, 1, 1]} : vector<4x2x1x8xbf16> to vector<1x2x1x8xbf16>
    %313 = vector.shape_cast %312 : vector<1x2x1x8xbf16> to vector<2x1x8xbf16>
    %314 = vector.extract_strided_slice %266 {offsets = [0, 0, 0], sizes = [2, 8, 8], strides = [1, 1, 1]} : vector<2x8x32xbf16> to vector<2x8x8xbf16>
    "tpu.trace_start"() <{level = 10 : i32, message = "bqk,bkd->bqd"}> : () -> ()
    %cst_131 = arith.constant dense<0.000000e+00> : vector<2x1x8xf32>
    %315 = tpu.matmul %313, %314, %cst_131 {dimension_numbers = #tpu.dot_dimension_numbers<[2], [1], [1], [2], [0, 0, 0, 1, 1, 2], [0], [0]>} : vector<2x1x8xbf16>, vector<2x8x8xbf16>, vector<2x1x8xf32> -> vector<2x1x8xf32>
    "tpu.trace_stop"() : () -> ()
    %316 = vector.extract_strided_slice %311 {offsets = [1, 0, 0, 0], sizes = [1, 2, 1, 8], strides = [1, 1, 1, 1]} : vector<4x2x1x8xbf16> to vector<1x2x1x8xbf16>
    %317 = vector.shape_cast %316 : vector<1x2x1x8xbf16> to vector<2x1x8xbf16>
    %318 = vector.extract_strided_slice %266 {offsets = [0, 0, 8], sizes = [2, 8, 8], strides = [1, 1, 1]} : vector<2x8x32xbf16> to vector<2x8x8xbf16>
    "tpu.trace_start"() <{level = 10 : i32, message = "bqk,bkd->bqd"}> : () -> ()
    %cst_132 = arith.constant dense<0.000000e+00> : vector<2x1x8xf32>
    %319 = tpu.matmul %317, %318, %cst_132 {dimension_numbers = #tpu.dot_dimension_numbers<[2], [1], [1], [2], [0, 0, 0, 1, 1, 2], [0], [0]>} : vector<2x1x8xbf16>, vector<2x8x8xbf16>, vector<2x1x8xf32> -> vector<2x1x8xf32>
    "tpu.trace_stop"() : () -> ()
    %320 = vector.extract_strided_slice %311 {offsets = [2, 0, 0, 0], sizes = [1, 2, 1, 8], strides = [1, 1, 1, 1]} : vector<4x2x1x8xbf16> to vector<1x2x1x8xbf16>
    %321 = vector.shape_cast %320 : vector<1x2x1x8xbf16> to vector<2x1x8xbf16>
    %322 = vector.extract_strided_slice %266 {offsets = [0, 0, 16], sizes = [2, 8, 8], strides = [1, 1, 1]} : vector<2x8x32xbf16> to vector<2x8x8xbf16>
    "tpu.trace_start"() <{level = 10 : i32, message = "bqk,bkd->bqd"}> : () -> ()
    %cst_133 = arith.constant dense<0.000000e+00> : vector<2x1x8xf32>
    %323 = tpu.matmul %321, %322, %cst_133 {dimension_numbers = #tpu.dot_dimension_numbers<[2], [1], [1], [2], [0, 0, 0, 1, 1, 2], [0], [0]>} : vector<2x1x8xbf16>, vector<2x8x8xbf16>, vector<2x1x8xf32> -> vector<2x1x8xf32>
    "tpu.trace_stop"() : () -> ()
    %324 = vector.extract_strided_slice %311 {offsets = [3, 0, 0, 0], sizes = [1, 2, 1, 8], strides = [1, 1, 1, 1]} : vector<4x2x1x8xbf16> to vector<1x2x1x8xbf16>
    %325 = vector.shape_cast %324 : vector<1x2x1x8xbf16> to vector<2x1x8xbf16>
    %326 = vector.extract_strided_slice %266 {offsets = [0, 0, 24], sizes = [2, 8, 8], strides = [1, 1, 1]} : vector<2x8x32xbf16> to vector<2x8x8xbf16>
    "tpu.trace_start"() <{level = 10 : i32, message = "bqk,bkd->bqd"}> : () -> ()
    %cst_134 = arith.constant dense<0.000000e+00> : vector<2x1x8xf32>
    %327 = tpu.matmul %325, %326, %cst_134 {dimension_numbers = #tpu.dot_dimension_numbers<[2], [1], [1], [2], [0, 0, 0, 1, 1, 2], [0], [0]>} : vector<2x1x8xbf16>, vector<2x8x8xbf16>, vector<2x1x8xf32> -> vector<2x1x8xf32>
    "tpu.trace_stop"() : () -> ()
    %328 = vector.shape_cast %315 : vector<2x1x8xf32> to vector<1x2x1x8xf32>
    %329 = vector.shape_cast %319 : vector<2x1x8xf32> to vector<1x2x1x8xf32>
    %330 = vector.shape_cast %323 : vector<2x1x8xf32> to vector<1x2x1x8xf32>
    %331 = vector.shape_cast %327 : vector<2x1x8xf32> to vector<1x2x1x8xf32>
    %332 = tpu.concatenate %328, %329, %330, %331 in 0 : vector<1x2x1x8xf32>, vector<1x2x1x8xf32>, vector<1x2x1x8xf32>, vector<1x2x1x8xf32> -> vector<4x2x1x8xf32>
    %333 = vector.shape_cast %332 : vector<4x2x1x8xf32> to vector<4x2x8xf32>
    %334 = arith.truncf %333 : vector<4x2x8xf32> to vector<4x2x8xbf16>
    %c1_135 = arith.constant 1 : index
    %c0_136 = arith.constant 0 : index
    %c0_137 = arith.constant 0 : index
    %c0_138 = arith.constant 0 : index
    %335 = vector.load %arg16[%c1_135, %c0_136, %c0_137, %c0_138] : memref<2x4x8x32xbf16, #tpu.memory_space<vmem>>, vector<1x4x8x32xbf16>
    %336 = vector.shape_cast %335 : vector<1x4x8x32xbf16> to vector<4x8x32xbf16>
    "tpu.trace_start"() <{level = 10 : i32, message = "hmd,hdo->hmo"}> : () -> ()
    %cst_139 = arith.constant dense<0.000000e+00> : vector<4x2x32xf32>
    %337 = tpu.matmul %334, %336, %cst_139 {dimension_numbers = #tpu.dot_dimension_numbers<[2], [1], [1], [2], [0, 0, 0, 1, 1, 2], [0], [0]>} : vector<4x2x8xbf16>, vector<4x8x32xbf16>, vector<4x2x32xf32> -> vector<4x2x32xf32>
    "tpu.trace_stop"() : () -> ()
    %338 = vector.extract_strided_slice %337 {offsets = [0, 0, 0], sizes = [1, 2, 32], strides = [1, 1, 1]} : vector<4x2x32xf32> to vector<1x2x32xf32>
    %339 = vector.shape_cast %338 : vector<1x2x32xf32> to vector<2x32xf32>
    %340 = vector.extract_strided_slice %337 {offsets = [1, 0, 0], sizes = [1, 2, 32], strides = [1, 1, 1]} : vector<4x2x32xf32> to vector<1x2x32xf32>
    %341 = vector.shape_cast %340 : vector<1x2x32xf32> to vector<2x32xf32>
    %342 = arith.addf %339, %341 : vector<2x32xf32>
    %343 = vector.extract_strided_slice %337 {offsets = [2, 0, 0], sizes = [1, 2, 32], strides = [1, 1, 1]} : vector<4x2x32xf32> to vector<1x2x32xf32>
    %344 = vector.shape_cast %343 : vector<1x2x32xf32> to vector<2x32xf32>
    %345 = arith.addf %342, %344 : vector<2x32xf32>
    %346 = vector.extract_strided_slice %337 {offsets = [3, 0, 0], sizes = [1, 2, 32], strides = [1, 1, 1]} : vector<4x2x32xf32> to vector<1x2x32xf32>
    %347 = vector.shape_cast %346 : vector<1x2x32xf32> to vector<2x32xf32>
    %348 = arith.addf %345, %347 : vector<2x32xf32>
    %c1_140 = arith.constant 1 : index
    %c0_141 = arith.constant 0 : index
    %c0_142 = arith.constant 0 : index
    %349 = vector.load %arg17[%c1_140, %c0_141, %c0_142] : memref<2x1x32xf32, #tpu.memory_space<vmem>>, vector<1x1x32xf32>
    %350 = vector.shape_cast %349 : vector<1x1x32xf32> to vector<1x32xf32>
    %351 = vector.broadcast %350 : vector<1x32xf32> to vector<2x32xf32>
    %352 = arith.addf %348, %351 : vector<2x32xf32>
    %353 = arith.addf %268, %352 : vector<2x32xf32>
    %c1_143 = arith.constant 1 : index
    %c0_144 = arith.constant 0 : index
    %c0_145 = arith.constant 0 : index
    %354 = vector.load %arg18[%c1_143, %c0_144, %c0_145] : memref<2x1x32xf32, #tpu.memory_space<vmem>>, vector<1x1x32xf32>
    %355 = vector.shape_cast %354 : vector<1x1x32xf32> to vector<1x32xf32>
    %c1_146 = arith.constant 1 : index
    %c0_147 = arith.constant 0 : index
    %c0_148 = arith.constant 0 : index
    %356 = vector.load %arg19[%c1_146, %c0_147, %c0_148] : memref<2x1x32xf32, #tpu.memory_space<vmem>>, vector<1x1x32xf32>
    %357 = vector.shape_cast %356 : vector<1x1x32xf32> to vector<1x32xf32>
    %cst_149 = arith.constant dense<0.000000e+00> : vector<2xf32>
    %358 = vector.multi_reduction <add>, %353, %cst_149 [1] : vector<2x32xf32> to vector<2xf32>
    %359 = vector.shape_cast %358 : vector<2xf32> to vector<2x1xf32>
    %cst_150 = arith.constant 3.200000e+01 : f32
    %360 = vector.broadcast %cst_150 : f32 to vector<2x1xf32>
    %361 = arith.divf %359, %360 : vector<2x1xf32>
    %362 = vector.broadcast %361 : vector<2x1xf32> to vector<2x32xf32>
    %363 = arith.subf %353, %362 : vector<2x32xf32>
    %364 = arith.mulf %363, %363 : vector<2x32xf32>
    %cst_151 = arith.constant dense<0.000000e+00> : vector<2xf32>
    %365 = vector.multi_reduction <add>, %364, %cst_151 [1] : vector<2x32xf32> to vector<2xf32>
    %366 = vector.shape_cast %365 : vector<2xf32> to vector<2x1xf32>
    %cst_152 = arith.constant 3.200000e+01 : f32
    %367 = vector.broadcast %cst_152 : f32 to vector<2x1xf32>
    %368 = arith.divf %366, %367 : vector<2x1xf32>
    %369 = vector.broadcast %361 : vector<2x1xf32> to vector<2x32xf32>
    %370 = arith.subf %353, %369 : vector<2x32xf32>
    %cst_153 = arith.constant 9.99999996E-13 : f32
    %371 = vector.broadcast %cst_153 : f32 to vector<2x1xf32>
    %372 = arith.addf %368, %371 : vector<2x1xf32>
    %373 = math.rsqrt %372 : vector<2x1xf32>
    %374 = vector.broadcast %373 : vector<2x1xf32> to vector<2x32xf32>
    %375 = arith.mulf %370, %374 : vector<2x32xf32>
    %376 = vector.broadcast %355 : vector<1x32xf32> to vector<2x32xf32>
    %377 = arith.mulf %375, %376 : vector<2x32xf32>
    %378 = vector.broadcast %357 : vector<1x32xf32> to vector<2x32xf32>
    %379 = arith.addf %377, %378 : vector<2x32xf32>
    %380 = arith.truncf %379 : vector<2x32xf32> to vector<2x32xbf16>
    %c1_154 = arith.constant 1 : index
    %c0_155 = arith.constant 0 : index
    %c0_156 = arith.constant 0 : index
    %381 = vector.load %arg20[%c1_154, %c0_155, %c0_156] : memref<2x32x64xbf16, #tpu.memory_space<vmem>>, vector<1x32x64xbf16>
    %382 = vector.shape_cast %381 : vector<1x32x64xbf16> to vector<32x64xbf16>
    %cst_157 = arith.constant dense<0.000000e+00> : vector<2x64xf32>
    %383 = tpu.matmul %380, %382, %cst_157 {dimension_numbers = #tpu.dot_dimension_numbers<[1], [0], [0], [1], [0, 0, 1, 1], [], []>} : vector<2x32xbf16>, vector<32x64xbf16>, vector<2x64xf32> -> vector<2x64xf32>
    %c1_158 = arith.constant 1 : index
    %c0_159 = arith.constant 0 : index
    %c0_160 = arith.constant 0 : index
    %384 = vector.load %arg21[%c1_158, %c0_159, %c0_160] : memref<2x1x64xf32, #tpu.memory_space<vmem>>, vector<1x1x64xf32>
    %385 = vector.shape_cast %384 : vector<1x1x64xf32> to vector<1x64xf32>
    %386 = vector.broadcast %385 : vector<1x64xf32> to vector<2x64xf32>
    %387 = arith.addf %383, %386 : vector<2x64xf32>
    %cst_161 = arith.constant 5.000000e-01 : f32
    %388 = vector.broadcast %cst_161 : f32 to vector<2x64xf32>
    %389 = arith.mulf %388, %387 : vector<2x64xf32>
    %cst_162 = arith.constant 4.471500e-02 : f32
    %390 = vector.broadcast %cst_162 : f32 to vector<2x64xf32>
    %391 = arith.mulf %390, %387 : vector<2x64xf32>
    %392 = arith.mulf %391, %387 : vector<2x64xf32>
    %393 = arith.mulf %392, %387 : vector<2x64xf32>
    %394 = arith.addf %387, %393 : vector<2x64xf32>
    %cst_163 = arith.constant 0.797884583 : f32
    %395 = vector.broadcast %cst_163 : f32 to vector<2x64xf32>
    %396 = arith.mulf %395, %394 : vector<2x64xf32>
    %397 = math.tanh %396 : vector<2x64xf32>
    %cst_164 = arith.constant 1.000000e+00 : f32
    %398 = vector.broadcast %cst_164 : f32 to vector<2x64xf32>
    %399 = arith.addf %398, %397 : vector<2x64xf32>
    %400 = arith.mulf %389, %399 : vector<2x64xf32>
    %401 = arith.truncf %400 : vector<2x64xf32> to vector<2x64xbf16>
    %c1_165 = arith.constant 1 : index
    %c0_166 = arith.constant 0 : index
    %c0_167 = arith.constant 0 : index
    %402 = vector.load %arg22[%c1_165, %c0_166, %c0_167] : memref<2x64x32xbf16, #tpu.memory_space<vmem>>, vector<1x64x32xbf16>
    %403 = vector.shape_cast %402 : vector<1x64x32xbf16> to vector<64x32xbf16>
    %cst_168 = arith.constant dense<0.000000e+00> : vector<2x32xf32>
    %404 = tpu.matmul %401, %403, %cst_168 {dimension_numbers = #tpu.dot_dimension_numbers<[1], [0], [0], [1], [0, 0, 1, 1], [], []>} : vector<2x64xbf16>, vector<64x32xbf16>, vector<2x32xf32> -> vector<2x32xf32>
    %c1_169 = arith.constant 1 : index
    %c0_170 = arith.constant 0 : index
    %c0_171 = arith.constant 0 : index
    %405 = vector.load %arg23[%c1_169, %c0_170, %c0_171] : memref<2x1x32xf32, #tpu.memory_space<vmem>>, vector<1x1x32xf32>
    %406 = vector.shape_cast %405 : vector<1x1x32xf32> to vector<1x32xf32>
    %407 = vector.broadcast %406 : vector<1x32xf32> to vector<2x32xf32>
    %408 = arith.addf %404, %407 : vector<2x32xf32>
    %409 = arith.addf %379, %408 : vector<2x32xf32>
    %c1_172 = arith.constant 1 : index
    %c0_173 = arith.constant 0 : index
    %c0_174 = arith.constant 0 : index
    %410 = vector.load %arg24[%c1_172, %c0_173, %c0_174] : memref<2x1x32xf32, #tpu.memory_space<vmem>>, vector<1x1x32xf32>
    %411 = vector.shape_cast %410 : vector<1x1x32xf32> to vector<1x32xf32>
    %c1_175 = arith.constant 1 : index
    %c0_176 = arith.constant 0 : index
    %c0_177 = arith.constant 0 : index
    %412 = vector.load %arg25[%c1_175, %c0_176, %c0_177] : memref<2x1x32xf32, #tpu.memory_space<vmem>>, vector<1x1x32xf32>
    %413 = vector.shape_cast %412 : vector<1x1x32xf32> to vector<1x32xf32>
    %cst_178 = arith.constant dense<0.000000e+00> : vector<2xf32>
    %414 = vector.multi_reduction <add>, %409, %cst_178 [1] : vector<2x32xf32> to vector<2xf32>
    %415 = vector.shape_cast %414 : vector<2xf32> to vector<2x1xf32>
    %cst_179 = arith.constant 3.200000e+01 : f32
    %416 = vector.broadcast %cst_179 : f32 to vector<2x1xf32>
    %417 = arith.divf %415, %416 : vector<2x1xf32>
    %418 = vector.broadcast %417 : vector<2x1xf32> to vector<2x32xf32>
    %419 = arith.subf %409, %418 : vector<2x32xf32>
    %420 = arith.mulf %419, %419 : vector<2x32xf32>
    %cst_180 = arith.constant dense<0.000000e+00> : vector<2xf32>
    %421 = vector.multi_reduction <add>, %420, %cst_180 [1] : vector<2x32xf32> to vector<2xf32>
    %422 = vector.shape_cast %421 : vector<2xf32> to vector<2x1xf32>
    %cst_181 = arith.constant 3.200000e+01 : f32
    %423 = vector.broadcast %cst_181 : f32 to vector<2x1xf32>
    %424 = arith.divf %422, %423 : vector<2x1xf32>
    %425 = vector.broadcast %417 : vector<2x1xf32> to vector<2x32xf32>
    %426 = arith.subf %409, %425 : vector<2x32xf32>
    %cst_182 = arith.constant 9.99999996E-13 : f32
    %427 = vector.broadcast %cst_182 : f32 to vector<2x1xf32>
    %428 = arith.addf %424, %427 : vector<2x1xf32>
    %429 = math.rsqrt %428 : vector<2x1xf32>
    %430 = vector.broadcast %429 : vector<2x1xf32> to vector<2x32xf32>
    %431 = arith.mulf %426, %430 : vector<2x32xf32>
    %432 = vector.broadcast %411 : vector<1x32xf32> to vector<2x32xf32>
    %433 = arith.mulf %431, %432 : vector<2x32xf32>
    %434 = vector.broadcast %413 : vector<1x32xf32> to vector<2x32xf32>
    %435 = arith.addf %433, %434 : vector<2x32xf32>
    %c0_183 = arith.constant 0 : index
    %c0_184 = arith.constant 0 : index
    %436 = vector.load %arg8[%c0_183, %c0_184] : memref<32x5xf32, #tpu.memory_space<vmem>>, vector<32x5xf32>
    %cst_185 = arith.constant dense<0.000000e+00> : vector<2x5xf32>
    %437 = tpu.matmul %435, %436, %cst_185 {dimension_numbers = #tpu.dot_dimension_numbers<[1], [0], [0], [1], [0, 0, 1, 1], [], []>} : vector<2x32xf32>, vector<32x5xf32>, vector<2x5xf32> -> vector<2x5xf32>
    %c0_186 = arith.constant 0 : index
    %c0_187 = arith.constant 0 : index
    %438 = vector.load %arg9[%c0_186, %c0_187] : memref<1x5xf32, #tpu.memory_space<vmem>>, vector<1x5xf32>
    %439 = vector.broadcast %438 : vector<1x5xf32> to vector<2x5xf32>
    %440 = arith.addf %437, %439 : vector<2x5xf32>
    %cst_188 = arith.constant dense<0xFF800000> : vector<2xf32>
    %441 = vector.multi_reduction <maximumf>, %440, %cst_188 [1] : vector<2x5xf32> to vector<2xf32>
    %442 = vector.shape_cast %441 : vector<2xf32> to vector<2x1xf32>
    %443 = tpu.iota {dimensions = array<i32: 1>} : vector<2x5xi32>
    %444 = vector.broadcast %442 : vector<2x1xf32> to vector<2x5xf32>
    %445 = arith.cmpf oge, %440, %444 : vector<2x5xf32>
    %c5_i32 = arith.constant 5 : i32
    %446 = vector.broadcast %c5_i32 : i32 to vector<2x5xi32>
    %447 = arith.select %445, %443, %446 : vector<2x5xi1>, vector<2x5xi32>
    %cst_189 = arith.constant dense<2147483647> : vector<2xi32>
    %448 = vector.multi_reduction <minsi>, %447, %cst_189 [1] : vector<2x5xi32> to vector<2xi32>
    %449 = vector.shape_cast %448 : vector<2xi32> to vector<2x1xi32>
    %c0_190 = arith.constant 0 : index
    %c0_191 = arith.constant 0 : index
    %450 = vector.load %arg26[%c0_190, %c0_191] : memref<2x1xi32, #tpu.memory_space<vmem>>, vector<2x1xi32>
    tpu.vector_store %arg26[%c0_190, %c0_191], %449 {strides = array<i32>} : memref<2x1xi32, #tpu.memory_space<vmem>>, vector<2x1xi32>,
    return
  }
}

</mosaic_0001>

<bundles_post_ra>
// kernel: bert_forward.1
= control target key start
LH: loop header
LB: loop body
LE: loop exit
PB: predicated region body
PF: predicated region fallthrough
CT: control target
= control target key end

     0   :  { %s5476_s0 = inlined_call_operand.vmem [shape: s32[16,1], index: 0, kind: input, shape index: {}]   ;;  %s5477_s1 = inlined_call_operand.vmem [shape: s32[16,1], index: 1, kind: input, shape index: {}]   ;;  %s5478_s2 = inlined_call_operand.vmem [shape: s32[2,1,8], index: 2, kind: input, shape index: {}]   ;;  %s5479_s3 = inlined_call_operand.vmem [shape: f32[50,32], index: 3, kind: input, shape index: {}]   ;;  %s5480_s4 = inlined_call_operand.vmem [shape: f32[16,32], index: 4, kind: input, shape index: {}]   ;;  %s5481_s5 = inlined_call_operand.vmem [shape: f32[2,32], index: 5, kind: input, shape index: {}]   ;;  %s5482_s6 = inlined_call_operand.hbm [shape: f32[1,32], index: 6, kind: input, shape index: {}]   ;;  %s5483_s7 = inlined_call_operand.hbm [shape: f32[1,32], index: 7, kind: input, shape index: {}]   ;;  %s5484_s8 = inlined_call_operand.vmem [shape: f32[32,5], index: 8, kind: input, shape index: {}]   ;;  %s5485_s9 = inlined_call_operand.hbm [shape: f32[1,5], index: 9, kind: input, shape index: {}]   ;;  %s5486_s10 = inlined_call_operand.vmem [shape: bf16[2,32,32], index: 10, kind: input, shape index: {}]   ;;  %s5487_s11 = inlined_call_operand.vmem [shape: f32[2,1,32], index: 11, kind: input, shape index: {}]   ;;  %s5488_s12 = inlined_call_operand.vmem [shape: bf16[2,32,32], index: 12, kind: input, shape index: {}]   ;;  %s5489_s13 = inlined_call_operand.vmem [shape: f32[2,1,32], index: 13, kind: input, shape index: {}]   ;;  %s5490_s14 = inlined_call_operand.vmem [shape: bf16[2,32,32], index: 14, kind: input, shape index: {}]   ;;  %s5491_s15 = inlined_call_operand.vmem [shape: f32[2,1,32], index: 15, kind: input, shape index: {}]   ;;  %s5492_s16 = inlined_call_operand.vmem [shape: bf16[2,4,8,32], index: 16, kind: input, shape index: {}]   ;;  %s5493_s17 = inlined_call_operand.vmem [shape: f32[2,1,32], index: 17, kind: input, shape index: {}]   ;;  %s5494_s18 = inlined_call_operand.vmem [shape: f32[2,1,32], index: 18, kind: input, shape index: {}]   ;;  %s5495_s19 = inlined_call_operand.vmem [shape: f32[2,1,32], index: 19, kind: input, shape index: {}]   ;;  %s5496_s20 = inlined_call_operand.vmem [shape: bf16[2,32,64], index: 20, kind: input, shape index: {}]   ;;  %s5497_s21 = inlined_call_operand.vmem [shape: f32[2,1,64], index: 21, kind: input, shape index: {}]   ;;  %s5498_s22 = inlined_call_operand.vmem [shape: bf16[2,64,32], index: 22, kind: input, shape index: {}]   ;;  %s5499_s23 = inlined_call_operand.vmem [shape: f32[2,1,32], index: 23, kind: input, shape index: {}]   ;;  %s5500_s24 = inlined_call_operand.vmem [shape: f32[2,1,32], index: 24, kind: input, shape index: {}]   ;;  %s5501_s25 = inlined_call_operand.vmem [shape: f32[2,1,32], index: 25, kind: input, shape index: {}]   ;;  %s5502_s26 = inlined_call_operand.vmem [shape: s32[2,1], index: 26, kind: output, shape index: {}]  }
   0x1   :  { %5509 = sst [smem:[#allocation9_spill]] %s5476_s0 }
   0x2   :  { %5510 = sst [smem:[#allocation10_spill]] %s5477_s1 }
   0x3   :  { %5511 = sst [smem:[#allocation11_spill]] %s5478_s2 }
   0x4   :  { %5512 = sst [smem:[#allocation12_spill]] %s5479_s3 }
   0x5   :  { %5513 = sst [smem:[#allocation13_spill]] %s5480_s4 }
   0x6   :  { %5514 = sst [smem:[#allocation14_spill]] %s5481_s5 }
   0x7   :  { %5515 = sst [smem:[#allocation15_spill]] %s5482_s6 }
   0x8   :  { %5516 = sst [smem:[#allocation16_spill]] %s5483_s7 }
   0x9   :  { %5517 = sst [smem:[#allocation17_spill]] %s5484_s8 }
   0xa   :  { %5518 = sst [smem:[#allocation18_spill]] %s5485_s9 }
   0xb   :  { %5519 = sst [smem:[#allocation19_spill]] %s5486_s10 }
   0xc   :  { %31 = vsyncpa [#allocation3], 0 }
   0xd   :  { %32 = vsyncpa [#allocation5], 0  ;;  %s4600_s27 = smov [#allocation4]   ;;  %s4601_s7 = smov [#allocation2]  }
   0xe   :  { %s61_s3 = sshll.u32 %s4600_s27, 4  ;;  %s51_s28 = sshll.u32 %s4601_s7, 4  ;;  %s62_s3 = int_to_ptr.vmem [resolvable:$true] %s61_s3  ;;  %s52_s28 = int_to_ptr.vmem [resolvable:$true] %s51_s28 }
   0xf   :  { %s4544_s8 = scalar_lea.vmem %s62_s3, 16  ;;  %s4548_s4 = scalar_lea.vmem %s62_s3, 32 }
  0x10   :  { %p4545_p0 = scmp.ne.s32.totalorder %s62_s3, %s4544_s8  ;;  %p4549_p1 = scmp.lt.s32.totalorder %s62_s3, %s62_s3 }
  0x11   :  { %p4550_p2 = scmp.lt.s32.totalorder %s4548_s4, %s4544_s8 }
  0x13   :  { %p4551_p3 = por %p4550_p2, %p4549_p1 }
  0x15   :  { %p4552_p4 = pnand %p4551_p3, %p4545_p0 }
  0x17   :  { %4555 = shalt.err (!%p4552_p4)
}
  0x18   :  { %s5520_s9 = sld [smem:[#allocation16_spill]]  ;;  %s4564_s30 = scalar_lea.vmem %s52_s28, 16 }
  0x19   :  { %p4565_p5 = scmp.ne.s32.totalorder %s52_s28, %s4564_s30  ;;  %s4568_s2 = scalar_lea.vmem %s52_s28, 32 }
  0x1a   :  { %p4569_p6 = scmp.lt.s32.totalorder %s52_s28, %s52_s28  ;;  %p4570_p7 = scmp.lt.s32.totalorder %s4568_s2, %s4564_s30 }
  0x1c   :  { %p4571_p8 = por %p4570_p7, %p4569_p6 }
  0x1e   :  { %64 = dma.hbm_to_vmem [thread:$0]  %s5520_s9, 16, %s62_s3, [#allocation5]  }
  0x1f   :  { %p4572_p9 = pnand %p4571_p8, %p4565_p5 }
  0x21   :  { %4575 = shalt.err (!%p4572_p9)
}
  0x22   :  { %s5521_s6 = sld [smem:[#allocation15_spill]]  ;;  %s4602_s1 = smov [#allocation6]  }
  0x23   :  { %s73_s27 = sshll.u32 %s4602_s1, 4  ;;  %s74_s27 = int_to_ptr.vmem [resolvable:$true] %s73_s27 }
  0x24   :  { %s4584_s7 = scalar_lea.vmem %s74_s27, 16  ;;  %s4588_s8 = scalar_lea.vmem %s74_s27, 32 }
  0x25   :  { %p4585_p10 = scmp.ne.s32.totalorder %s74_s27, %s4584_s7  ;;  %p4589_p11 = scmp.lt.s32.totalorder %s74_s27, %s74_s27 }
  0x26   :  { %p4590_p12 = scmp.lt.s32.totalorder %s4588_s8, %s4584_s7 }
  0x28   :  { %54 = dma.hbm_to_vmem [thread:$0]  %s5521_s6, 16, %s52_s28, [#allocation3]  }
  0x29   :  { %p4591_p13 = por %p4590_p12, %p4589_p11 }
  0x2b   :  { %p4592_p0 = pnand %p4591_p13, %p4585_p10 }
  0x2d   :  { %4595 = shalt.err (!%p4592_p0)
}
  0x2e   :  { %s5522_s29 = sld [smem:[#allocation18_spill]] }
  0x34   :  { %76 = dma.hbm_to_vmem [thread:$0]  %s5522_s29, 16, %s74_s27, [#allocation5]  }
  0x35   :  { %4596 = dma.done.wait [#allocation3], 16  }
  0x36   :  { %4597 = vsyncadd [#allocation3], 4294967280 }
  0x37   :  { %4598 = dma.done.wait [#allocation5], 32  }
  0x38   :  { %4599 = vsyncadd [#allocation5], 4294967264  ;;  %v4603_v0 = vmov 0   ;;  %vm164_vm0 = vcmask 1041408   ;;  %s5523_s9 = sld [smem:[#allocation9_spill]]  ;;  %v4604_v11 = vmov 0.0   ;;  %v119_v14 = vlaneseq }
  0x39   :  { %4425 = vset.pattern.permute.xlu1 %v4603_v0  ;;  %4424 = vset.pattern.permute.xlu0 %v4603_v0  ;;  %s5524_s6 = sld [smem:[#allocation12_spill]]  ;;  %vm244_vm1 = vcmask 408576   ;;  %vm157_vm4 = vcmask 15360   ;;  %vm333_vm7 = vcmask 261120   ;;  %v4427_v46 = vld [vmem:[%s5490_s14 + $0x8] sm:$0xff]   ;;  %v4429_v48 = vld [vmem:[%s5490_s14] sm:$0xff]  }
  0x3a   :  { %s5525_s3 = sld [smem:[#allocation10_spill]]  ;;  %v4797_v15 = vand.u32 127, %v119_v14  ;;  %vm4605_vm8 = vmmov 0   ;;  %v3765_v57 = vld [vmem:[#allocation2] ss:$0 sm:$0xff]  ;;  %vm599_vm9 = vcmask 64512  }
  0x3b   :  { %s5526_s2 = sld [smem:[#allocation14_spill]]  ;;  %v3766_v61 = vld [vmem:[#allocation4] ss:$0 sm:$0xff]  ;;  %s4607_s5 = smov 112   ;;  %vm1119_vm10 = vcmask 1043456   ;;  %vm1880_vm11 = vcmask 523264  }
  0x3c   :  { %s5527_s28 = sld [smem:[#allocation13_spill]]  ;;  %s4608_s10 = smov 104   ;;  %vm2139_vm12 = vcmask 1041409   ;;  %vm2633_vm13 = vcmask 57344   ;;  %vm3362_vm14 = vcmask 254976   ;;  %vm3726_vm15 = vcmask 33792  }
  0x3d   :  { %s5528_s30 = sld [smem:[#allocation19_spill]] }
  0x3e   :  { %v122_v1 = vld [vmem:[%s5523_s9 + $0x8] sm:$0xff]  ;;  %v121_v2 = vld [vmem:[%s5523_s9] sm:$0xff]  ;;  %s5530_s9 = sld [smem:[#allocation17_spill]] }
  0x3f   :  { %127 = vperm.xlu1 %4425, %v122_v1   ;;  %124 = vperm.xlu0 %4424, %v121_v2   ;;  %v155_v3 = vld [vmem:[%s5524_s6 + $0x30] sm:$0x3]  ;;  %v154_v4 = vld [vmem:[%s5524_s6 + $0x28] sm:$0xff]  ;;  %v153_v7 = vld [vmem:[%s5524_s6 + $0x20] sm:$0xff] }
  0x40   :  { %v136_v5 = vld [vmem:[%s5525_s3 + $0x8] sm:$0xff]  ;;  %v135_v6 = vld [vmem:[%s5525_s3] sm:$0xff]  ;;  %4058 = vmatprep.subr.msk.mxu1 %vm164_vm0, %v155_v3  ;;  %v152_v9 = vld [vmem:[%s5524_s6 + $0x18] sm:$0xff]  ;;  %s5529_s3 = sld [smem:[#allocation11_spill]] }
  0x41   :  { %4059 = vmatpush3.msk.msra.mxu1 %vm164_vm0, %v155_v3  ;;  %v156_v8 = vld [vmem:[%s5526_s2] sm:$0x3]  ;;  %v151_v10 = vld [vmem:[%s5524_s6 + $0x10] sm:$0xff]  ;;  %v150_v12 = vld [vmem:[%s5524_s6 + $0x8] sm:$0xff]  ;;  %s4606_s2 = smov 120  }
  0x42   :  { %4060 = vmatprep.subr.mxu1 %v154_v4  ;;  %4053 = vmatprep.subr.msk.mxu0 %vm164_vm0, %v156_v8  ;;  %v149_v13 = vld [vmem:[%s5524_s6] sm:$0xff]  ;;  %v4430_v1 = vld [vmem:[%s5488_s12 + $0x8] sm:$0xff]  }
  0x43   :  { %141 = vperm.xlu1 %4425, %v136_v5   ;;  %138 = vperm.xlu0 %4424, %v135_v6   ;;  %v243_v26 = vld [vmem:[%s5527_s28] sm:$0xff]  ;;  %v4426_v45 = vld [vmem:[%s5528_s30 + $0x8] sm:$0xff]  }
  0x44   :  { %4061 = vmatpush3.msra.mxu1 %v154_v4  ;;  %4054 = vmatpush3.msk.msra.mxu0 %vm164_vm0, %v156_v8  ;;  %v4428_v47 = vld [vmem:[%s5528_s30] sm:$0xff]  }
  0x45   :  { %4062 = vmatprep.subr.mxu1 %v153_v7  ;;  %4075 = vmatprep.subr.bf16.mxu0 %v4604_v11  ;;  %v4431_v3 = vld [vmem:[%s5488_s12] sm:$0xff]  }
  0x46   :  { %4063 = vmatpush3.msra.mxu1 %v153_v7 }
  0x47   :  { %4064 = vmatprep.subr.mxu1 %v152_v9 }
  0x48   :  { %4065 = vmatpush3.msra.mxu1 %v152_v9 }
  0x49   :  { %4066 = vmatprep.subr.mxu1 %v151_v10 }
  0x4a   :  { %4067 = vmatpush3.msra.mxu1 %v151_v10 }
  0x4b   :  { %4068 = vmatprep.subr.mxu1 %v150_v12 }
  0x4c   :  { %4069 = vmatpush3.msra.mxu1 %v150_v12 }
  0x4d   :  { %4070 = vmatprep.subr.mxu1 %v149_v13 }
  0x4e   :  { %4071 = vmatpush3.msra.mxu1 %v149_v13  ;;  %v3773_v13 = vld [vmem:[%s5489_s13] ss:$0 sm:$0xff] }
  0x4f   :  { %4091 = vmatprep.subr.bf16.mxu1 %v4604_v11 }
  0xba   :  { %v128_v16 = vpop.permute.xlu1 %127  ;;  %v125_v17 = vpop.permute.xlu0 %124 }
  0xbb   :  { %vm130_vm2 = vcmp.eq.s32.totalorder %v4797_v15, %v128_v16  ;;  %vm129_vm3 = vcmp.eq.s32.totalorder %v4797_v15, %v125_v17  ;;  %v3767_v16 = vld [vmem:[%s5487_s11] ss:$0 sm:$0xff] }
  0xbc   :  { %v3756_v18 = vsel %vm130_vm2, 1.0, %v4604_v11  ;;  %v3755_v19 = vsel %vm129_vm3, 1.0, %v4604_v11  ;;  %vm3747_vm2 = vcmask 1024  }
  0xbd   :  { %4072 = vmatprep.mubr.msk.f32.mxu1 %vm244_vm1, %v3755_v19 }
  0xbe   :  { %v142_v20 = vpop.permute.xlu1 %141  ;;  %4073 = vmatmul.mubr.msk.f32.vlgmr.msra.gmra.mxu1 %vm244_vm1, %v3756_v18  ;;  %v139_v21 = vpop.permute.xlu0 %138 }
  0xbf   :  { %vm144_vm5 = vcmp.eq.s32.totalorder %v4797_v15, %v142_v20  ;;  %vm143_vm6 = vcmp.eq.s32.totalorder %v4797_v15, %v139_v21  ;;  %4092 = vmatpush3.bf16.msra.mxu1 %v4427_v46  ;;  %4095 = vmatprep.mubr.msk.bf16.mxu1 %vm4605_vm8, %v4604_v11 }
  0xc0   :  { %v3758_v22 = vsel %vm144_vm5, 1.0, %v4604_v11  ;;  %v3757_v23 = vsel %vm143_vm6, 1.0, %v4604_v11  ;;  %4093 = vmatprep.subr.bf16.mxu1 %v4604_v11 }
  0xc1   :  { %4055 = vmatprep.mubr.msk.f32.mxu0 %vm157_vm4, %v3757_v23 }
  0xc2   :  { %4056 = vmatmul.mubr.msk.f32.vlgmr.msra.gmra.mxu0 %vm157_vm4, %v3758_v22 }
  0xc3   :  { %4076 = vmatpush3.bf16.msra.mxu0 %v4426_v45  ;;  %4079 = vmatprep.mubr.msk.bf16.mxu0 %vm4605_vm8, %v4604_v11 }
  0xc4   :  { %4077 = vmatprep.subr.bf16.mxu0 %v4604_v11  ;;  %4094 = vmatpush3.bf16.msra.mxu1 %v4429_v48 }
  0xc5   :  { %4105 = vmatprep.subr.bf16.mxu1 %v4604_v11 }
  0xc7   :  { %4078 = vmatpush3.bf16.msra.mxu0 %v4428_v47 }
  0xc8   :  { %4083 = vmatprep.subr.bf16.mxu0 %v4604_v11 }
 0x17e   :  { %v4074_v24 = vpop.f32.mrf.mxu1 }
 0x180   :  { %v320_v28 = vpop.f32.mrf.mxu1 }
 0x182   :  { %v4057_v25 = vpop.f32.mrf.mxu0 }
 0x183   :  { %v326_v27 = vadd.f32 %v4074_v24, %v4057_v25 }
 0x184   :  { %v234_v29 = vpop.f32.mrf.mxu0 }
 0x185   :  { %v321_v30 = vadd.f32 %v320_v28, %v234_v29  ;;  %v330_v31 = vadd.f32 %v326_v27, %v243_v26 }
 0x187   :  { %v337_v32 = vsel %vm333_vm7, %v330_v31, 0.0  ;;  %v329_v33 = vadd.f32 %v321_v30, %v243_v26 }
 0x188   :  { %338 = vadd.xlane.f32.xlu1 %v337_v32 }
 0x189   :  { %v334_v34 = vsel %vm333_vm7, %v329_v33, 0.0 }
 0x18a   :  { %335 = vadd.xlane.f32.xlu0 %v334_v34 }
 0x211   :  { %v339_v35 = vpop.xlane.xlu1 %338 }
 0x212   :  { %v342_v36 = vmul.f32 0.03125, %v339_v35 }
 0x213   :  { %v336_v37 = vpop.xlane.xlu0 %335 }
 0x214   :  { %v341_v38 = vmul.f32 0.03125, %v336_v37  ;;  %v344_v39 = vsub.f32 %v330_v31, %v342_v36 }
 0x216   :  { %v343_v40 = vsub.f32 %v329_v33, %v341_v38  ;;  %v346_v43 = vmul.f32 %v344_v39, %v344_v39 }
 0x218   :  { %v345_v41 = vmul.f32 %v343_v40, %v343_v40  ;;  %v350_v44 = vsel %vm333_vm7, %v346_v43, 0.0 }
 0x21a   :  { %v347_v42 = vsel %vm333_vm7, %v345_v41, 0.0 }
 0x21b   :  { %348 = vadd.xlane.f32.xlu0 %v347_v42  ;;  %v3779_v42 = vld [vmem:[%s5491_s15] ss:$0 sm:$0xff] }
 0x21f   :  { %351 = vadd.xlane.f32.xlu0 %v350_v44 }
 0x2a4   :  { %v349_v49 = vpop.xlane.xlu0 %348 }
 0x2a5   :  { %v353_v50 = vmul.f32 0.03125, %v349_v49 }
 0x2a7   :  { %v355_v51 = vadd.f32 1e-12, %v353_v50 }
 0x2a8   :  { %v352_v52 = vpop.xlane.xlu0 %351 }
 0x2a9   :  { %4450 = vrsqrt.f32 %v355_v51  ;;  %v354_v53 = vmul.f32 0.03125, %v352_v52 }
 0x2ab   :  { %v356_v54 = vadd.f32 1e-12, %v354_v53 }
 0x2ad   :  { %4452 = vrsqrt.f32 %v356_v54 }
 0x2b6   :  { %v4451_v55 = vpop.eup %4450 }
 0x2b7   :  { %v359_v56 = vmul.f32 %v4451_v55, %v343_v40 }
 0x2b9   :  { %v367_v60 = vmul.f32 %v3765_v57, %v359_v56  ;;  %v377_v56 = vld [vmem:[%s5529_s3] sm:$0x1] }
 0x2ba   :  { %v4453_v58 = vpop.eup %4452 }
 0x2bb   :  { %v360_v59 = vmul.f32 %v4453_v58, %v344_v39  ;;  %v4834_v63 = vadd.f32 %v3766_v61, %v367_v60  ;;  %v378_v58 = vld [vmem:[%s5529_s3 + $0x1] sm:$0x1] }
 0x2bd   :  { %v368_v62 = vmul.f32 %v3765_v57, %v360_v59  ;;  %v379_v57 = vcvt.s32.f32 %v377_v56  ;;  %v4941_v59 = vshrl.u32 %v119_v14, 7 }
 0x2bf   :  { %v4836_v0 = vadd.f32 %v3766_v61, %v368_v62  ;;  %v381_v60 = vsub.f32 1.0, %v379_v57  ;;  %v380_v61 = vcvt.s32.f32 %v378_v58 }
 0x2c1   :  { %v385_v2 = vpack.c.bf16 %v4836_v0, %v4834_v63  ;;  %v4943_v62 = vmul.f32 -1e+09, %v381_v60 }
 0x2c3   :  { %4080 = vmatmul.mubr.msk.bf16.vlgmr.msra.gmra.mxu0 %vm333_vm7, %v385_v2  ;;  %4096 = vmatmul.mubr.msk.bf16.vlgmr.msra.gmra.mxu1 %vm333_vm7, %v385_v2 }
 0x2c4   :  { %4084 = vmatpush3.bf16.msra.mxu0 %v4430_v1  ;;  %4087 = vmatprep.mubr.msk.bf16.mxu0 %vm4605_vm8, %v4604_v11  ;;  %v4946_v1 = vsub.s32 0, %v4941_v59 }
 0x2c5   :  { %4085 = vmatprep.subr.bf16.mxu0 %v4604_v11  ;;  %4107 = vmatprep.mubr.msk.bf16.mxu1 %vm4605_vm8, %v4604_v11 }
 0x2c8   :  { %4086 = vmatpush3.bf16.msra.mxu0 %v4431_v3  ;;  %v1005_v3 = vrot.slane %v4943_v62, %v4946_v1 }
 0x2c9   :  { %4099 = vmatprep.subr.bf16.mxu0 %v4604_v11 }
 0x2cb   :  { %4088 = vmatmul.mubr.msk.bf16.vlgmr.msra.gmra.mxu0 %vm333_vm7, %v385_v2  ;;  %v382_v2 = vsub.f32 1.0, %v380_v61 }
 0x2cc   :  { %4101 = vmatprep.mubr.msk.bf16.mxu0 %vm4605_vm8, %v4604_v11 }
 0x383   :  { %v446_v4 = vpop.f32.mrf.mxu0  ;;  %v4857_v5 = vpop.f32.mrf.mxu1 }
 0x384   :  { %v447_v20 = vadd.f32 %v3767_v16, %v446_v4  ;;  %v587_v45 = vadd.f32 %v3779_v42, %v4857_v5  ;;  %v4950_v4 = vmul.f32 -1e+09, %v382_v2 }
 0x385   :  { %v4081_v6 = vpop.f32.mrf.mxu0  ;;  %v4097_v7 = vpop.f32.mrf.mxu1 }
 0x386   :  { %v3912_v26 = vpack.c.bf16 %v447_v20, %v447_v20  ;;  %v4915_v50 = vpack.c.bf16 %v587_v45, %v587_v45  ;;  %v1009_v14 = vrot.slane %v4950_v4, %v4946_v1 }
 0x387   :  { %v449_v8 = vpop.f32.mrf.mxu0  ;;  %v4859_v9 = vpop.f32.mrf.mxu1 }
 0x388   :  { %v450_v27 = vadd.f32 %v3767_v16, %v449_v8  ;;  %v590_v48 = vadd.f32 %v3779_v42, %v4859_v9  ;;  %v1121_v53 = vsel %vm1119_vm10, %v4915_v50, 0 }
 0x389   :  { %v4082_v10 = vpop.f32.mrf.mxu0  ;;  %v4098_v12 = vpop.f32.mrf.mxu1 }
 0x38a   :  { %v3913_v30 = vpack.c.bf16 %v450_v27, %v450_v27  ;;  %v4920_v51 = vpack.c.bf16 %v590_v48, %v590_v48 }
 0x38b   :  { %v516_v17 = vpop.f32.mrf.mxu0 }
 0x38c   :  { %v517_v18 = vadd.f32 %v3773_v13, %v516_v17  ;;  %v1167_v55 = vsel %vm1119_vm10, %v4920_v51, 0 }
 0x38d   :  { %v4089_v19 = vpop.f32.mrf.mxu0 }
 0x38e   :  { %v3914_v21 = vpack.c.bf16 %v517_v18, %v517_v18 }
 0x38f   :  { %v519_v22 = vpop.f32.mrf.mxu0 }
 0x390   :  { %v520_v23 = vadd.f32 %v3773_v13, %v519_v22  ;;  %694 = vrot.lane.b32.xlu1 %v3914_v21, %s4606_s2  ;;  %v604_v24 = vsel %vm599_vm9, %v3914_v21, 0 }
 0x391   :  { %v4090_v25 = vpop.f32.mrf.mxu0  ;;  %4100 = vmatpush3.bf16.xpose.msra.mxu0 %v604_v24 }
 0x392   :  { %v3915_v28 = vpack.c.bf16 %v520_v23, %v520_v23  ;;  %4111 = vmatprep.subr.bf16.mxu0 %v4604_v11 }
 0x394   :  { %692 = vrot.lane.b32.xlu1 %v3912_v26, %s4606_s2  ;;  %744 = vrot.lane.b32.xlu0 %v3915_v28, %s4606_s2  ;;  %v650_v29 = vsel %vm599_vm9, %v3915_v28, 0 }
 0x395   :  { %4106 = vmatpush3.bf16.xpose.msra.mxu1 %v650_v29 }
 0x396   :  { %4117 = vmatprep.subr.bf16.mxu1 %v4604_v11 }
 0x398   :  { %742 = vrot.lane.b32.xlu1 %v3913_v30, %s4606_s2  ;;  %4102 = vmatmul.mubr.msk.bf16.vlgmr.msra.gmra.mxu0 %vm599_vm9, %v3912_v26 }
 0x399   :  { %794 = vrot.lane.b32.xlu0 %v3914_v21, %s4607_s5  ;;  %4113 = vmatprep.mubr.msk.bf16.mxu0 %vm4605_vm8, %v4604_v11 }
 0x39c   :  { %844 = vrot.lane.b32.xlu1 %v3915_v28, %s4607_s5  ;;  %4108 = vmatmul.mubr.msk.bf16.vlgmr.msra.gmra.mxu1 %vm599_vm9, %v3913_v30 }
 0x39d   :  { %792 = vrot.lane.b32.xlu0 %v3912_v26, %s4607_s5  ;;  %4119 = vmatprep.mubr.msk.bf16.mxu1 %vm4605_vm8, %v4604_v11 }
 0x3a0   :  { %842 = vrot.lane.b32.xlu1 %v3913_v30, %s4607_s5 }
 0x3a1   :  { %894 = vrot.lane.b32.xlu0 %v3914_v21, %s4608_s10 }
 0x3a4   :  { %944 = vrot.lane.b32.xlu1 %v3915_v28, %s4608_s10 }
 0x3a5   :  { %892 = vrot.lane.b32.xlu0 %v3912_v26, %s4608_s10 }
 0x3a8   :  { %942 = vrot.lane.b32.xlu1 %v3913_v30, %s4608_s10 }
 0x402   :  { %v695_v31 = vpop.permute.xlu1 %694 }
 0x403   :  { %v700_v32 = vsel %vm599_vm9, %v695_v31, 0 }
 0x404   :  { %4112 = vmatpush3.bf16.xpose.msra.mxu0 %v700_v32 }
 0x405   :  { %4123 = vmatprep.subr.bf16.mxu0 %v4604_v11 }
 0x406   :  { %v693_v33 = vpop.permute.xlu1 %692  ;;  %v745_v34 = vpop.permute.xlu0 %744 }
 0x407   :  { %v750_v35 = vsel %vm599_vm9, %v745_v34, 0 }
 0x408   :  { %4118 = vmatpush3.bf16.xpose.msra.mxu1 %v750_v35 }
 0x409   :  { %4129 = vmatprep.subr.bf16.mxu1 %v4604_v11 }
 0x40a   :  { %v743_v36 = vpop.permute.xlu1 %742 }
 0x40b   :  { %v795_v37 = vpop.permute.xlu0 %794  ;;  %4114 = vmatmul.mubr.msk.bf16.vlgmr.msra.gmra.mxu0 %vm599_vm9, %v693_v33 }
 0x40c   :  { %v800_v38 = vsel %vm599_vm9, %v795_v37, 0  ;;  %4125 = vmatprep.mubr.msk.bf16.mxu0 %vm4605_vm8, %v4604_v11 }
 0x40d   :  { %4124 = vmatpush3.bf16.xpose.msra.mxu0 %v800_v38 }
 0x40e   :  { %v845_v39 = vpop.permute.xlu1 %844  ;;  %4135 = vmatprep.subr.bf16.mxu0 %v4604_v11 }
 0x40f   :  { %v850_v40 = vsel %vm599_vm9, %v845_v39, 0  ;;  %v793_v41 = vpop.permute.xlu0 %792  ;;  %4120 = vmatmul.mubr.msk.bf16.vlgmr.msra.gmra.mxu1 %vm599_vm9, %v743_v36 }
 0x410   :  { %4130 = vmatpush3.bf16.xpose.msra.mxu1 %v850_v40  ;;  %4131 = vmatprep.mubr.msk.bf16.mxu1 %vm4605_vm8, %v4604_v11 }
 0x411   :  { %4141 = vmatprep.subr.bf16.mxu1 %v4604_v11 }
 0x412   :  { %v843_v43 = vpop.permute.xlu1 %842 }
 0x413   :  { %v895_v44 = vpop.permute.xlu0 %894 }
 0x414   :  { %v900_v46 = vsel %vm599_vm9, %v895_v44, 0  ;;  %4126 = vmatmul.mubr.msk.bf16.vlgmr.msra.gmra.mxu0 %vm599_vm9, %v793_v41 }
 0x415   :  { %4136 = vmatpush3.bf16.xpose.msra.mxu0 %v900_v46  ;;  %4137 = vmatprep.mubr.msk.bf16.mxu0 %vm4605_vm8, %v4604_v11 }
 0x416   :  { %v945_v47 = vpop.permute.xlu1 %944  ;;  %4147 = vmatprep.subr.bf16.mxu0 %v4604_v11 }
 0x417   :  { %v950_v49 = vsel %vm599_vm9, %v945_v47, 0  ;;  %4132 = vmatmul.mubr.msk.bf16.vlgmr.msra.gmra.mxu1 %vm599_vm9, %v843_v43  ;;  %v893_v52 = vpop.permute.xlu0 %892 }
 0x418   :  { %4142 = vmatpush3.bf16.xpose.msra.mxu1 %v950_v49  ;;  %4143 = vmatprep.mubr.msk.bf16.mxu1 %vm4605_vm8, %v4604_v11 }
 0x419   :  { %4153 = vmatprep.subr.bf16.mxu1 %v4604_v11 }
 0x41a   :  { %v943_v54 = vpop.permute.xlu1 %942 }
 0x41c   :  { %4138 = vmatmul.mubr.msk.bf16.vlgmr.msra.gmra.mxu0 %vm599_vm9, %v893_v52 }
 0x41d   :  { %4148 = vmatpush3.bf16.msra.mxu0 %v1121_v53  ;;  %4149 = vmatprep.mubr.msk.bf16.mxu0 %vm4605_vm8, %v4604_v11 }
 0x41e   :  { %4159 = vmatprep.subr.bf16.mxu0 %v4604_v11 }
 0x41f   :  { %4144 = vmatmul.mubr.msk.bf16.vlgmr.msra.gmra.mxu1 %vm599_vm9, %v943_v54 }
 0x420   :  { %4154 = vmatpush3.bf16.msra.mxu1 %v1167_v55  ;;  %4155 = vmatprep.mubr.msk.bf16.mxu1 %vm4605_vm8, %v4604_v11 }
 0x421   :  { %4165 = vmatprep.subr.bf16.mxu1 %v4604_v11 }
 0x458   :  { %v640_v5 = vpop.f32.mrf.mxu0 }
 0x459   :  { %v992_v6 = vmul.f32 0.35355338, %v640_v5 }
 0x45a   :  { %v4103_v7 = vpop.f32.mrf.mxu0 }
 0x45b   :  { %v4952_v8 = vadd.f32 %v1005_v3, %v992_v6 }
 0x45c   :  { %v643_v9 = vpop.f32.mrf.mxu0  ;;  %v686_v10 = vpop.f32.mrf.mxu1 }
 0x45d   :  { %v993_v12 = vmul.f32 0.35355338, %v686_v10  ;;  %v1020_v13 = vsel %vm599_vm9, %v4952_v8, -inf }
 0x45e   :  { %v4109_v16 = vpop.f32.mrf.mxu1  ;;  %1021 = vmax.xlane.f32.xlu0 %v1020_v13  ;;  %v4104_v17 = vpop.f32.mrf.mxu0 }
 0x45f   :  { %v1013_v18 = vadd.f32 %v1009_v14, %v993_v12 }
 0x460   :  { %v689_v19 = vpop.f32.mrf.mxu1 }
 0x461   :  { %v1023_v20 = vsel %vm599_vm9, %v1013_v18, -inf }
 0x462   :  { %1024 = vmax.xlane.f32.xlu1 %v1023_v20  ;;  %v4110_v21 = vpop.f32.mrf.mxu1 }
 0x4cb   :  { %v736_v22 = vpop.f32.mrf.mxu0 }
 0x4cc   :  { %v994_v23 = vmul.f32 0.35355338, %v736_v22 }
 0x4cd   :  { %v4115_v24 = vpop.f32.mrf.mxu0 }
 0x4ce   :  { %v1014_v25 = vadd.f32 %v1005_v3, %v994_v23 }
 0x4cf   :  { %v739_v26 = vpop.f32.mrf.mxu0  ;;  %v786_v27 = vpop.f32.mrf.mxu1 }
 0x4d0   :  { %v995_v28 = vmul.f32 0.35355338, %v786_v27  ;;  %v1026_v29 = vsel %vm599_vm9, %v1014_v25, -inf }
 0x4d1   :  { %v4121_v30 = vpop.f32.mrf.mxu1  ;;  %1027 = vmax.xlane.f32.xlu0 %v1026_v29  ;;  %v4116_v31 = vpop.f32.mrf.mxu0 }
 0x4d2   :  { %v1015_v32 = vadd.f32 %v1009_v14, %v995_v28 }
 0x4d3   :  { %v789_v33 = vpop.f32.mrf.mxu1 }
 0x4d4   :  { %v836_v34 = vpop.f32.mrf.mxu0  ;;  %v1029_v35 = vsel %vm599_vm9, %v1015_v32, -inf }
 0x4d5   :  { %v996_v36 = vmul.f32 0.35355338, %v836_v34  ;;  %v4122_v37 = vpop.f32.mrf.mxu1  ;;  %1030 = vmax.xlane.f32.xlu0 %v1029_v35 }
 0x4d6   :  { %v4127_v38 = vpop.f32.mrf.mxu0 }
 0x4d7   :  { %v886_v39 = vpop.f32.mrf.mxu1  ;;  %v4961_v40 = vadd.f32 %v1005_v3, %v996_v36 }
 0x4d8   :  { %v839_v41 = vpop.f32.mrf.mxu0  ;;  %v997_v42 = vmul.f32 0.35355338, %v886_v39 }
 0x4d9   :  { %v4133_v43 = vpop.f32.mrf.mxu1  ;;  %v1032_v44 = vsel %vm599_vm9, %v4961_v40, -inf }
 0x4da   :  { %1033 = vmax.xlane.f32.xlu1 %v1032_v44  ;;  %v4128_v45 = vpop.f32.mrf.mxu0  ;;  %v4965_v46 = vadd.f32 %v1009_v14, %v997_v42 }
 0x4db   :  { %v889_v47 = vpop.f32.mrf.mxu1 }
 0x4dc   :  { %v936_v48 = vpop.f32.mrf.mxu0  ;;  %v1035_v49 = vsel %vm599_vm9, %v4965_v46, -inf }
 0x4dd   :  { %v998_v52 = vmul.f32 0.35355338, %v936_v48  ;;  %v4134_v53 = vpop.f32.mrf.mxu1  ;;  %1036 = vmax.xlane.f32.xlu0 %v1035_v49 }
 0x4de   :  { %v4139_v54 = vpop.f32.mrf.mxu0 }
 0x4df   :  { %v986_v55 = vpop.f32.mrf.mxu1  ;;  %v1018_v56 = vadd.f32 %v1005_v3, %v998_v52 }
 0x4e0   :  { %v939_v57 = vpop.f32.mrf.mxu0  ;;  %v999_v58 = vmul.f32 0.35355338, %v986_v55 }
 0x4e1   :  { %v4145_v60 = vpop.f32.mrf.mxu1  ;;  %v1038_v61 = vsel %vm599_vm9, %v1018_v56, -inf }
 0x4e2   :  { %1039 = vmax.xlane.f32.xlu1 %v1038_v61  ;;  %v4140_v2 = vpop.f32.mrf.mxu0  ;;  %v1019_v5 = vadd.f32 %v1009_v14, %v999_v58 }
 0x4e3   :  { %v989_v6 = vpop.f32.mrf.mxu1 }
 0x4e4   :  { %v1041_v7 = vsel %vm599_vm9, %v1019_v5, -inf }
 0x4e5   :  { %v4146_v9 = vpop.f32.mrf.mxu1  ;;  %1042 = vmax.xlane.f32.xlu0 %v1041_v7 }
 0x4e7   :  { %v1022_v3 = vpop.xlane.xlu0 %1021 }
 0x4e8   :  { %v1044_v17 = vsub.f32 %v4952_v8, %v1022_v3 }
 0x4ea   :  { %v1052_v14 = vmul.f32 1.442695, %v1044_v17 }
 0x4eb   :  { %v1025_v10 = vpop.xlane.xlu1 %1024 }
 0x4ec   :  { %v1045_v12 = vsub.f32 %v1013_v18, %v1025_v10 }
 0x4ee   :  { %v1054_v13 = vmul.f32 1.442695, %v1045_v12 }
 0x4f0   :  { %4454 = vpow2.f32 %v1054_v13 }
 0x4f1   :  { %4456 = vpow2.f32 %v1052_v14 }
 0x4f3   :  { %1209 = vrot.lane.b32.xlu1 %v4915_v50, %s4606_s2 }
 0x4fd   :  { %v4455_v16 = vpop.eup %4454 }
 0x4fe   :  { %v1071_v19 = vsel %vm599_vm9, %v4455_v16, 0.0  ;;  %v4457_v20 = vpop.eup %4456 }
 0x4ff   :  { %1072 = vadd.xlane.f32.xlu0 %v1071_v19  ;;  %v1068_v21 = vsel %vm599_vm9, %v4457_v20, 0.0 }
 0x517   :  { %1069 = vadd.xlane.f32.xlu1 %v1068_v21 }
 0x55a   :  { %v1028_v22 = vpop.xlane.xlu0 %1027 }
 0x55b   :  { %v1046_v18 = vsub.f32 %v1014_v25, %v1028_v22 }
 0x55d   :  { %v1056_v23 = vmul.f32 1.442695, %v1046_v18 }
 0x55e   :  { %v1031_v24 = vpop.xlane.xlu0 %1030 }
 0x55f   :  { %4458 = vpow2.f32 %v1056_v23  ;;  %v1047_v26 = vsub.f32 %v1015_v32, %v1031_v24 }
 0x561   :  { %v1058_v27 = vmul.f32 1.442695, %v1047_v26 }
 0x563   :  { %4460 = vpow2.f32 %v1058_v27  ;;  %v1034_v33 = vpop.xlane.xlu1 %1033 }
 0x564   :  { %v1048_v34 = vsub.f32 %v4961_v40, %v1034_v33 }
 0x566   :  { %v1037_v25 = vpop.xlane.xlu0 %1036  ;;  %v1060_v37 = vmul.f32 1.442695, %v1048_v34 }
 0x567   :  { %v1049_v35 = vsub.f32 %v4965_v46, %v1037_v25 }
 0x569   :  { %v1062_v39 = vmul.f32 1.442695, %v1049_v35 }
 0x56b   :  { %v1040_v36 = vpop.xlane.xlu1 %1039 }
 0x56c   :  { %v4976_v28 = vpop.eup %4458  ;;  %v1050_v38 = vsub.f32 %v1018_v56, %v1040_v36  ;;  %v1501_v36 = vld [vmem:[%s5492_s16] sm:$0xf] }
 0x56d   :  { %v1074_v8 = vsel %vm599_vm9, %v4976_v28, 0.0 }
 0x56e   :  { %1075 = vadd.xlane.f32.xlu1 %v1074_v8  ;;  %v1043_v31 = vpop.xlane.xlu0 %1042  ;;  %v1064_v42 = vmul.f32 1.442695, %v1050_v38 }
 0x56f   :  { %v1051_v41 = vsub.f32 %v1019_v5, %v1043_v31  ;;  %v1210_v48 = vpop.permute.xlu1 %1209 }
 0x570   :  { %v4980_v29 = vpop.eup %4460  ;;  %v1215_v2 = vsel %vm1119_vm10, %v1210_v48, 0 }
 0x571   :  { %v1077_v30 = vsel %vm599_vm9, %v4980_v29, 0.0  ;;  %v1066_v44 = vmul.f32 1.442695, %v1051_v41  ;;  %v1502_v41 = vld [vmem:[%s5492_s16 + $0x4] sm:$0xf] }
 0x572   :  { %1078 = vadd.xlane.f32.xlu0 %v1077_v30 }
 0x57f   :  { %1305 = vrot.lane.b32.xlu1 %v4915_v50, %s4607_s5 }
 0x583   :  { %1353 = vrot.lane.b32.xlu1 %v4920_v51, %s4607_s5 }
 0x588   :  { %1257 = vrot.lane.b32.xlu0 %v4920_v51, %s4606_s2  ;;  %v1073_v32 = vpop.xlane.xlu0 %1072 }
 0x589   :  { %4462 = vrcp.f32 %v1073_v32 }
 0x58a   :  { %4464 = vpow2.f32 %v1060_v37 }
 0x58b   :  { %4466 = vpow2.f32 %v1062_v39  ;;  %v1509_v39 = vsel %vm1119_vm10, %v1501_v36, 0 }
 0x58c   :  { %4468 = vpow2.f32 %v1064_v42  ;;  %v1556_v42 = vsel %vm1119_vm10, %v1502_v41, 0 }
 0x58d   :  { %4470 = vpow2.f32 %v1066_v44 }
 0x596   :  { %v4463_v43 = vpop.eup %4462 }
 0x597   :  { %v1101_v45 = vmul.f32 %v4463_v43, %v4455_v16  ;;  %v4465_v46 = vpop.eup %4464 }
 0x598   :  { %v4467_v49 = vpop.eup %4466  ;;  %v1080_v54 = vsel %vm599_vm9, %v4465_v46, 0.0 }
 0x599   :  { %v1109_v47 = vpack.c.bf16 %v1101_v45, %v1101_v45  ;;  %v4995_v52 = vpop.eup %4468  ;;  %v1083_v53 = vsel %vm599_vm9, %v4467_v49, 0.0 }
 0x59a   :  { %v4999_v55 = vpop.eup %4470  ;;  %v1086_v57 = vsel %vm599_vm9, %v4995_v52, 0.0 }
 0x59b   :  { %4156 = vmatmul.mubr.msk.bf16.vlgmr.msra.gmra.mxu1 %vm599_vm9, %v1109_v47  ;;  %v1089_v56 = vsel %vm599_vm9, %v4999_v55, 0.0 }
 0x59c   :  { %4167 = vmatprep.mubr.msk.bf16.mxu1 %vm4605_vm8, %v4604_v11 }
 0x5a0   :  { %v1070_v40 = vpop.xlane.xlu1 %1069 }
 0x5a1   :  { %4472 = vrcp.f32 %v1070_v40 }
 0x5a7   :  { %1084 = vadd.xlane.f32.xlu0 %v1083_v53  ;;  %1081 = vadd.xlane.f32.xlu1 %v1080_v54  ;;  %v1503_v53 = vld [vmem:[%s5492_s16 + $0x8] sm:$0xf] }
 0x5a8   :  { %v1603_v54 = vsel %vm1119_vm10, %v1503_v53, 0 }
 0x5ab   :  { %1090 = vadd.xlane.f32.xlu0 %v1089_v56  ;;  %1087 = vadd.xlane.f32.xlu1 %v1086_v57  ;;  %v1504_v57 = vld [vmem:[%s5492_s16 + $0xc] sm:$0xf] }
 0x5ae   :  { %v4473_v58 = vpop.eup %4472 }
 0x5af   :  { %v1100_v60 = vmul.f32 %v4473_v58, %v4457_v20 }
 0x5b1   :  { %v1108_v61 = vpack.c.bf16 %v1100_v60, %v1100_v60 }
 0x5b3   :  { %4150 = vmatmul.mubr.msk.bf16.vlgmr.msra.gmra.mxu0 %vm599_vm9, %v1108_v61 }
 0x5b4   :  { %4160 = vmatpush3.bf16.msra.mxu0 %v1215_v2  ;;  %4161 = vmatprep.mubr.msk.bf16.mxu0 %vm4605_vm8, %v4604_v11  ;;  %v1650_v2 = vsel %vm1119_vm10, %v1504_v57, 0 }
 0x5b5   :  { %4171 = vmatprep.subr.bf16.mxu0 %v4604_v11 }
 0x5bc   :  { %1449 = vrot.lane.b32.xlu1 %v4920_v51, %s4608_s10 }
 0x5c1   :  { %1401 = vrot.lane.b32.xlu0 %v4915_v50, %s4608_s10 }
 0x5f7   :  { %v1076_v5 = vpop.xlane.xlu1 %1075 }
 0x5f8   :  { %4474 = vrcp.f32 %v1076_v5 }
 0x5fb   :  { %v1079_v6 = vpop.xlane.xlu0 %1078  ;;  %v1306_v12 = vpop.permute.xlu1 %1305 }
 0x5fc   :  { %4476 = vrcp.f32 %v1079_v6  ;;  %v1311_v51 = vsel %vm1119_vm10, %v1306_v12, 0 }
 0x5ff   :  { %v1258_v7 = vpop.permute.xlu0 %1257  ;;  %v1354_v17 = vpop.permute.xlu1 %1353 }
 0x600   :  { %v1263_v9 = vsel %vm1119_vm10, %v1258_v7, 0  ;;  %v1359_v14 = vsel %vm1119_vm10, %v1354_v17, 0 }
 0x601   :  { %4166 = vmatpush3.bf16.msra.mxu1 %v1263_v9 }
 0x602   :  { %4177 = vmatprep.subr.bf16.mxu1 %v4604_v11 }
 0x605   :  { %v4475_v10 = vpop.eup %4474 }
 0x606   :  { %v1102_v13 = vmul.f32 %v4475_v10, %v4976_v28 }
 0x608   :  { %v1110_v3 = vpack.c.bf16 %v1102_v13, %v1102_v13 }
 0x609   :  { %v4477_v16 = vpop.eup %4476 }
 0x60a   :  { %4162 = vmatmul.mubr.msk.bf16.vlgmr.msra.gmra.mxu0 %vm599_vm9, %v1110_v3  ;;  %v1103_v50 = vmul.f32 %v4477_v16, %v4980_v29 }
 0x60b   :  { %4172 = vmatpush3.bf16.msra.mxu0 %v1311_v51  ;;  %4173 = vmatprep.mubr.msk.bf16.mxu0 %vm4605_vm8, %v4604_v11 }
 0x60c   :  { %v1111_v19 = vpack.c.bf16 %v1103_v50, %v1103_v50  ;;  %4183 = vmatprep.subr.bf16.mxu0 %v4604_v11 }
 0x60e   :  { %4168 = vmatmul.mubr.msk.bf16.vlgmr.msra.gmra.mxu1 %vm599_vm9, %v1111_v19 }
 0x60f   :  { %4178 = vmatpush3.bf16.msra.mxu1 %v1359_v14  ;;  %4179 = vmatprep.mubr.msk.bf16.mxu1 %vm4605_vm8, %v4604_v11 }
 0x610   :  { %4189 = vmatprep.subr.bf16.mxu1 %v4604_v11 }
 0x630   :  { %v1085_v20 = vpop.xlane.xlu0 %1084  ;;  %v1082_v21 = vpop.xlane.xlu1 %1081 }
 0x631   :  { %4478 = vrcp.f32 %v1085_v20 }
 0x632   :  { %4480 = vrcp.f32 %v1082_v21 }
 0x634   :  { %v1091_v22 = vpop.xlane.xlu0 %1090  ;;  %v1088_v18 = vpop.xlane.xlu1 %1087 }
 0x635   :  { %4482 = vrcp.f32 %v1091_v22 }
 0x636   :  { %4484 = vrcp.f32 %v1088_v18 }
 0x638   :  { %v1450_v27 = vpop.permute.xlu1 %1449  ;;  %v1402_v8 = vpop.permute.xlu0 %1401 }
 0x639   :  { %v1455_v32 = vsel %vm1119_vm10, %v1450_v27, 0  ;;  %v1407_v33 = vsel %vm1119_vm10, %v1402_v8, 0 }
 0x63e   :  { %v4479_v23 = vpop.eup %4478 }
 0x63f   :  { %v4481_v24 = vpop.eup %4480  ;;  %v1105_v26 = vmul.f32 %v4479_v23, %v4467_v49 }
 0x640   :  { %v1104_v28 = vmul.f32 %v4481_v24, %v4465_v46 }
 0x641   :  { %v1113_v29 = vpack.c.bf16 %v1105_v26, %v1105_v26 }
 0x642   :  { %v4483_v30 = vpop.eup %4482  ;;  %v1112_v25 = vpack.c.bf16 %v1104_v28, %v1104_v28 }
 0x643   :  { %v4485_v31 = vpop.eup %4484  ;;  %4180 = vmatmul.mubr.msk.bf16.vlgmr.msra.gmra.mxu1 %vm599_vm9, %v1113_v29  ;;  %v1107_v34 = vmul.f32 %v4483_v30, %v4999_v55 }
 0x644   :  { %4174 = vmatmul.mubr.msk.bf16.vlgmr.msra.gmra.mxu0 %vm599_vm9, %v1112_v25  ;;  %4190 = vmatpush3.bf16.msra.mxu1 %v1455_v32  ;;  %v1106_v35 = vmul.f32 %v4485_v31, %v4995_v52 }
 0x645   :  { %4184 = vmatpush3.bf16.msra.mxu0 %v1407_v33  ;;  %4185 = vmatprep.mubr.msk.bf16.mxu0 %vm4605_vm8, %v4604_v11  ;;  %v1115_v37 = vpack.c.bf16 %v1107_v34, %v1107_v34 }
 0x646   :  { %4191 = vmatprep.mubr.msk.bf16.mxu1 %vm4605_vm8, %v4604_v11  ;;  %4195 = vmatprep.subr.bf16.mxu0 %v4604_v11  ;;  %v1114_v38 = vpack.c.bf16 %v1106_v35, %v1106_v35 }
 0x647   :  { %4201 = vmatprep.subr.bf16.mxu1 %v4604_v11 }
 0x64b   :  { %4192 = vmatmul.mubr.msk.bf16.vlgmr.msra.gmra.mxu1 %vm599_vm9, %v1115_v37 }
 0x64c   :  { %4186 = vmatmul.mubr.msk.bf16.vlgmr.msra.gmra.mxu0 %vm599_vm9, %v1114_v38  ;;  %4203 = vmatprep.mubr.msk.bf16.mxu1 %vm4605_vm8, %v4604_v11 }
 0x64d   :  { %4196 = vmatpush3.bf16.msra.mxu0 %v1509_v39  ;;  %4197 = vmatprep.mubr.msk.bf16.mxu0 %vm4605_vm8, %v4604_v11 }
 0x64e   :  { %4207 = vmatprep.subr.bf16.mxu0 %v4604_v11  ;;  %4202 = vmatpush3.bf16.msra.mxu1 %v1556_v42  ;;  %v3805_v42 = vld [vmem:[%s5493_s17] ss:$0 sm:$0xff] }
 0x64f   :  { %4213 = vmatprep.subr.bf16.mxu1 %v4604_v11 }
 0x65b   :  { %v1203_v43 = vpop.f32.mrf.mxu1 }
 0x65d   :  { %v4157_v44 = vpop.f32.mrf.mxu1 }
 0x65f   :  { %v1206_v45 = vpop.f32.mrf.mxu1 }
 0x661   :  { %v4158_v47 = vpop.f32.mrf.mxu1 }
 0x673   :  { %v1157_v48 = vpop.f32.mrf.mxu0 }
 0x674   :  { %v1497_v40 = vpack.c.bf16 %v1203_v43, %v1157_v48 }
 0x675   :  { %v4151_v46 = vpop.f32.mrf.mxu0 }
 0x676   :  { %4198 = vmatmul.mubr.msk.bf16.vlgmr.msra.gmra.mxu0 %vm599_vm9, %v1497_v40 }
 0x677   :  { %v1160_v49 = vpop.f32.mrf.mxu0  ;;  %4209 = vmatprep.mubr.msk.bf16.mxu0 %vm4605_vm8, %v4604_v11  ;;  %4208 = vmatpush3.bf16.msra.mxu0 %v1603_v54 }
 0x678   :  { %4219 = vmatprep.subr.bf16.mxu0 %v4604_v11 }
 0x679   :  { %v4152_v52 = vpop.f32.mrf.mxu0 }
 0x6ca   :  { %v1251_v55 = vpop.f32.mrf.mxu0 }
 0x6cc   :  { %v4163_v56 = vpop.f32.mrf.mxu0 }
 0x6ce   :  { %v1254_v58 = vpop.f32.mrf.mxu0  ;;  %v1299_v60 = vpop.f32.mrf.mxu1 }
 0x6cf   :  { %v1498_v61 = vpack.c.bf16 %v1299_v60, %v1251_v55 }
 0x6d0   :  { %v4164_v5 = vpop.f32.mrf.mxu0  ;;  %v4169_v6 = vpop.f32.mrf.mxu1 }
 0x6d1   :  { %4204 = vmatmul.mubr.msk.bf16.vlgmr.msra.gmra.mxu1 %vm599_vm9, %v1498_v61 }
 0x6d2   :  { %v1302_v7 = vpop.f32.mrf.mxu1  ;;  %4214 = vmatpush3.bf16.msra.mxu1 %v1650_v2  ;;  %4215 = vmatprep.mubr.msk.bf16.mxu1 %vm4605_vm8, %v4604_v11 }
 0x6d3   :  { %4227 = vmatprep.subr.bf16.mxu1 %v4604_v11 }
 0x6d4   :  { %v4170_v9 = vpop.f32.mrf.mxu1 }
 0x703   :  { %v1395_v10 = vpop.f32.mrf.mxu1 }
 0x704   :  { %v1347_v12 = vpop.f32.mrf.mxu0 }
 0x705   :  { %v1499_v13 = vpack.c.bf16 %v1395_v10, %v1347_v12  ;;  %v4181_v3 = vpop.f32.mrf.mxu1  ;;  %v4433_v10 = vld [vmem:[%s5496_s20] sm:$0xff]  }
 0x706   :  { %v4175_v16 = vpop.f32.mrf.mxu0 }
 0x707   :  { %4210 = vmatmul.mubr.msk.bf16.vlgmr.msra.gmra.mxu0 %vm599_vm9, %v1499_v13  ;;  %v1398_v51 = vpop.f32.mrf.mxu1 }
 0x708   :  { %v1350_v50 = vpop.f32.mrf.mxu0  ;;  %4223 = vmatprep.mubr.msk.bf16.mxu0 %vm4605_vm8, %v4604_v11 }
 0x709   :  { %v4182_v17 = vpop.f32.mrf.mxu1 }
 0x70a   :  { %v4176_v19 = vpop.f32.mrf.mxu0 }
 0x70b   :  { %v1491_v14 = vpop.f32.mrf.mxu1 }
 0x70c   :  { %v1443_v20 = vpop.f32.mrf.mxu0 }
 0x70d   :  { %v1500_v21 = vpack.c.bf16 %v1491_v14, %v1443_v20  ;;  %v4193_v22 = vpop.f32.mrf.mxu1  ;;  %v3806_v14 = vld [vmem:[%s5494_s18] ss:$0 sm:$0xff] }
 0x70e   :  { %v4187_v18 = vpop.f32.mrf.mxu0 }
 0x70f   :  { %4216 = vmatmul.mubr.msk.bf16.vlgmr.msra.gmra.mxu1 %vm599_vm9, %v1500_v21  ;;  %v1494_v23 = vpop.f32.mrf.mxu1  ;;  %v3807_v18 = vld [vmem:[%s5495_s19] ss:$0 sm:$0xff] }
 0x710   :  { %v1446_v24 = vpop.f32.mrf.mxu0  ;;  %4235 = vmatprep.mubr.msk.bf16.mxu1 %vm4605_vm8, %v4604_v11 }
 0x711   :  { %v4194_v26 = vpop.f32.mrf.mxu1 }
 0x712   :  { %v4188_v27 = vpop.f32.mrf.mxu0 }
 0x736   :  { %v1545_v28 = vpop.f32.mrf.mxu0 }
 0x738   :  { %v4199_v8 = vpop.f32.mrf.mxu0 }
 0x739   :  { %v4435_v8 = vld [vmem:[%s5498_s22 + $0x10] sm:$0xff]  }
 0x73a   :  { %v1548_v29 = vpop.f32.mrf.mxu0 }
 0x73c   :  { %v4200_v30 = vpop.f32.mrf.mxu0 }
 0x73d   :  { %v4437_v30 = vld [vmem:[%s5498_s22] sm:$0xff]  }
 0x791   :  { %v1592_v25 = vpop.f32.mrf.mxu1 }
 0x792   :  { %v1693_v37 = vadd.f32 %v1592_v25, %v1545_v28  ;;  %v4434_v28 = vld [vmem:[%s5498_s22 + $0x18] sm:$0xff]   ;;  %v3808_v25 = vld [vmem:[%s5497_s21] ss:$0 sm:$0xff] }
 0x793   :  { %v4205_v31 = vpop.f32.mrf.mxu1  ;;  %4228 = vmatpush3.bf16.msra.mxu1 %v4434_v28 }
 0x794   :  { %4229 = vmatprep.subr.bf16.mxu1 %v4604_v11 }
 0x795   :  { %v1595_v32 = vpop.f32.mrf.mxu1 }
 0x796   :  { %v1694_v43 = vadd.f32 %v1595_v32, %v1548_v29  ;;  %v4436_v29 = vld [vmem:[%s5498_s22 + $0x8] sm:$0xff]  }
 0x797   :  { %v4206_v33 = vpop.f32.mrf.mxu1  ;;  %4230 = vmatpush3.bf16.msra.mxu1 %v4435_v8 }
 0x798   :  { %4231 = vmatprep.subr.bf16.mxu1 %v4604_v11 }
 0x79b   :  { %4232 = vmatpush3.bf16.msra.mxu1 %v4436_v29 }
 0x79c   :  { %4233 = vmatprep.subr.bf16.mxu1 %v4604_v11 }
 0x79f   :  { %4234 = vmatpush3.bf16.msra.mxu1 %v4437_v30 }
 0x7a0   :  { %4255 = vmatprep.subr.bf16.mxu1 %v4604_v11 }
 0x7c7   :  { %v1639_v34 = vpop.f32.mrf.mxu0 }
 0x7c8   :  { %v1695_v39 = vadd.f32 %v1693_v37, %v1639_v34 }
 0x7c9   :  { %v4211_v35 = vpop.f32.mrf.mxu0 }
 0x7cb   :  { %v1642_v36 = vpop.f32.mrf.mxu0 }
 0x7cc   :  { %v1696_v47 = vadd.f32 %v1694_v43, %v1642_v36 }
 0x7cd   :  { %v4212_v38 = vpop.f32.mrf.mxu0 }
 0x7cf   :  { %v1686_v41 = vpop.f32.mrf.mxu1 }
 0x7d0   :  { %v1697_v44 = vadd.f32 %v1695_v39, %v1686_v41 }
 0x7d1   :  { %v4217_v45 = vpop.f32.mrf.mxu1 }
 0x7d2   :  { %v1706_v48 = vadd.f32 %v3805_v42, %v1697_v44 }
 0x7d3   :  { %v1689_v40 = vpop.f32.mrf.mxu1 }
 0x7d4   :  { %v1698_v46 = vadd.f32 %v1696_v47, %v1689_v40  ;;  %v1708_v49 = vadd.f32 %v1706_v48, %v4834_v63 }
 0x7d5   :  { %v4218_v52 = vpop.f32.mrf.mxu1 }
 0x7d6   :  { %v1707_v53 = vadd.f32 %v3805_v42, %v1698_v46  ;;  %v1712_v54 = vsel %vm333_vm7, %v1708_v49, 0.0 }
 0x7d7   :  { %1713 = vadd.xlane.f32.xlu0 %v1712_v54 }
 0x7d8   :  { %v1709_v55 = vadd.f32 %v1707_v53, %v4836_v0  ;;  %v4432_v0 = vld [vmem:[%s5496_s20 + $0x8] sm:$0xff]  }
 0x7d9   :  { %4220 = vmatpush3.bf16.msra.mxu0 %v4432_v0 }
 0x7da   :  { %v1715_v56 = vsel %vm333_vm7, %v1709_v55, 0.0  ;;  %4221 = vmatprep.subr.bf16.mxu0 %v4604_v11 }
 0x7db   :  { %1716 = vadd.xlane.f32.xlu1 %v1715_v56 }
 0x7dd   :  { %4222 = vmatpush3.bf16.msra.mxu0 %v4433_v10 }
 0x7de   :  { %4239 = vmatprep.subr.bf16.mxu0 %v4604_v11 }
 0x860   :  { %v1714_v57 = vpop.xlane.xlu0 %1713 }
 0x861   :  { %v1718_v58 = vmul.f32 0.03125, %v1714_v57 }
 0x863   :  { %v1720_v60 = vsub.f32 %v1708_v49, %v1718_v58  ;;  %v3812_v58 = vld [vmem:[%s5499_s23] ss:$0 sm:$0xff] }
 0x864   :  { %v1717_v61 = vpop.xlane.xlu1 %1716 }
 0x865   :  { %v1719_v2 = vmul.f32 0.03125, %v1717_v61  ;;  %v1722_v5 = vmul.f32 %v1720_v60, %v1720_v60 }
 0x867   :  { %v1721_v6 = vsub.f32 %v1709_v55, %v1719_v2  ;;  %v1724_v7 = vsel %vm333_vm7, %v1722_v5, 0.0 }
 0x868   :  { %1725 = vadd.xlane.f32.xlu0 %v1724_v7 }
 0x869   :  { %v1723_v63 = vmul.f32 %v1721_v6, %v1721_v6 }
 0x86b   :  { %v1727_v9 = vsel %vm333_vm7, %v1723_v63, 0.0 }
 0x86c   :  { %1728 = vadd.xlane.f32.xlu0 %v1727_v9 }
 0x8f1   :  { %v1726_v12 = vpop.xlane.xlu0 %1725 }
 0x8f2   :  { %v1730_v13 = vmul.f32 0.03125, %v1726_v12 }
 0x8f4   :  { %v1732_v3 = vadd.f32 1e-12, %v1730_v13 }
 0x8f5   :  { %v1729_v16 = vpop.xlane.xlu0 %1728 }
 0x8f6   :  { %4486 = vrsqrt.f32 %v1732_v3  ;;  %v1731_v51 = vmul.f32 0.03125, %v1729_v16 }
 0x8f8   :  { %v1733_v50 = vadd.f32 1e-12, %v1731_v51 }
 0x8fa   :  { %4488 = vrsqrt.f32 %v1733_v50 }
 0x903   :  { %v4487_v17 = vpop.eup %4486 }
 0x904   :  { %v1736_v19 = vmul.f32 %v4487_v17, %v1720_v60 }
 0x906   :  { %v1744_v22 = vmul.f32 %v3806_v14, %v1736_v19 }
 0x907   :  { %v4489_v20 = vpop.eup %4488 }
 0x908   :  { %v1737_v21 = vmul.f32 %v4489_v20, %v1721_v6  ;;  %v1752_v24 = vadd.f32 %v3807_v18, %v1744_v22  ;;  %v4439_v22 = vld [vmem:[%s5488_s12 + $0x10] sm:$0xff]  }
 0x90a   :  { %v1745_v23 = vmul.f32 %v3806_v14, %v1737_v21  ;;  %v4438_v21 = vld [vmem:[%s5488_s12 + $0x18] sm:$0xff]  }
 0x90c   :  { %v1753_v26 = vadd.f32 %v3807_v18, %v1745_v23  ;;  %v4440_v18 = vld [vmem:[%s5528_s30 + $0x18] sm:$0xff]   ;;  %v4442_v23 = vld [vmem:[%s5528_s30 + $0x10] sm:$0xff]  }
 0x90e   :  { %v1754_v27 = vpack.c.bf16 %v1753_v26, %v1752_v24 }
 0x910   :  { %4224 = vmatmul.mubr.msk.bf16.vlgmr.msra.gmra.mxu0 %vm333_vm7, %v1754_v27 }
 0x911   :  { %4243 = vmatprep.mubr.msk.bf16.mxu0 %vm4605_vm8, %v4604_v11  ;;  %4240 = vmatpush3.bf16.msra.mxu0 %v4438_v21 }
 0x912   :  { %4241 = vmatprep.subr.bf16.mxu0 %v4604_v11 }
 0x915   :  { %4242 = vmatpush3.bf16.msra.mxu0 %v4439_v22 }
 0x916   :  { %4247 = vmatprep.subr.bf16.mxu0 %v4604_v11 }
 0x9d0   :  { %v1815_v31 = vpop.f32.mrf.mxu0 }
 0x9d1   :  { %v1816_v32 = vadd.f32 %v3808_v25, %v1815_v31 }
 0x9d2   :  { %v4225_v33 = vpop.f32.mrf.mxu0 }
 0x9d3   :  { %v1824_v34 = vmul.f32 0.044715, %v1816_v32  ;;  %v1822_v52 = vmul.f32 0.5, %v1816_v32 }
 0x9d4   :  { %v1818_v35 = vpop.f32.mrf.mxu0 }
 0x9d5   :  { %v1826_v36 = vmul.f32 %v1824_v34, %v1816_v32  ;;  %v1819_v37 = vadd.f32 %v3808_v25, %v1818_v35  ;;  %v3818_v25 = vld [vmem:[%s5500_s24] ss:$0 sm:$0xff] }
 0x9d6   :  { %v4226_v38 = vpop.f32.mrf.mxu0  ;;  %v3819_v34 = vld [vmem:[%s5501_s25] ss:$0 sm:$0xff] }
 0x9d7   :  { %v1828_v39 = vmul.f32 %v1826_v36, %v1816_v32  ;;  %v1825_v41 = vmul.f32 0.044715, %v1819_v37  ;;  %v1823_v53 = vmul.f32 0.5, %v1819_v37 }
 0x9d9   :  { %v1830_v42 = vadd.f32 %v1828_v39, %v1816_v32  ;;  %v1827_v43 = vmul.f32 %v1825_v41, %v1819_v37  ;;  %v4441_v39 = vld [vmem:[%s5490_s14 + $0x18] sm:$0xff]  }
 0x9db   :  { %v1832_v44 = vmul.f32 0.7978846, %v1830_v42  ;;  %v1829_v45 = vmul.f32 %v1827_v43, %v1819_v37 }
 0x9dd   :  { %4490 = vtanh.f32 %v1832_v44  ;;  %v1831_v47 = vadd.f32 %v1829_v45, %v1819_v37  ;;  %v4443_v45 = vld [vmem:[%s5490_s14 + $0x10] sm:$0xff]  }
 0x9df   :  { %v1833_v48 = vmul.f32 0.7978846, %v1831_v47 }
 0x9e1   :  { %4492 = vtanh.f32 %v1833_v48 }
 0x9ea   :  { %v4491_v40 = vpop.eup %4490 }
 0x9eb   :  { %v1836_v46 = vadd.f32 1.0, %v4491_v40 }
 0x9ed   :  { %v1838_v55 = vmul.f32 %v1836_v46, %v1822_v52 }
 0x9ee   :  { %v4493_v49 = vpop.eup %4492 }
 0x9ef   :  { %v1837_v54 = vadd.f32 1.0, %v4493_v49  ;;  %v3825_v49 = vld [vmem:[%s5489_s13 + $0x1] ss:$0 sm:$0xff] }
 0x9f1   :  { %v1839_v56 = vmul.f32 %v1837_v54, %v1823_v53  ;;  %v4609_v53 = vmov 1966171168  }
 0x9f2   :  { %v2200_v54 = vunpack.c.l.s4 %v4609_v53 }
 0x9f3   :  { %v1840_v57 = vpack.c.bf16 %v1839_v56, %v1838_v55 }
 0x9f5   :  { %4236 = vmatmul.mubr.msk.bf16.vlgmr.msra.gmra.mxu1 %vm1880_vm11, %v1840_v57 }
 0x9f6   :  { %4259 = vmatprep.mubr.msk.bf16.mxu1 %vm4605_vm8, %v4604_v11  ;;  %4256 = vmatpush3.bf16.msra.mxu1 %v4440_v18 }
 0x9f7   :  { %4257 = vmatprep.subr.bf16.mxu1 %v4604_v11 }
 0x9fa   :  { %4258 = vmatpush3.bf16.msra.mxu1 %v4442_v23 }
 0x9fb   :  { %4269 = vmatprep.subr.bf16.mxu1 %v4604_v11 }
 0xab5   :  { %v1918_v60 = vpop.f32.mrf.mxu1 }
 0xab6   :  { %v1919_v61 = vadd.f32 %v3812_v58, %v1918_v60  ;;  %v2201_v60 = vunpack.c.0.s8 %v2200_v54 }
 0xab7   :  { %v4237_v2 = vpop.f32.mrf.mxu1 }
 0xab8   :  { %v1925_v5 = vadd.f32 %v1919_v61, %v1752_v24 }
 0xab9   :  { %v1921_v6 = vpop.f32.mrf.mxu1 }
 0xaba   :  { %v1922_v7 = vadd.f32 %v3812_v58, %v1921_v6  ;;  %v1929_v63 = vsel %vm333_vm7, %v1925_v5, 0.0 }
 0xabb   :  { %1930 = vadd.xlane.f32.xlu0 %v1929_v63  ;;  %v4238_v9 = vpop.f32.mrf.mxu1 }
 0xabc   :  { %v1926_v0 = vadd.f32 %v1922_v7, %v1753_v26 }
 0xabe   :  { %v1932_v10 = vsel %vm333_vm7, %v1926_v0, 0.0 }
 0xabf   :  { %1933 = vadd.xlane.f32.xlu1 %v1932_v10 }
 0xb44   :  { %v1931_v12 = vpop.xlane.xlu0 %1930 }
 0xb45   :  { %v1935_v13 = vmul.f32 0.03125, %v1931_v12 }
 0xb47   :  { %v1937_v3 = vsub.f32 %v1925_v5, %v1935_v13  ;;  %v3847_v5 = vld [vmem:[%s5487_s11 + $0x1] ss:$0 sm:$0xff] }
 0xb48   :  { %v1934_v16 = vpop.xlane.xlu1 %1933 }
 0xb49   :  { %v1936_v51 = vmul.f32 0.03125, %v1934_v16  ;;  %v1939_v50 = vmul.f32 %v1937_v3, %v1937_v3 }
 0xb4b   :  { %v1938_v17 = vsub.f32 %v1926_v0, %v1936_v51  ;;  %v1941_v19 = vsel %vm333_vm7, %v1939_v50, 0.0  ;;  %v2204_v0 = vsub.s32 %v2201_v60, %v4941_v59 }
 0xb4c   :  { %1942 = vadd.xlane.f32.xlu0 %v1941_v19 }
 0xb4d   :  { %v1940_v14 = vmul.f32 %v1938_v17, %v1938_v17 }
 0xb4f   :  { %v1944_v20 = vsel %vm333_vm7, %v1940_v14, 0.0 }
 0xb50   :  { %1945 = vadd.xlane.f32.xlu1 %v1944_v20 }
 0xbd5   :  { %v1943_v24 = vpop.xlane.xlu0 %1942 }
 0xbd6   :  { %v1947_v26 = vmul.f32 0.03125, %v1943_v24 }
 0xbd8   :  { %v1949_v27 = vadd.f32 1e-12, %v1947_v26 }
 0xbd9   :  { %v1946_v28 = vpop.xlane.xlu1 %1945 }
 0xbda   :  { %4494 = vrsqrt.f32 %v1949_v27  ;;  %v1948_v8 = vmul.f32 0.03125, %v1946_v28 }
 0xbdc   :  { %v1950_v29 = vadd.f32 1e-12, %v1948_v8 }
 0xbde   :  { %4496 = vrsqrt.f32 %v1950_v29 }
 0xbe7   :  { %v4495_v30 = vpop.eup %4494 }
 0xbe8   :  { %v1953_v31 = vmul.f32 %v4495_v30, %v1937_v3 }
 0xbea   :  { %v1961_v32 = vmul.f32 %v3818_v25, %v1953_v31 }
 0xbeb   :  { %v4497_v33 = vpop.eup %4496 }
 0xbec   :  { %v1954_v35 = vmul.f32 %v4497_v33, %v1938_v17  ;;  %v5155_v37 = vadd.f32 %v3819_v34, %v1961_v32  ;;  %v3836_v33 = vld [vmem:[%s5491_s15 + $0x1] ss:$0 sm:$0xff] }
 0xbee   :  { %v1962_v36 = vmul.f32 %v3818_v25, %v1954_v35  ;;  %v2119_v42 = vpack.c.bf16 %v5155_v37, %v5155_v37 }
 0xbf0   :  { %v5157_v38 = vadd.f32 %v3819_v34, %v1962_v36  ;;  %v2136_v47 = vunpack.c.l.b16 %v2119_v42 }
 0xbf2   :  { %v1971_v41 = vpack.c.bf16 %v5157_v38, %v5155_v37  ;;  %v2120_v43 = vpack.c.bf16 %v5157_v38, %v5157_v38 }
 0xbf4   :  { %4244 = vmatmul.mubr.msk.bf16.vlgmr.msra.gmra.mxu0 %vm333_vm7, %v1971_v41  ;;  %v2137_v44 = vunpack.c.l.b16 %v2120_v43 }
 0xbf5   :  { %4248 = vmatpush3.bf16.msra.mxu0 %v4441_v39  ;;  %4251 = vmatprep.mubr.msk.bf16.mxu0 %vm4605_vm8, %v4604_v11 }
 0xbf6   :  { %4249 = vmatprep.subr.bf16.mxu0 %v4604_v11  ;;  %v2138_v48 = vrot.slane %v2137_v44, 7 }
 0xbf8   :  { %v2140_v40 = vsel %vm2139_vm12, %v2138_v48, %v2136_v47 }
 0xbf9   :  { %4250 = vmatpush3.bf16.msra.mxu0 %v4443_v45  ;;  %v2141_v46 = vpack.c.b16 %v2140_v40, %v2140_v40 }
 0xbfa   :  { %4263 = vmatprep.subr.bf16.mxu0 %v4604_v11 }
 0xbfb   :  { %4260 = vmatmul.mubr.msk.bf16.vlgmr.msra.gmra.mxu1 %vm333_vm7, %v2141_v46 }
 0xbfc   :  { %4252 = vmatmul.mubr.msk.bf16.vlgmr.msra.gmra.mxu0 %vm333_vm7, %v1971_v41  ;;  %4271 = vmatprep.mubr.msk.bf16.mxu1 %vm4605_vm8, %v4604_v11 }
 0xbfd   :  { %4265 = vmatprep.mubr.msk.bf16.mxu0 %vm4605_vm8, %v4604_v11 }
 0xcb4   :  { %v2034_v52 = vpop.f32.mrf.mxu0 }
 0xcb5   :  { %v2035_v55 = vadd.f32 %v3825_v49, %v2034_v52 }
 0xcb6   :  { %v4245_v56 = vpop.f32.mrf.mxu0 }
 0xcb7   :  { %v3918_v57 = vpack.c.bf16 %v2035_v55, %v2035_v55 }
 0xcb8   :  { %v2037_v58 = vpop.f32.mrf.mxu0 }
 0xcb9   :  { %v2038_v61 = vadd.f32 %v3825_v49, %v2037_v58  ;;  %2319 = vrot.lane.b32.xlu0 %v3918_v57, %s4606_s2  ;;  %v2224_v2 = vsel %vm599_vm9, %v3918_v57, 0 }
 0xcba   :  { %v4246_v6 = vpop.f32.mrf.mxu0  ;;  %4264 = vmatpush3.bf16.xpose.msra.mxu0 %v2224_v2 }
 0xcbb   :  { %v3919_v7 = vpack.c.bf16 %v2038_v61, %v2038_v61  ;;  %v2191_v63 = vpop.f32.mrf.mxu1  ;;  %4275 = vmatprep.subr.bf16.mxu0 %v4604_v11 }
 0xcbc   :  { %v2192_v9 = vadd.f32 %v3847_v5, %v2191_v63  ;;  %v5193_v10 = vpop.f32.mrf.mxu0 }
 0xcbd   :  { %v4261_v12 = vpop.f32.mrf.mxu1  ;;  %2369 = vrot.lane.b32.xlu1 %v3919_v7, %s4606_s2  ;;  %v2275_v13 = vsel %vm599_vm9, %v3919_v7, 0  ;;  %v2107_v42 = vadd.f32 %v3836_v33, %v5193_v10 }
 0xcbe   :  { %v2197_v3 = vpack.c.bf16 %v2192_v9, %v2192_v9  ;;  %v4253_v16 = vpop.f32.mrf.mxu0  ;;  %4270 = vmatpush3.bf16.xpose.msra.mxu1 %v2275_v13 }
 0xcbf   :  { %v2194_v51 = vpop.f32.mrf.mxu1  ;;  %4281 = vmatprep.subr.bf16.mxu1 %v4604_v11  ;;  %v5246_v47 = vpack.c.bf16 %v2107_v42, %v2107_v42 }
 0xcc0   :  { %v2205_v50 = vrot.slane %v2197_v3, %v2204_v0  ;;  %v2109_v17 = vpop.f32.mrf.mxu0 }
 0xcc1   :  { %v4262_v19 = vpop.f32.mrf.mxu1  ;;  %2469 = vrot.lane.b32.xlu1 %v3919_v7, %s4607_s5  ;;  %v2110_v35 = vadd.f32 %v3836_v33, %v2109_v17  ;;  %v2734_v46 = vsel %vm1119_vm10, %v5246_v47, 0 }
 0xcc2   :  { %v2212_v14 = vrot.slane %v2205_v50, %v2204_v0  ;;  %v4254_v59 = vpop.f32.mrf.mxu0 }
 0xcc3   :  { %v5239_v43 = vpack.c.bf16 %v2110_v35, %v2110_v35 }
 0xcc4   :  { %v2214_v20 = vunpack.i.h.s16 %v2212_v14  ;;  %v3851_v21 = vpack.i.b16 %v2212_v14, %v2212_v14 }
 0xcc5   :  { %v2780_v48 = vsel %vm1119_vm10, %v5239_v43, 0 }
 0xcc6   :  { %v2266_v22 = vpack.i.b16 %v2214_v20, %v2214_v20  ;;  %v2219_v18 = vrot.slane %v3851_v21, %v4946_v1 }
 0xcc8   :  { %2317 = vrot.lane.b32.xlu0 %v2219_v18, %s4606_s2  ;;  %4266 = vmatmul.mubr.msk.bf16.vlgmr.msra.gmra.mxu0 %vm599_vm9, %v2219_v18  ;;  %v2270_v23 = vrot.slane %v2266_v22, %v4946_v1 }
 0xcc9   :  { %4277 = vmatprep.mubr.msk.bf16.mxu0 %vm4605_vm8, %v4604_v11 }
 0xcca   :  { %2367 = vrot.lane.b32.xlu1 %v2270_v23, %s4606_s2  ;;  %4272 = vmatmul.mubr.msk.bf16.vlgmr.msra.gmra.mxu1 %vm599_vm9, %v2270_v23 }
 0xccb   :  { %4283 = vmatprep.mubr.msk.bf16.mxu1 %vm4605_vm8, %v4604_v11 }
 0xccc   :  { %2467 = vrot.lane.b32.xlu0 %v2270_v23, %s4607_s5 }
 0xcce   :  { %2419 = vrot.lane.b32.xlu1 %v3918_v57, %s4607_s5 }
 0xcd0   :  { %2417 = vrot.lane.b32.xlu0 %v2219_v18, %s4607_s5 }
 0xcd2   :  { %2569 = vrot.lane.b32.xlu1 %v3919_v7, %s4608_s10 }
 0xcd4   :  { %2567 = vrot.lane.b32.xlu0 %v2270_v23, %s4608_s10 }
 0xcd6   :  { %2519 = vrot.lane.b32.xlu1 %v3918_v57, %s4608_s10 }
 0xcda   :  { %2517 = vrot.lane.b32.xlu1 %v2219_v18, %s4608_s10 }
 0xd2b   :  { %v2320_v1 = vpop.permute.xlu0 %2319 }
 0xd2c   :  { %v2325_v24 = vsel %vm599_vm9, %v2320_v1, 0 }
 0xd2d   :  { %4276 = vmatpush3.bf16.xpose.msra.mxu0 %v2325_v24 }
 0xd2e   :  { %4287 = vmatprep.subr.bf16.mxu0 %v4604_v11 }
 0xd2f   :  { %v2370_v26 = vpop.permute.xlu1 %2369 }
 0xd30   :  { %v2375_v27 = vsel %vm599_vm9, %v2370_v26, 0 }
 0xd31   :  { %4282 = vmatpush3.bf16.xpose.msra.mxu1 %v2375_v27 }
 0xd32   :  { %4293 = vmatprep.subr.bf16.mxu1 %v4604_v11 }
 0xd33   :  { %v2470_v28 = vpop.permute.xlu1 %2469 }
 0xd34   :  { %v2475_v30 = vsel %vm599_vm9, %v2470_v28, 0 }
 0xd3a   :  { %v2318_v8 = vpop.permute.xlu0 %2317 }
 0xd3b   :  { %4278 = vmatmul.mubr.msk.bf16.vlgmr.msra.gmra.mxu0 %vm599_vm9, %v2318_v8 }
 0xd3c   :  { %v2368_v29 = vpop.permute.xlu1 %2367  ;;  %4289 = vmatprep.mubr.msk.bf16.mxu0 %vm4605_vm8, %v4604_v11 }
 0xd3d   :  { %4284 = vmatmul.mubr.msk.bf16.vlgmr.msra.gmra.mxu1 %vm599_vm9, %v2368_v29 }
 0xd3e   :  { %4294 = vmatpush3.bf16.xpose.msra.mxu1 %v2475_v30  ;;  %4295 = vmatprep.mubr.msk.bf16.mxu1 %vm4605_vm8, %v4604_v11  ;;  %v2468_v25 = vpop.permute.xlu0 %2467 }
 0xd3f   :  { %4305 = vmatprep.subr.bf16.mxu1 %v4604_v11 }
 0xd40   :  { %v2420_v31 = vpop.permute.xlu1 %2419 }
 0xd41   :  { %v2425_v32 = vsel %vm599_vm9, %v2420_v31, 0 }
 0xd42   :  { %4288 = vmatpush3.bf16.xpose.msra.mxu0 %v2425_v32  ;;  %v2418_v39 = vpop.permute.xlu0 %2417 }
 0xd43   :  { %4299 = vmatprep.subr.bf16.mxu0 %v4604_v11 }
 0xd44   :  { %v2570_v34 = vpop.permute.xlu1 %2569 }
 0xd45   :  { %v2575_v36 = vsel %vm599_vm9, %v2570_v34, 0  ;;  %4296 = vmatmul.mubr.msk.bf16.vlgmr.msra.gmra.mxu1 %vm599_vm9, %v2468_v25 }
 0xd46   :  { %4306 = vmatpush3.bf16.xpose.msra.mxu1 %v2575_v36  ;;  %4307 = vmatprep.mubr.msk.bf16.mxu1 %vm4605_vm8, %v4604_v11  ;;  %v2568_v45 = vpop.permute.xlu0 %2567 }
 0xd47   :  { %4317 = vmatprep.subr.bf16.mxu1 %v4604_v11 }
 0xd48   :  { %v2520_v41 = vpop.permute.xlu1 %2519 }
 0xd49   :  { %v2525_v44 = vsel %vm599_vm9, %v2520_v41, 0  ;;  %4290 = vmatmul.mubr.msk.bf16.vlgmr.msra.gmra.mxu0 %vm599_vm9, %v2418_v39 }
 0xd4a   :  { %4300 = vmatpush3.bf16.xpose.msra.mxu0 %v2525_v44  ;;  %4301 = vmatprep.mubr.msk.bf16.mxu0 %vm4605_vm8, %v4604_v11 }
 0xd4b   :  { %4311 = vmatprep.subr.bf16.mxu0 %v4604_v11 }
 0xd4c   :  { %v2518_v40 = vpop.permute.xlu1 %2517 }
 0xd4d   :  { %4308 = vmatmul.mubr.msk.bf16.vlgmr.msra.gmra.mxu1 %vm599_vm9, %v2568_v45 }
 0xd4e   :  { %4318 = vmatpush3.bf16.msra.mxu1 %v2780_v48  ;;  %4319 = vmatprep.mubr.msk.bf16.mxu1 %vm4605_vm8, %v4604_v11 }
 0xd4f   :  { %4329 = vmatprep.subr.bf16.mxu1 %v4604_v11 }
 0xd51   :  { %4302 = vmatmul.mubr.msk.bf16.vlgmr.msra.gmra.mxu0 %vm599_vm9, %v2518_v40 }
 0xd52   :  { %4312 = vmatpush3.bf16.msra.mxu0 %v2734_v46  ;;  %4313 = vmatprep.mubr.msk.bf16.mxu0 %vm4605_vm8, %v4604_v11 }
 0xd53   :  { %4323 = vmatprep.subr.bf16.mxu0 %v4604_v11 }
 0xd88   :  { %v2260_v49 = vpop.f32.mrf.mxu0 }
 0xd89   :  { %v2617_v52 = vmul.f32 0.35355338, %v2260_v49 }
 0xd8a   :  { %v4267_v53 = vpop.f32.mrf.mxu0  ;;  %v2311_v54 = vpop.f32.mrf.mxu1 }
 0xd8b   :  { %v2618_v55 = vmul.f32 0.35355338, %v2311_v54  ;;  %v2625_v56 = vadd.f32 %v2617_v52, %v4943_v62 }
 0xd8c   :  { %v2263_v57 = vpop.f32.mrf.mxu0  ;;  %v4273_v58 = vpop.f32.mrf.mxu1 }
 0xd8d   :  { %v2634_v60 = vsel %vm2633_vm13, %v2625_v56, -inf  ;;  %v5263_v61 = vadd.f32 %v2618_v55, %v4950_v4 }
 0xd8e   :  { %v2314_v2 = vpop.f32.mrf.mxu1  ;;  %2635 = vmax.xlane.f32.xlu1 %v2634_v60  ;;  %v4268_v5 = vpop.f32.mrf.mxu0 }
 0xd8f   :  { %v2637_v6 = vsel %vm2633_vm13, %v5263_v61, -inf }
 0xd90   :  { %2638 = vmax.xlane.f32.xlu0 %v2637_v6  ;;  %v4274_v7 = vpop.f32.mrf.mxu1 }
 0xdfb   :  { %v2361_v63 = vpop.f32.mrf.mxu0 }
 0xdfc   :  { %v2619_v10 = vmul.f32 0.35355338, %v2361_v63 }
 0xdfd   :  { %v4279_v9 = vpop.f32.mrf.mxu0  ;;  %v2411_v0 = vpop.f32.mrf.mxu1 }
 0xdfe   :  { %v2620_v12 = vmul.f32 0.35355338, %v2411_v0  ;;  %v2627_v19 = vadd.f32 %v2619_v10, %v4943_v62 }
 0xdff   :  { %v2364_v13 = vpop.f32.mrf.mxu0  ;;  %v4285_v3 = vpop.f32.mrf.mxu1 }
 0xe00   :  { %v2628_v16 = vadd.f32 %v2620_v12, %v4950_v4  ;;  %v2640_v21 = vsel %vm2633_vm13, %v2627_v19, -inf }
 0xe01   :  { %v4280_v51 = vpop.f32.mrf.mxu0  ;;  %v2414_v50 = vpop.f32.mrf.mxu1 }
 0xe02   :  { %v2643_v17 = vsel %vm2633_vm13, %v2628_v16, -inf }
 0xe03   :  { %2644 = vmax.xlane.f32.xlu0 %v2643_v17  ;;  %v4286_v14 = vpop.f32.mrf.mxu1 }
 0xe05   :  { %v2511_v59 = vpop.f32.mrf.mxu1 }
 0xe06   :  { %v2622_v20 = vmul.f32 0.35355338, %v2511_v59 }
 0xe07   :  { %v4297_v22 = vpop.f32.mrf.mxu1  ;;  %2641 = vmax.xlane.f32.xlu0 %v2640_v21 }
 0xe08   :  { %v2630_v18 = vadd.f32 %v2622_v20, %v4950_v4 }
 0xe09   :  { %v2461_v23 = vpop.f32.mrf.mxu0  ;;  %v2514_v1 = vpop.f32.mrf.mxu1 }
 0xe0a   :  { %v2621_v24 = vmul.f32 0.35355338, %v2461_v23  ;;  %v2649_v26 = vsel %vm2633_vm13, %v2630_v18, -inf }
 0xe0b   :  { %v4298_v27 = vpop.f32.mrf.mxu1  ;;  %2650 = vmax.xlane.f32.xlu1 %v2649_v26  ;;  %v4291_v28 = vpop.f32.mrf.mxu0 }
 0xe0c   :  { %v5274_v8 = vadd.f32 %v2621_v24, %v4943_v62 }
 0xe0d   :  { %v2464_v29 = vpop.f32.mrf.mxu0  ;;  %v2611_v30 = vpop.f32.mrf.mxu1 }
 0xe0e   :  { %v2624_v25 = vmul.f32 0.35355338, %v2611_v30  ;;  %v2646_v31 = vsel %vm2633_vm13, %v5274_v8, -inf }
 0xe0f   :  { %v4309_v32 = vpop.f32.mrf.mxu1  ;;  %2647 = vmax.xlane.f32.xlu0 %v2646_v31  ;;  %v4292_v33 = vpop.f32.mrf.mxu0 }
 0xe10   :  { %v2632_v34 = vadd.f32 %v2624_v25, %v4950_v4 }
 0xe11   :  { %v2561_v35 = vpop.f32.mrf.mxu0  ;;  %v2614_v36 = vpop.f32.mrf.mxu1 }
 0xe12   :  { %v2623_v39 = vmul.f32 0.35355338, %v2561_v35  ;;  %v2655_v41 = vsel %vm2633_vm13, %v2632_v34, -inf }
 0xe13   :  { %v4310_v42 = vpop.f32.mrf.mxu1  ;;  %2656 = vmax.xlane.f32.xlu1 %v2655_v41  ;;  %v4303_v44 = vpop.f32.mrf.mxu0 }
 0xe14   :  { %v5281_v45 = vadd.f32 %v2623_v39, %v4943_v62 }
 0xe15   :  { %v2564_v48 = vpop.f32.mrf.mxu0 }
 0xe16   :  { %v2652_v40 = vsel %vm2633_vm13, %v5281_v45, -inf }
 0xe17   :  { %v2636_v46 = vpop.xlane.xlu1 %2635  ;;  %2653 = vmax.xlane.f32.xlu0 %v2652_v40  ;;  %v4304_v49 = vpop.f32.mrf.mxu0 }
 0xe18   :  { %v2658_v52 = vsub.f32 %v2625_v56, %v2636_v46 }
 0xe19   :  { %v2639_v55 = vpop.xlane.xlu0 %2638 }
 0xe1a   :  { %v2666_v4 = vmul.f32 1.442695, %v2658_v52  ;;  %v2659_v62 = vsub.f32 %v5263_v61, %v2639_v55 }
 0xe1c   :  { %4498 = vpow2.f32 %v2666_v4  ;;  %v2668_v57 = vmul.f32 1.442695, %v2659_v62 }
 0xe1e   :  { %4500 = vpow2.f32 %v2668_v57 }
 0xe24   :  { %2870 = vrot.lane.b32.xlu1 %v5239_v43, %s4606_s2 }
 0xe29   :  { %v4499_v53 = vpop.eup %4498 }
 0xe2a   :  { %v2682_v54 = vsel %vm2633_vm13, %v4499_v53, 0.0 }
 0xe2b   :  { %2683 = vadd.xlane.f32.xlu0 %v2682_v54  ;;  %v4501_v58 = vpop.eup %4500 }
 0xe2c   :  { %v2685_v60 = vsel %vm2633_vm13, %v4501_v58, 0.0 }
 0xe48   :  { %2686 = vadd.xlane.f32.xlu1 %v2685_v60 }
 0xe59   :  { %2966 = vrot.lane.b32.xlu1 %v5239_v43, %s4607_s5 }
 0xe5d   :  { %2918 = vrot.lane.b32.xlu1 %v5246_v47, %s4607_s5 }
 0xe8c   :  { %v2645_v56 = vpop.xlane.xlu0 %2644 }
 0xe8d   :  { %v2661_v2 = vsub.f32 %v2628_v16, %v2645_v56 }
 0xe8f   :  { %v2672_v5 = vmul.f32 1.442695, %v2661_v2 }
 0xe90   :  { %v2642_v6 = vpop.xlane.xlu0 %2641 }
 0xe91   :  { %4502 = vpow2.f32 %v2672_v5  ;;  %v2660_v7 = vsub.f32 %v2627_v19, %v2642_v6 }
 0xe93   :  { %v2670_v63 = vmul.f32 1.442695, %v2660_v7 }
 0xe94   :  { %v2651_v61 = vpop.xlane.xlu1 %2650 }
 0xe95   :  { %4504 = vpow2.f32 %v2670_v63  ;;  %v2663_v9 = vsub.f32 %v2630_v18, %v2651_v61 }
 0xe97   :  { %v2676_v0 = vmul.f32 1.442695, %v2663_v9 }
 0xe98   :  { %v2648_v14 = vpop.xlane.xlu0 %2647 }
 0xe99   :  { %4506 = vpow2.f32 %v2676_v0  ;;  %v2662_v18 = vsub.f32 %v5274_v8, %v2648_v14 }
 0xe9b   :  { %v2674_v24 = vmul.f32 1.442695, %v2662_v18 }
 0xe9c   :  { %v2657_v10 = vpop.xlane.xlu1 %2656 }
 0xe9d   :  { %v2665_v12 = vsub.f32 %v2632_v34, %v2657_v10 }
 0xe9e   :  { %v4503_v13 = vpop.eup %4502 }
 0xe9f   :  { %v2680_v3 = vmul.f32 1.442695, %v2665_v12  ;;  %v2691_v51 = vsel %vm2633_vm13, %v4503_v13, 0.0 }
 0xea0   :  { %2692 = vadd.xlane.f32.xlu1 %v2691_v51  ;;  %v2654_v21 = vpop.xlane.xlu0 %2653  ;;  %v2871_v29 = vpop.permute.xlu1 %2870  ;;  %v3868_v51 = vld [vmem:[%s5492_s16 + $0x10] sm:$0xf] }
 0xea1   :  { %4508 = vpow2.f32 %v2680_v3  ;;  %v2664_v26 = vsub.f32 %v5281_v45, %v2654_v21  ;;  %v2876_v35 = vsel %vm1119_vm10, %v2871_v29, 0 }
 0xea2   :  { %v4505_v50 = vpop.eup %4504 }
 0xea3   :  { %v2688_v16 = vsel %vm2633_vm13, %v4505_v50, 0.0  ;;  %v2678_v28 = vmul.f32 1.442695, %v2664_v26 }
 0xea4   :  { %2689 = vadd.xlane.f32.xlu0 %v2688_v16  ;;  %v3134_v16 = vsel %vm1119_vm10, %v3868_v51, 0 }
 0xea6   :  { %v5296_v17 = vpop.eup %4506 }
 0xea7   :  { %v2697_v19 = vsel %vm2633_vm13, %v5296_v17, 0.0 }
 0xea8   :  { %2698 = vadd.xlane.f32.xlu1 %v2697_v19 }
 0xeae   :  { %v5300_v59 = vpop.eup %4508 }
 0xeaf   :  { %v2703_v20 = vsel %vm2633_vm13, %v5300_v59, 0.0 }
 0xeb0   :  { %2704 = vadd.xlane.f32.xlu1 %v2703_v20 }
 0xeb4   :  { %v2684_v22 = vpop.xlane.xlu0 %2683 }
 0xeb5   :  { %4510 = vrcp.f32 %v2684_v22 }
 0xeb6   :  { %4512 = vpow2.f32 %v2674_v24 }
 0xeb7   :  { %4514 = vpow2.f32 %v2678_v28 }
 0xeba   :  { %2822 = vrot.lane.b32.xlu0 %v5246_v47, %s4606_s2 }
 0xec1   :  { %3014 = vrot.lane.b32.xlu1 %v5246_v47, %s4608_s10 }
 0xec2   :  { %v4511_v23 = vpop.eup %4510 }
 0xec3   :  { %v2714_v1 = vmul.f32 %v4511_v23, %v4499_v53  ;;  %v5313_v8 = vpop.eup %4512 }
 0xec4   :  { %v2694_v47 = vsel %vm2633_vm13, %v5313_v8, 0.0  ;;  %v5317_v25 = vpop.eup %4514 }
 0xec5   :  { %v2722_v27 = vpack.c.bf16 %v2714_v1, %v2714_v1  ;;  %v2700_v31 = vsel %vm2633_vm13, %v5317_v25, 0.0 }
 0xec7   :  { %4314 = vmatmul.mubr.msk.bf16.vlgmr.msra.gmra.mxu0 %vm599_vm9, %v2722_v27 }
 0xec8   :  { %4325 = vmatprep.mubr.msk.bf16.mxu0 %vm4605_vm8, %v4604_v11 }
 0xed1   :  { %v2687_v30 = vpop.xlane.xlu1 %2686 }
 0xed2   :  { %4516 = vrcp.f32 %v2687_v30 }
 0xed5   :  { %v2967_v36 = vpop.permute.xlu1 %2966 }
 0xed9   :  { %2695 = vadd.xlane.f32.xlu0 %v2694_v47  ;;  %v2919_v39 = vpop.permute.xlu1 %2918  ;;  %v3870_v47 = vld [vmem:[%s5492_s16 + $0x18] sm:$0xf] }
 0xeda   :  { %v2924_v55 = vsel %vm1119_vm10, %v2919_v39, 0 }
 0xedd   :  { %2701 = vadd.xlane.f32.xlu0 %v2700_v31 }
 0xedf   :  { %v4517_v32 = vpop.eup %4516 }
 0xee0   :  { %v2715_v33 = vmul.f32 %v4517_v32, %v4501_v58 }
 0xee2   :  { %v2723_v34 = vpack.c.bf16 %v2715_v33, %v2715_v33 }
 0xee4   :  { %4320 = vmatmul.mubr.msk.bf16.vlgmr.msra.gmra.mxu1 %vm599_vm9, %v2723_v34 }
 0xee5   :  { %4330 = vmatpush3.bf16.msra.mxu1 %v2876_v35  ;;  %4331 = vmatprep.mubr.msk.bf16.mxu1 %vm4605_vm8, %v4604_v11 }
 0xee6   :  { %4341 = vmatprep.subr.bf16.mxu1 %v4604_v11 }
 0xef3   :  { %3062 = vrot.lane.b32.xlu0 %v5239_v43, %s4608_s10  ;;  %v2972_v43 = vsel %vm1119_vm10, %v2967_v36, 0 }
 0xf29   :  { %v2693_v41 = vpop.xlane.xlu1 %2692 }
 0xf2a   :  { %4518 = vrcp.f32 %v2693_v41 }
 0xf2d   :  { %v2690_v42 = vpop.xlane.xlu0 %2689 }
 0xf2e   :  { %4520 = vrcp.f32 %v2690_v42 }
 0xf31   :  { %v2699_v44 = vpop.xlane.xlu1 %2698  ;;  %v2823_v45 = vpop.permute.xlu0 %2822 }
 0xf32   :  { %4522 = vrcp.f32 %v2699_v44  ;;  %v2828_v48 = vsel %vm1119_vm10, %v2823_v45, 0 }
 0xf33   :  { %4324 = vmatpush3.bf16.msra.mxu0 %v2828_v48  ;;  %v3871_v48 = vld [vmem:[%s5492_s16 + $0x1c] sm:$0xf] }
 0xf34   :  { %4335 = vmatprep.subr.bf16.mxu0 %v4604_v11 }
 0xf37   :  { %v4519_v40 = vpop.eup %4518 }
 0xf38   :  { %v2717_v46 = vmul.f32 %v4519_v40, %v4503_v13 }
 0xf39   :  { %v2705_v58 = vpop.xlane.xlu1 %2704 }
 0xf3a   :  { %v2725_v49 = vpack.c.bf16 %v2717_v46, %v2717_v46  ;;  %4524 = vrcp.f32 %v2705_v58 }
 0xf3b   :  { %v4521_v52 = vpop.eup %4520 }
 0xf3c   :  { %4332 = vmatmul.mubr.msk.bf16.vlgmr.msra.gmra.mxu1 %vm599_vm9, %v2725_v49  ;;  %v2716_v4 = vmul.f32 %v4521_v52, %v4505_v50 }
 0xf3d   :  { %4342 = vmatpush3.bf16.msra.mxu1 %v2972_v43  ;;  %4343 = vmatprep.mubr.msk.bf16.mxu1 %vm4605_vm8, %v4604_v11  ;;  %v3015_v0 = vpop.permute.xlu1 %3014 }
 0xf3e   :  { %v2724_v53 = vpack.c.bf16 %v2716_v4, %v2716_v4  ;;  %4353 = vmatprep.subr.bf16.mxu1 %v4604_v11  ;;  %v3020_v13 = vsel %vm1119_vm10, %v3015_v0, 0 }
 0xf3f   :  { %v4523_v54 = vpop.eup %4522 }
 0xf40   :  { %4326 = vmatmul.mubr.msk.bf16.vlgmr.msra.gmra.mxu0 %vm599_vm9, %v2724_v53  ;;  %v2719_v62 = vmul.f32 %v4523_v54, %v5296_v17  ;;  %v3869_v17 = vld [vmem:[%s5492_s16 + $0x14] sm:$0xf]  ;;  %v3293_v53 = vsel %vm1119_vm10, %v3871_v48, 0 }
 0xf41   :  { %4336 = vmatpush3.bf16.msra.mxu0 %v2924_v55  ;;  %4337 = vmatprep.mubr.msk.bf16.mxu0 %vm4605_vm8, %v4604_v11  ;;  %v3187_v19 = vsel %vm1119_vm10, %v3869_v17, 0 }
 0xf42   :  { %v2727_v57 = vpack.c.bf16 %v2719_v62, %v2719_v62  ;;  %4347 = vmatprep.subr.bf16.mxu0 %v4604_v11 }
 0xf44   :  { %4344 = vmatmul.mubr.msk.bf16.vlgmr.msra.gmra.mxu1 %vm599_vm9, %v2727_v57 }
 0xf45   :  { %4355 = vmatprep.mubr.msk.bf16.mxu1 %vm4605_vm8, %v4604_v11 }
 0xf47   :  { %v4525_v56 = vpop.eup %4524 }
 0xf48   :  { %v2721_v5 = vmul.f32 %v4525_v56, %v5300_v59 }
 0xf4a   :  { %v2729_v63 = vpack.c.bf16 %v2721_v5, %v2721_v5 }
 0xf62   :  { %v2696_v60 = vpop.xlane.xlu0 %2695 }
 0xf63   :  { %4526 = vrcp.f32 %v2696_v60 }
 0xf66   :  { %v2702_v2 = vpop.xlane.xlu0 %2701 }
 0xf67   :  { %4528 = vrcp.f32 %v2702_v2 }
 0xf6a   :  { %v3063_v6 = vpop.permute.xlu0 %3062 }
 0xf6b   :  { %v3068_v7 = vsel %vm1119_vm10, %v3063_v6, 0 }
 0xf6c   :  { %4354 = vmatpush3.bf16.msra.mxu1 %v3068_v7 }
 0xf6d   :  { %4365 = vmatprep.subr.bf16.mxu1 %v4604_v11 }
 0xf6f   :  { %4356 = vmatmul.mubr.msk.bf16.vlgmr.msra.gmra.mxu1 %vm599_vm9, %v2729_v63 }
 0xf70   :  { %v4527_v61 = vpop.eup %4526  ;;  %4367 = vmatprep.mubr.msk.bf16.mxu1 %vm4605_vm8, %v4604_v11  ;;  %4366 = vmatpush3.bf16.msra.mxu1 %v3187_v19 }
 0xf71   :  { %v2718_v9 = vmul.f32 %v4527_v61, %v5313_v8  ;;  %4377 = vmatprep.subr.bf16.mxu1 %v4604_v11 }
 0xf73   :  { %v2726_v10 = vpack.c.bf16 %v2718_v9, %v2718_v9 }
 0xf74   :  { %v4529_v12 = vpop.eup %4528 }
 0xf75   :  { %4338 = vmatmul.mubr.msk.bf16.vlgmr.msra.gmra.mxu0 %vm599_vm9, %v2726_v10  ;;  %v2720_v3 = vmul.f32 %v4529_v12, %v5317_v25  ;;  %v3240_v25 = vsel %vm1119_vm10, %v3870_v47, 0 }
 0xf76   :  { %4348 = vmatpush3.bf16.msra.mxu0 %v3020_v13  ;;  %4349 = vmatprep.mubr.msk.bf16.mxu0 %vm4605_vm8, %v4604_v11 }
 0xf77   :  { %4359 = vmatprep.subr.bf16.mxu0 %v4604_v11  ;;  %v2728_v50 = vpack.c.bf16 %v2720_v3, %v2720_v3 }
 0xf7d   :  { %4350 = vmatmul.mubr.msk.bf16.vlgmr.msra.gmra.mxu0 %vm599_vm9, %v2728_v50 }
 0xf7e   :  { %4360 = vmatpush3.bf16.msra.mxu0 %v3134_v16  ;;  %4361 = vmatprep.mubr.msk.bf16.mxu0 %vm4605_vm8, %v4604_v11 }
 0xf7f   :  { %4371 = vmatprep.subr.bf16.mxu0 %v4604_v11 }
 0xf87   :  { %v2770_v14 = vpop.f32.mrf.mxu0 }
 0xf88   :  { %v3110_v18 = vpack.c.bf16 %v2770_v14, %v2770_v14 }
 0xf89   :  { %v4315_v59 = vpop.f32.mrf.mxu0 }
 0xf8a   :  { %v3125_v27 = vunpack.c.l.b16 %v3110_v18 }
 0xf8b   :  { %v2773_v20 = vpop.f32.mrf.mxu0 }
 0xf8d   :  { %v4316_v21 = vpop.f32.mrf.mxu0 }
 0xfa4   :  { %v2816_v22 = vpop.f32.mrf.mxu1 }
 0xfa5   :  { %v3111_v23 = vpack.c.bf16 %v2816_v22, %v2816_v22 }
 0xfa6   :  { %v4321_v1 = vpop.f32.mrf.mxu1 }
 0xfa7   :  { %v3126_v24 = vunpack.c.l.b16 %v3111_v23 }
 0xfa8   :  { %v2819_v26 = vpop.f32.mrf.mxu1 }
 0xfa9   :  { %v3127_v28 = vrot.slane %v3126_v24, 7 }
 0xfaa   :  { %v4322_v29 = vpop.f32.mrf.mxu1 }
 0xfab   :  { %v3128_v30 = vsel %vm2139_vm12, %v3127_v28, %v3125_v27 }
 0xfac   :  { %v3129_v8 = vpack.c.b16 %v3128_v30, %v3128_v30 }
 0xfae   :  { %4362 = vmatmul.mubr.msk.bf16.vlgmr.msra.gmra.mxu0 %vm599_vm9, %v3129_v8 }
 0xfaf   :  { %4373 = vmatprep.mubr.msk.bf16.mxu0 %vm4605_vm8, %v4604_v11  ;;  %4372 = vmatpush3.bf16.msra.mxu0 %v3240_v25 }
 0xfb0   :  { %4383 = vmatprep.subr.bf16.mxu0 %v4604_v11 }
 0xffc   :  { %v2912_v31 = vpop.f32.mrf.mxu1 }
 0xffd   :  { %v3113_v32 = vpack.c.bf16 %v2912_v31, %v2912_v31 }
 0xffe   :  { %v4333_v33 = vpop.f32.mrf.mxu1 }
 0xfff   :  { %v3179_v34 = vunpack.c.l.b16 %v3113_v32  ;;  %v3877_v33 = vld [vmem:[%s5493_s17 + $0x1] ss:$0 sm:$0xff] }
0x1000   :  { %v2864_v35 = vpop.f32.mrf.mxu0  ;;  %v2915_v36 = vpop.f32.mrf.mxu1 }
0x1001   :  { %v3112_v39 = vpack.c.bf16 %v2864_v35, %v2864_v35  ;;  %v3180_v44 = vrot.slane %v3179_v34, 7 }
0x1002   :  { %v4327_v41 = vpop.f32.mrf.mxu0  ;;  %v4334_v42 = vpop.f32.mrf.mxu1 }
0x1003   :  { %v3178_v45 = vunpack.c.l.b16 %v3112_v39 }
0x1004   :  { %v2867_v40 = vpop.f32.mrf.mxu0  ;;  %v3008_v46 = vpop.f32.mrf.mxu1 }
0x1005   :  { %v3181_v49 = vsel %vm2139_vm12, %v3180_v44, %v3178_v45  ;;  %v3115_v57 = vpack.c.bf16 %v3008_v46, %v3008_v46 }
0x1006   :  { %v3182_v52 = vpack.c.b16 %v3181_v49, %v3181_v49  ;;  %v4328_v43 = vpop.f32.mrf.mxu0  ;;  %v4345_v4 = vpop.f32.mrf.mxu1 }
0x1007   :  { %v3232_v56 = vunpack.c.l.b16 %v3115_v57 }
0x1008   :  { %v3011_v54 = vpop.f32.mrf.mxu1  ;;  %4368 = vmatmul.mubr.msk.bf16.vlgmr.msra.gmra.mxu1 %vm599_vm9, %v3182_v52 }
0x1009   :  { %4378 = vmatpush3.bf16.msra.mxu1 %v3293_v53  ;;  %4379 = vmatprep.mubr.msk.bf16.mxu1 %vm4605_vm8, %v4604_v11  ;;  %v3233_v63 = vrot.slane %v3232_v56, 7 }
0x100a   :  { %v4346_v55 = vpop.f32.mrf.mxu1  ;;  %4391 = vmatprep.subr.bf16.mxu1 %v4604_v11 }
0x102f   :  { %v3104_v62 = vpop.f32.mrf.mxu1 }
0x1030   :  { %v3117_v61 = vpack.c.bf16 %v3104_v62, %v3104_v62 }
0x1031   :  { %v4357_v58 = vpop.f32.mrf.mxu1 }
0x1032   :  { %v3285_v3 = vunpack.c.l.b16 %v3117_v61  ;;  %v4445_v58 = vld [vmem:[%s5496_s20 + $0x10] sm:$0xff]   ;;  %v3881_v61 = vld [vmem:[%s5495_s19 + $0x1] ss:$0 sm:$0xff] }
0x1033   :  { %v3107_v60 = vpop.f32.mrf.mxu1 }
0x1034   :  { %v3286_v17 = vrot.slane %v3285_v3, 7 }
0x1035   :  { %v2960_v2 = vpop.f32.mrf.mxu0  ;;  %v4358_v5 = vpop.f32.mrf.mxu1 }
0x1036   :  { %v3114_v6 = vpack.c.bf16 %v2960_v2, %v2960_v2 }
0x1037   :  { %v4339_v7 = vpop.f32.mrf.mxu0 }
0x1038   :  { %v3231_v9 = vunpack.c.l.b16 %v3114_v6  ;;  %v3880_v6 = vld [vmem:[%s5494_s18 + $0x1] ss:$0 sm:$0xff] }
0x1039   :  { %v2963_v0 = vpop.f32.mrf.mxu0 }
0x103a   :  { %v3234_v10 = vsel %vm2139_vm12, %v3233_v63, %v3231_v9 }
0x103b   :  { %v3235_v12 = vpack.c.b16 %v3234_v10, %v3234_v10  ;;  %v4340_v13 = vpop.f32.mrf.mxu0 }
0x103d   :  { %v3056_v51 = vpop.f32.mrf.mxu0  ;;  %4374 = vmatmul.mubr.msk.bf16.vlgmr.msra.gmra.mxu0 %vm599_vm9, %v3235_v12 }
0x103e   :  { %v3116_v50 = vpack.c.bf16 %v3056_v51, %v3056_v51  ;;  %4387 = vmatprep.mubr.msk.bf16.mxu0 %vm4605_vm8, %v4604_v11 }
0x103f   :  { %v4351_v16 = vpop.f32.mrf.mxu0 }
0x1040   :  { %v3284_v19 = vunpack.c.l.b16 %v3116_v50 }
0x1041   :  { %v3059_v14 = vpop.f32.mrf.mxu0 }
0x1042   :  { %v3287_v59 = vsel %vm2139_vm12, %v3286_v17, %v3284_v19 }
0x1043   :  { %v3288_v20 = vpack.c.b16 %v3287_v59, %v3287_v59  ;;  %v4352_v21 = vpop.f32.mrf.mxu0  ;;  %v4446_v59 = vld [vmem:[%s5498_s22 + $0x38] sm:$0xff]  }
0x1044   :  { %v4448_v21 = vld [vmem:[%s5498_s22 + $0x28] sm:$0xff]  }
0x1045   :  { %4380 = vmatmul.mubr.msk.bf16.vlgmr.msra.gmra.mxu1 %vm599_vm9, %v3288_v20  ;;  %v4447_v20 = vld [vmem:[%s5498_s22 + $0x30] sm:$0xff]  }
0x1046   :  { %4399 = vmatprep.mubr.msk.bf16.mxu1 %vm4605_vm8, %v4604_v11  ;;  %4392 = vmatpush3.bf16.msra.mxu1 %v4446_v59 }
0x1047   :  { %4393 = vmatprep.subr.bf16.mxu1 %v4604_v11 }
0x104a   :  { %4394 = vmatpush3.bf16.msra.mxu1 %v4447_v20 }
0x104b   :  { %4395 = vmatprep.subr.bf16.mxu1 %v4604_v11 }
0x104e   :  { %4396 = vmatpush3.bf16.msra.mxu1 %v4448_v21 }
0x104f   :  { %4397 = vmatprep.subr.bf16.mxu1 %v4604_v11 }
0x106e   :  { %v3170_v22 = vpop.f32.mrf.mxu0 }
0x1070   :  { %v4363_v18 = vpop.f32.mrf.mxu0 }
0x1071   :  { %v3887_v18 = vld [vmem:[%s5497_s21 + $0x1] ss:$0 sm:$0xff] }
0x1072   :  { %v3173_v23 = vpop.f32.mrf.mxu0 }
0x1074   :  { %v4364_v1 = vpop.f32.mrf.mxu0 }
0x10c8   :  { %v3223_v24 = vpop.f32.mrf.mxu1 }
0x10c9   :  { %v3335_v47 = vadd.f32 %v3223_v24, %v3170_v22  ;;  %v4449_v22 = vld [vmem:[%s5498_s22 + $0x20] sm:$0xff]  }
0x10ca   :  { %v4369_v26 = vpop.f32.mrf.mxu1  ;;  %4398 = vmatpush3.bf16.msra.mxu1 %v4449_v22 }
0x10cc   :  { %v3226_v27 = vpop.f32.mrf.mxu1 }
0x10ce   :  { %v4370_v28 = vpop.f32.mrf.mxu1 }
0x10fd   :  { %v3276_v29 = vpop.f32.mrf.mxu0 }
0x10fe   :  { %v3336_v31 = vadd.f32 %v3335_v47, %v3276_v29 }
0x10ff   :  { %v4375_v30 = vpop.f32.mrf.mxu0 }
0x1101   :  { %v3279_v8 = vpop.f32.mrf.mxu0 }
0x1103   :  { %v4376_v25 = vpop.f32.mrf.mxu0 }
0x1105   :  { %v3329_v32 = vpop.f32.mrf.mxu1 }
0x1106   :  { %v3337_v34 = vadd.f32 %v3336_v31, %v3329_v32 }
0x1107   :  { %v4381_v35 = vpop.f32.mrf.mxu1 }
0x1108   :  { %v3346_v36 = vadd.f32 %v3877_v33, %v3337_v34  ;;  %v3900_v35 = vld [vmem:[%s5499_s23 + $0x1] ss:$0 sm:$0xff] }
0x1109   :  { %v3332_v39 = vpop.f32.mrf.mxu1 }
0x110a   :  { %v3348_v41 = vrot.slane %v3346_v36, 1  ;;  %v3351_v45 = vadd.f32 %v3346_v36, %v5155_v37  ;;  %v4444_v37 = vld [vmem:[%s5496_s20 + $0x18] sm:$0xff]  }
0x110b   :  { %v4382_v42 = vpop.f32.mrf.mxu1  ;;  %4384 = vmatpush3.bf16.msra.mxu0 %v4444_v37 }
0x110c   :  { %v3352_v44 = vadd.f32 %v3348_v41, %v5157_v38  ;;  %4385 = vmatprep.subr.bf16.mxu0 %v4604_v11 }
0x110e   :  { %v3359_v48 = vrot.slane %v3352_v44, 7 }
0x110f   :  { %4386 = vmatpush3.bf16.msra.mxu0 %v4445_v58 }
0x1110   :  { %v3360_v40 = vsel %vm2139_vm12, %v3359_v48, %v3351_v45  ;;  %4403 = vmatprep.subr.mxu0 %v4604_v11 }
0x1111   :  { %v3363_v46 = vsel %vm3362_vm14, %v3360_v40, 0.0 }
0x1112   :  { %3364 = vadd.xlane.f32.xlu0 %v3363_v46 }
0x119b   :  { %v3365_v49 = vpop.xlane.xlu0 %3364 }
0x119c   :  { %v3366_v52 = vmul.f32 0.03125, %v3365_v49 }
0x119e   :  { %v3368_v43 = vrot.slane %v3366_v52, 1  ;;  %v3371_v4 = vsub.f32 %v3351_v45, %v3366_v52 }
0x11a0   :  { %v3372_v53 = vsub.f32 %v3352_v44, %v3368_v43  ;;  %v3373_v55 = vmul.f32 %v3371_v4, %v3371_v4 }
0x11a2   :  { %v3374_v54 = vmul.f32 %v3372_v53, %v3372_v53 }
0x11a4   :  { %v3377_v62 = vrot.slane %v3374_v54, 7 }
0x11a6   :  { %v3378_v57 = vsel %vm2139_vm12, %v3377_v62, %v3373_v55 }
0x11a7   :  { %v3380_v38 = vsel %vm3362_vm14, %v3378_v57, 0.0 }
0x11a8   :  { %3381 = vadd.xlane.f32.xlu1 %v3380_v38 }
0x1231   :  { %v3382_v60 = vpop.xlane.xlu1 %3381 }
0x1232   :  { %v3383_v56 = vmul.f32 0.03125, %v3382_v60  ;;  %v3642_v60 = vld [vmem:[%s5530_s9 + $0x18] sm:$0xff] }
0x1234   :  { %v3384_v2 = vadd.f32 1e-12, %v3383_v56  ;;  %v3641_v56 = vld [vmem:[%s5530_s9 + $0x10] sm:$0xff] }
0x1236   :  { %4530 = vrsqrt.f32 %v3384_v2  ;;  %v3640_v2 = vld [vmem:[%s5530_s9 + $0x8] sm:$0xff] }
0x1243   :  { %v4531_v5 = vpop.eup %4530 }
0x1244   :  { %v3387_v7 = vrot.slane %v4531_v5, 1  ;;  %v3390_v63 = vmul.f32 %v4531_v5, %v3371_v4  ;;  %v3639_v5 = vld [vmem:[%s5530_s9] sm:$0xff] }
0x1246   :  { %v3391_v9 = vmul.f32 %v3387_v7, %v3372_v53  ;;  %v3398_v0 = vmul.f32 %v3880_v6, %v3390_v63 }
0x1248   :  { %v3399_v10 = vmul.f32 %v3880_v6, %v3391_v9  ;;  %v3406_v12 = vadd.f32 %v3881_v61, %v3398_v0 }
0x124a   :  { %v3407_v13 = vadd.f32 %v3881_v61, %v3399_v10  ;;  %v3408_v3 = vpack.c.bf16 %v3406_v12, %v3406_v12  ;;  %v3908_v10 = vld [vmem:[%s5500_s24 + $0x1] ss:$0 sm:$0xff] }
0x124c   :  { %v3409_v51 = vpack.c.bf16 %v3407_v13, %v3407_v13  ;;  %v3425_v16 = vunpack.c.l.b16 %v3408_v3 }
0x124e   :  { %v3426_v50 = vunpack.c.l.b16 %v3409_v51  ;;  %v3909_v51 = vld [vmem:[%s5501_s25 + $0x1] ss:$0 sm:$0xff] }
0x1250   :  { %v3427_v17 = vrot.slane %v3426_v50, 7 }
0x1252   :  { %v3428_v19 = vsel %vm2139_vm12, %v3427_v17, %v3425_v16 }
0x1253   :  { %v3429_v14 = vpack.c.b16 %v3428_v19, %v3428_v19  ;;  %v3910_v19 = vld [vmem:[#allocation6] ss:$0 sm:$0xff] }
0x1255   :  { %4388 = vmatmul.mubr.msk.bf16.vlgmr.msra.gmra.mxu0 %vm333_vm7, %v3429_v14 }
0x1256   :  { %4411 = vmatprep.mubr.msk.f32.mxu0 %vm4605_vm8, %v4604_v11  ;;  %4404 = vmatpush3.msra.mxu0 %v3642_v60 }
0x1257   :  { %4405 = vmatprep.subr.mxu0 %v4604_v11 }
0x1258   :  { %4406 = vmatpush3.msra.mxu0 %v3641_v56 }
0x1259   :  { %4407 = vmatprep.subr.mxu0 %v4604_v11 }
0x125a   :  { %4408 = vmatpush3.msra.mxu0 %v3640_v2 }
0x125b   :  { %4409 = vmatprep.subr.mxu0 %v4604_v11 }
0x125c   :  { %4410 = vmatpush3.msra.mxu0 %v3639_v5 }
0x1315   :  { %v3479_v23 = vpop.f32.mrf.mxu0 }
0x1316   :  { %v3480_v1 = vadd.f32 %v3887_v18, %v3479_v23 }
0x1317   :  { %v4389_v24 = vpop.f32.mrf.mxu0 }
0x1318   :  { %v3486_v26 = vmul.f32 0.044715, %v3480_v1  ;;  %v3485_v31 = vmul.f32 0.5, %v3480_v1 }
0x1319   :  { %v3482_v27 = vpop.f32.mrf.mxu0 }
0x131a   :  { %v3487_v28 = vmul.f32 %v3486_v26, %v3480_v1 }
0x131b   :  { %v4390_v29 = vpop.f32.mrf.mxu0 }
0x131c   :  { %v3488_v30 = vmul.f32 %v3487_v28, %v3480_v1 }
0x131e   :  { %v3489_v8 = vadd.f32 %v3488_v30, %v3480_v1 }
0x1320   :  { %v3490_v47 = vmul.f32 0.7978846, %v3489_v8 }
0x1322   :  { %4532 = vtanh.f32 %v3490_v47 }
0x132f   :  { %v4533_v25 = vpop.eup %4532 }
0x1330   :  { %v3492_v32 = vadd.f32 1.0, %v4533_v25 }
0x1332   :  { %v3493_v33 = vmul.f32 %v3492_v32, %v3485_v31 }
0x1334   :  { %v3494_v34 = vpack.c.bf16 %v3493_v33, %v3493_v33 }
0x1336   :  { %4400 = vmatmul.mubr.msk.bf16.vlgmr.msra.gmra.mxu1 %vm1880_vm11, %v3494_v34 }
0x13f6   :  { %v3573_v36 = vpop.f32.mrf.mxu1 }
0x13f7   :  { %v3574_v39 = vadd.f32 %v3900_v35, %v3573_v36 }
0x13f8   :  { %v4401_v41 = vpop.f32.mrf.mxu1 }
0x13f9   :  { %v3580_v42 = vrot.slane %v3574_v39, 1  ;;  %v3583_v40 = vadd.f32 %v3574_v39, %v3406_v12 }
0x13fa   :  { %v3576_v44 = vpop.f32.mrf.mxu1 }
0x13fb   :  { %v3584_v45 = vadd.f32 %v3580_v42, %v3407_v13 }
0x13fc   :  { %v4402_v48 = vpop.f32.mrf.mxu1 }
0x13fd   :  { %v3591_v46 = vrot.slane %v3584_v45, 7 }
0x13ff   :  { %v3592_v49 = vsel %vm2139_vm12, %v3591_v46, %v3583_v40 }
0x1400   :  { %v3594_v52 = vsel %vm3362_vm14, %v3592_v49, 0.0 }
0x1401   :  { %3595 = vadd.xlane.f32.xlu0 %v3594_v52 }
0x148a   :  { %v3596_v43 = vpop.xlane.xlu0 %3595 }
0x148b   :  { %v3597_v4 = vmul.f32 0.03125, %v3596_v43 }
0x148d   :  { %v3599_v53 = vrot.slane %v3597_v4, 1  ;;  %v3602_v54 = vsub.f32 %v3583_v40, %v3597_v4 }
0x148f   :  { %v3603_v55 = vsub.f32 %v3584_v45, %v3599_v53  ;;  %v3604_v57 = vmul.f32 %v3602_v54, %v3602_v54 }
0x1491   :  { %v3605_v62 = vmul.f32 %v3603_v55, %v3603_v55 }
0x1493   :  { %v3608_v38 = vrot.slane %v3605_v62, 7 }
0x1495   :  { %v3609_v37 = vsel %vm2139_vm12, %v3608_v38, %v3604_v57 }
0x1496   :  { %v3611_v58 = vsel %vm3362_vm14, %v3609_v37, 0.0 }
0x1497   :  { %3612 = vadd.xlane.f32.xlu0 %v3611_v58 }
0x1520   :  { %v3613_v6 = vpop.xlane.xlu0 %3612 }
0x1521   :  { %v3614_v7 = vmul.f32 0.03125, %v3613_v6 }
0x1523   :  { %v3615_v63 = vadd.f32 1e-12, %v3614_v7 }
0x1525   :  { %4534 = vrsqrt.f32 %v3615_v63 }
0x1532   :  { %v4535_v61 = vpop.eup %4534 }
0x1533   :  { %v3618_v9 = vrot.slane %v4535_v61, 1  ;;  %v3621_v0 = vmul.f32 %v4535_v61, %v3602_v54 }
0x1535   :  { %v3622_v12 = vmul.f32 %v3618_v9, %v3603_v55  ;;  %v3629_v13 = vmul.f32 %v3908_v10, %v3621_v0 }
0x1537   :  { %v3630_v3 = vmul.f32 %v3908_v10, %v3622_v12  ;;  %v3637_v50 = vadd.f32 %v3909_v51, %v3629_v13 }
0x1539   :  { %v3638_v11 = vadd.f32 %v3909_v51, %v3630_v3 }
0x153b   :  { %v3652_v16 = vrot.slane %v3638_v11, 7 }
0x153d   :  { %v3653_v17 = vsel %vm2139_vm12, %v3652_v16, %v3637_v50 }
0x153e   :  { %4412 = vmatmul.mubr.msk.f32.vlgmr.msra.gmra.mxu0 %vm333_vm7, %v3653_v17 }
0x15fe   :  { %v3722_v14 = vpop.f32.mrf.mxu0 }
0x15ff   :  { %v3723_v59 = vadd.f32 %v3910_v19, %v3722_v14 }
0x1600   :  { %v4413_v20 = vpop.f32.mrf.mxu0 }
0x1601   :  { %v3727_v21 = vsel %vm3726_vm15, %v3723_v59, -inf }
0x1602   :  { %3728 = vmax.xlane.f32.xlu1 %v3727_v21 }
0x168b   :  { %v3729_v22 = vpop.xlane.xlu1 %3728 }
0x168c   :  { %vm3730_vm0 = vcmp.ge.f32.partialorder %v3723_v59, %v3729_v22 }
0x168d   :  { %v3731_v18 = vsel %vm3730_vm0, %v4797_v15, 5 }
0x168e   :  { %v3732_v23 = vsel %vm3726_vm15, %v3731_v18, 2147483647 }
0x168f   :  { %v3734_v1 = vshra.s32 %v3732_v23, 16  ;;  %v3733_v26 = vand.u32 65535, %v3732_v23 }
0x1691   :  { %v3736_v24 = vcvt.s32.f32 %v3734_v1  ;;  %v3735_v28 = vcvt.s32.f32 %v3733_v26 }
0x1693   :  { %3737 = vmin.xlane.f32.xlu0 %v3736_v24 }
0x171c   :  { %v3738_v27 = vpop.xlane.xlu0 %3737 }
0x171d   :  { %vm3739_vm1 = vcmp.eq.f32.partialorder %v3736_v24, %v3738_v27  ;;  %v3744_v30 = vcvt.f32.s32 %v3738_v27 }
0x171e   :  { %v3740_v29 = vsel %vm3739_vm1, %v3735_v28, inf }
0x171f   :  { %3741 = vmin.xlane.f32.xlu1 %v3740_v29  ;;  %v3745_v47 = vshll.u32 %v3744_v30, 16 }
0x17a8   :  { %v3742_v8 = vpop.xlane.xlu1 %3741 }
0x17a9   :  { %v3743_v25 = vcvt.f32.s32 %v3742_v8 }
0x17ab   :  { %v3746_v31 = vadd.s32 %v3745_v47, %v3743_v25 }
0x17ad   :  { %3748 = vst.msk [vmem:[%s5502_s26] sm:$0x3] %vm3747_vm2, %v3746_v31 }
0x17ae   :  { %3753 = vsyncpa [#allocation3], 1 }
0x17af   :  { %3754 = vsyncpa [#allocation5], 1 }

</bundles_post_ra>
